<compile_context>
chip_gen: v7x
topology: tpu7x:2x2x1
jax: 0.10.0
libtpu: 0.0.40
codegen_flags: <defaults>
</compile_context>

<pallas_src>
import functools

import jax
import jax.numpy as jnp
from jax import lax
from jax.experimental import pallas as pl
from jax.experimental.pallas import tpu as pltpu


def _round_up(x, m):
    return (x + m - 1) // m * m


# ------------------------- Pallas kernels -------------------------

def _conv_stats_kernel(p_ref, w_ref, o_ref, sum_ref, sq_ref, acc_ref):
    """bf16 (tile_m, tile_k) @ (tile_k, Cout_pad) MXU matmul accumulated in an
    f32 VMEM scratch over the K grid axis; on the last K step the tile is
    written to conv_out (bf16) and the per-channel BN sum / sum-of-squares
    (f32, resident across the row grid axis) are accumulated."""
    kk = pl.program_id(2)

    @pl.when(kk == 0)
    def _():
        acc_ref[...] = jnp.zeros_like(acc_ref)

    acc_ref[...] += jnp.dot(p_ref[...], w_ref[...],
                            preferred_element_type=jnp.float32)

    last_k = kk == pl.num_programs(2) - 1

    @pl.when(jnp.logical_and(last_k, pl.program_id(1) == 0))
    def _():
        sum_ref[...] = jnp.zeros_like(sum_ref)
        sq_ref[...] = jnp.zeros_like(sq_ref)

    @pl.when(last_k)
    def _():
        acc = acc_ref[...]
        o_ref[...] = acc.astype(o_ref.dtype)
        sum_ref[...] += jnp.sum(acc, axis=0, keepdims=True)
        sq_ref[...] += jnp.sum(acc * acc, axis=0, keepdims=True)


def _bn_relu_kernel(x_ref, scale_ref, shift_ref, o_ref):
    x = x_ref[...].astype(jnp.float32)
    o_ref[...] = jnp.maximum(x * scale_ref[...] + shift_ref[...], 0.0)


# ------------------------- host-side glue -------------------------

def _im2col(x, k, s, p):
    """x: (N, Cin, D, H, W) -> bf16 patches (M, Cin*k^3), M = N*Do*Ho*Wo."""
    # TODO(synk): replace with an in-kernel haloed-slab DMA + k^3-tap
    # accumulating matmul to remove the k^3 input read amplification.
    N, Cin, D, H, W = x.shape
    Do = (D + 2 * p - k) // s + 1
    Ho = (H + 2 * p - k) // s + 1
    Wo = (W + 2 * p - k) // s + 1
    xp = jnp.pad(x, ((0, 0), (0, 0), (p, p), (p, p), (p, p)))
    xp = xp.astype(jnp.bfloat16)   # bf16 halves the materialized im2col stream
    cols = []
    for kd in range(k):
        for kh in range(k):
            for kw in range(k):
                cols.append(
                    xp[:, :, kd:kd + s * Do:s, kh:kh + s * Ho:s, kw:kw + s * Wo:s]
                )
    # (k^3, N, Cin, Do, Ho, Wo) -> (N, Do, Ho, Wo, Cin, k^3) -> (M, Cin*k^3)
    patches = jnp.stack(cols, axis=0).transpose(1, 3, 4, 5, 2, 0)
    patches = patches.reshape(N * Do * Ho * Wo, Cin * k * k * k)
    return patches, (N, Do, Ho, Wo)


def conv3d_bn_relu(x, weight, bias, gamma, beta, *, k, s, p, eps=1e-5,
                   tile_m=2048, tile_k=512, n_split=2):
    """Forward of the PyTorch Conv3d module (Conv3d + train-mode BN + ReLU).

    x:      (N, Cin, D, H, W) float32, NCDHW (PyTorch convention)
    weight: (Cout, Cin, k, k, k); bias/gamma/beta: (Cout,)
    returns (N, Cout, Do, Ho, Wo) float32, NCDHW

    NOTE: `bias` is accepted for API parity but not added: under training-mode
    BatchNorm the conv bias is exactly cancelled by the mean subtraction.
    (Eval-mode / running-stats BN would need the bias — not implemented here.)
    """
    Cout = weight.shape[0]
    patches, (N, Do, Ho, Wo) = _im2col(x, k, s, p)
    M, K = patches.shape

    # Lane-dense padding of the contraction / channel axes (multiples of 128);
    # K is additionally grid-tiled so VMEM use is bounded for any Cin.
    tile_k = min(tile_k, _round_up(K, 128))
    K_pad = _round_up(K, tile_k)
    k_steps = K_pad // tile_k
    Cout_pad = _round_up(Cout, 128)

    # Row tiling: n_split-way outer ("parallel") split of the row axis so both
    # v7x TensorCores participate.  Keep >= 4 inner pipeline steps per split
    # when M allows, never below 256 rows, rounded to 16 (bf16 sublanes).
    per_split = _round_up(pl.cdiv(M, n_split), 16)
    tile_m = min(tile_m, max(256, _round_up(pl.cdiv(M, n_split * 4), 16)))
    tile_m = min(tile_m, per_split)
    M_pad = _round_up(M, n_split * tile_m)
    inner = M_pad // (n_split * tile_m)

    patches = jnp.pad(patches, ((0, M_pad - M), (0, K_pad - K)))
    w2d = jnp.pad(weight.reshape(Cout, K).T.astype(jnp.bfloat16),   # (Kp, Cp)
                  ((0, K_pad - K), (0, Cout_pad - Cout)))

    # --- 1) fused bf16 conv matmul + BN statistics (single HBM pass) ---
    conv_out, sums_p, sqs_p = pl.pallas_call(
        _conv_stats_kernel,
        out_shape=(
            jax.ShapeDtypeStruct((M_pad, Cout_pad), jnp.bfloat16),
            jax.ShapeDtypeStruct((n_split, 1, Cout_pad), jnp.float32),
            jax.ShapeDtypeStruct((n_split, 1, Cout_pad), jnp.float32),
        ),
        grid=(n_split, inner, k_steps),
        in_specs=[
            pl.BlockSpec((tile_m, tile_k), lambda c, i, kk: (c * inner + i, kk)),
            pl.BlockSpec((tile_k, Cout_pad), lambda c, i, kk: (kk, 0)),
        ],
        out_specs=(
            pl.BlockSpec((tile_m, Cout_pad), lambda c, i, kk: (c * inner + i, 0)),
            pl.BlockSpec((None, 1, Cout_pad), lambda c, i, kk: (c, 0, 0)),
            pl.BlockSpec((None, 1, Cout_pad), lambda c, i, kk: (c, 0, 0)),
        ),
        scratch_shapes=[pltpu.VMEM((tile_m, Cout_pad), jnp.float32)],
        compiler_params=pltpu.CompilerParams(
            dimension_semantics=("parallel", "arbitrary", "arbitrary"),
            vmem_limit_bytes=48 * 1024 * 1024),
    )(patches, w2d)

    # --- 2) finalize BN statistics (tiny, host JAX) ---
    sums = jnp.sum(sums_p, axis=0)             # (1, Cout_pad)
    sqs = jnp.sum(sqs_p, axis=0)               # (1, Cout_pad)
    mean = sums / M                             # divide by true element count
    # NOTE: E[x^2]-E[x]^2 in f32 can cancel if |mean| >> std; acceptable at
    # conv-feature-map scales (padded rows/cols contribute exactly 0).
    var = sqs / M - mean * mean                 # biased var (PyTorch BN train)
    gamma_p = jnp.pad(gamma, (0, Cout_pad - Cout)).reshape(1, Cout_pad)
    beta_p = jnp.pad(beta, (0, Cout_pad - Cout)).reshape(1, Cout_pad)
    scale = gamma_p * lax.rsqrt(var + eps)
    shift = beta_p - mean * scale

    # --- 3) normalize + ReLU (bf16 in, f32 compute/out, large tiles) ---
    tile_m2 = n_split * tile_m                  # divides M_pad by construction
    y2d = pl.pallas_call(
        _bn_relu_kernel,
        out_shape=jax.ShapeDtypeStruct((M_pad, Cout_pad), jnp.float32),
        grid=(M_pad // tile_m2,),
        in_specs=[
            pl.BlockSpec((tile_m2, Cout_pad), lambda i: (i, 0)),
            pl.BlockSpec((1, Cout_pad), lambda i: (0, 0)),
            pl.BlockSpec((1, Cout_pad), lambda i: (0, 0)),
        ],
        out_specs=pl.BlockSpec((tile_m2, Cout_pad), lambda i: (i, 0)),
        compiler_params=pltpu.CompilerParams(
            dimension_semantics=("parallel",),
            vmem_limit_bytes=48 * 1024 * 1024),
    )(conv_out, scale, shift)

    # TODO(synk): in a stacked voxelnet, keep the activation channels-last
    # (NDHWC) to skip this crop + lane/sublane-hostile transpose round trip.
    y2d = y2d[:M, :Cout]
    return y2d.reshape(N, Do, Ho, Wo, Cout).transpose(0, 4, 1, 2, 3)


# ------------------------- demo / self-check -------------------------

if __name__ == "__main__":
    N, Cin, D, H, W = 2, 4, 16, 16, 16
    Cout, k, s, p = 8, 3, 1, 1
    eps = 1e-5

    key = jax.random.PRNGKey(0)
    kx, kw, kb = jax.random.split(key, 3)
    x = jax.random.normal(kx, (N, Cin, D, H, W), dtype=jnp.float32)
    weight = jax.random.normal(kw, (Cout, Cin, k, k, k), dtype=jnp.float32) * 0.1
    bias = jax.random.normal(kb, (Cout,), dtype=jnp.float32) * 0.1
    gamma = jnp.ones((Cout,), dtype=jnp.float32)   # BatchNorm3d weight init
    beta = jnp.zeros((Cout,), dtype=jnp.float32)   # BatchNorm3d bias init

    fwd = jax.jit(functools.partial(conv3d_bn_relu, k=k, s=s, p=p, eps=eps))
    out = jax.block_until_ready(fwd(x, weight, bias, gamma, beta))

    # pure-JAX f32 reference of the exact PyTorch forward semantics (incl.
    # bias, which train-mode BN cancels — verifies the drop is legitimate).
    conv_ref = lax.conv_general_dilated(
        x, weight, window_strides=(s, s, s), padding=[(p, p)] * 3,
        dimension_numbers=("NCDHW", "OIDHW", "NCDHW"),
        precision=lax.Precision.HIGHEST,
    ) + bias.reshape(1, Cout, 1, 1, 1)
    m_ref = conv_ref.mean(axis=(0, 2, 3, 4), keepdims=True)
    v_ref = conv_ref.var(axis=(0, 2, 3, 4), keepdims=True)
    ref = jnp.maximum(
        (conv_ref - m_ref) * lax.rsqrt(v_ref + eps)
        * gamma.reshape(1, Cout, 1, 1, 1) + beta.reshape(1, Cout, 1, 1, 1),
        0.0,
    )

    assert out.shape == (N, Cout, D, H, W), out.shape
    err = float(jnp.max(jnp.abs(out - ref)))
    # bf16 conv path + bf16 conv_out intermediate: ~1e-2 max abs error expected
    assert err < 6e-2, err
    print("KERNEL_OK")
</pallas_src>

<mosaic_0001>
module attributes {stable_mosaic.version = 11 : i64} {
  func.func @_conv_stats_kernel(%arg0: i32, %arg1: i32, %arg2: i32, %arg3: memref<1024x128xbf16, #tpu.memory_space<vmem>>, %arg4: memref<128x128xbf16, #tpu.memory_space<vmem>>, %arg5: memref<1024x128xbf16, #tpu.memory_space<vmem>>, %arg6: memref<1x1x128xf32, #tpu.memory_space<vmem>>, %arg7: memref<1x1x128xf32, #tpu.memory_space<vmem>>, %arg8: memref<1024x128xf32, #tpu.memory_space<vmem>>) attributes {dimension_semantics = [#tpu.dimension_semantics<parallel>, #tpu.dimension_semantics<arbitrary>, #tpu.dimension_semantics<arbitrary>], iteration_bounds = array<i64: 2, 4, 1>, scalar_prefetch = 0 : i64, scratch_operands = 1 : i64, tpu.core_type = #tpu.core_type<tc>, window_params = [{transform_indices = @transform_0, window_bounds = array<i64: 1024, 128>}, {transform_indices = @transform_1, window_bounds = array<i64: 128, 128>}, {transform_indices = @transform_2, window_bounds = array<i64: 1024, 128>}, {transform_indices = @transform_3, window_bounds = array<i64: 1, 1, 128>}, {transform_indices = @transform_4, window_bounds = array<i64: 1, 1, 128>}]} {
    %c0_i32 = arith.constant 0 : i32
    %0 = arith.cmpi eq, %arg2, %c0_i32 : i32
    %1 = arith.extui %0 : i1 to i32
    %c0_i32_0 = arith.constant 0 : i32
    %2 = arith.cmpi ne, %1, %c0_i32_0 : i32
    scf.if %2 {
      %cst_12 = arith.constant 0.000000e+00 : f32
      %16 = vector.broadcast %cst_12 : f32 to vector<1024x128xf32>
      %c0_13 = arith.constant 0 : index
      %c0_14 = arith.constant 0 : index
      %17 = vector.load %arg8[%c0_13, %c0_14] : memref<1024x128xf32, #tpu.memory_space<vmem>>, vector<1024x128xf32>
      tpu.vector_store %arg8[%c0_13, %c0_14], %16 {strides = array<i32>} : memref<1024x128xf32, #tpu.memory_space<vmem>>, vector<1024x128xf32>,
    } else {
    }
    %c0 = arith.constant 0 : index
    %c0_1 = arith.constant 0 : index
    %3 = vector.load %arg8[%c0, %c0_1] : memref<1024x128xf32, #tpu.memory_space<vmem>>, vector<1024x128xf32>
    %c0_2 = arith.constant 0 : index
    %c0_3 = arith.constant 0 : index
    %4 = vector.load %arg3[%c0_2, %c0_3] : memref<1024x128xbf16, #tpu.memory_space<vmem>>, vector<1024x128xbf16>
    %c0_4 = arith.constant 0 : index
    %c0_5 = arith.constant 0 : index
    %5 = vector.load %arg4[%c0_4, %c0_5] : memref<128x128xbf16, #tpu.memory_space<vmem>>, vector<128x128xbf16>
    %cst = arith.constant dense<0.000000e+00> : vector<1024x128xf32>
    %6 = tpu.matmul %4, %5, %cst {dimension_numbers = #tpu.dot_dimension_numbers<[1], [0], [0], [1], [0, 0, 1, 1], [], []>} : vector<1024x128xbf16>, vector<128x128xbf16>, vector<1024x128xf32> -> vector<1024x128xf32>
    %7 = arith.addf %3, %6 : vector<1024x128xf32>
    %c0_6 = arith.constant 0 : index
    %c0_7 = arith.constant 0 : index
    %8 = vector.load %arg8[%c0_6, %c0_7] : memref<1024x128xf32, #tpu.memory_space<vmem>>, vector<1024x128xf32>
    tpu.vector_store %arg8[%c0_6, %c0_7], %7 {strides = array<i32>} : memref<1024x128xf32, #tpu.memory_space<vmem>>, vector<1024x128xf32>,
    %c0_i32_8 = arith.constant 0 : i32
    %9 = arith.cmpi eq, %arg2, %c0_i32_8 : i32
    %c0_i32_9 = arith.constant 0 : i32
    %10 = arith.cmpi eq, %arg1, %c0_i32_9 : i32
    %11 = arith.andi %9, %10 : i1
    %12 = arith.extui %11 : i1 to i32
    %c0_i32_10 = arith.constant 0 : i32
    %13 = arith.cmpi ne, %12, %c0_i32_10 : i32
    scf.if %13 {
      %cst_12 = arith.constant 0.000000e+00 : f32
      %16 = vector.broadcast %cst_12 : f32 to vector<1x128xf32>
      %c0_13 = arith.constant 0 : index
      %c0_14 = arith.constant 0 : index
      %c0_15 = arith.constant 0 : index
      %17 = vector.load %arg6[%c0_13, %c0_14, %c0_15] : memref<1x1x128xf32, #tpu.memory_space<vmem>>, vector<1x1x128xf32>
      %18 = vector.shape_cast %17 : vector<1x1x128xf32> to vector<1x128xf32>
      %19 = vector.shape_cast %16 : vector<1x128xf32> to vector<1x1x128xf32>
      tpu.vector_store %arg6[%c0_13, %c0_14, %c0_15], %19 {strides = array<i32>} : memref<1x1x128xf32, #tpu.memory_space<vmem>>, vector<1x1x128xf32>,
      %cst_16 = arith.constant 0.000000e+00 : f32
      %20 = vector.broadcast %cst_16 : f32 to vector<1x128xf32>
      %c0_17 = arith.constant 0 : index
      %c0_18 = arith.constant 0 : index
      %c0_19 = arith.constant 0 : index
      %21 = vector.load %arg7[%c0_17, %c0_18, %c0_19] : memref<1x1x128xf32, #tpu.memory_space<vmem>>, vector<1x1x128xf32>
      %22 = vector.shape_cast %21 : vector<1x1x128xf32> to vector<1x128xf32>
      %23 = vector.shape_cast %20 : vector<1x128xf32> to vector<1x1x128xf32>
      tpu.vector_store %arg7[%c0_17, %c0_18, %c0_19], %23 {strides = array<i32>} : memref<1x1x128xf32, #tpu.memory_space<vmem>>, vector<1x1x128xf32>,
    } else {
    }
    %14 = arith.extui %9 : i1 to i32
    %c0_i32_11 = arith.constant 0 : i32
    %15 = arith.cmpi ne, %14, %c0_i32_11 : i32
    scf.if %15 {
      %c0_12 = arith.constant 0 : index
      %c0_13 = arith.constant 0 : index
      %16 = vector.load %arg8[%c0_12, %c0_13] : memref<1024x128xf32, #tpu.memory_space<vmem>>, vector<1024x128xf32>
      %17 = arith.truncf %16 : vector<1024x128xf32> to vector<1024x128xbf16>
      %c0_14 = arith.constant 0 : index
      %c0_15 = arith.constant 0 : index
      %18 = vector.load %arg5[%c0_14, %c0_15] : memref<1024x128xbf16, #tpu.memory_space<vmem>>, vector<1024x128xbf16>
      tpu.vector_store %arg5[%c0_14, %c0_15], %17 {strides = array<i32>} : memref<1024x128xbf16, #tpu.memory_space<vmem>>, vector<1024x128xbf16>,
      %c0_16 = arith.constant 0 : index
      %c0_17 = arith.constant 0 : index
      %c0_18 = arith.constant 0 : index
      %19 = vector.load %arg6[%c0_16, %c0_17, %c0_18] : memref<1x1x128xf32, #tpu.memory_space<vmem>>, vector<1x1x128xf32>
      %20 = vector.shape_cast %19 : vector<1x1x128xf32> to vector<1x128xf32>
      %cst_19 = arith.constant dense<0.000000e+00> : vector<128xf32>
      %21 = vector.multi_reduction <add>, %16, %cst_19 [0] : vector<1024x128xf32> to vector<128xf32>
      %22 = vector.shape_cast %21 : vector<128xf32> to vector<1x128xf32>
      %23 = arith.addf %20, %22 : vector<1x128xf32>
      %c0_20 = arith.constant 0 : index
      %c0_21 = arith.constant 0 : index
      %c0_22 = arith.constant 0 : index
      %24 = vector.load %arg6[%c0_20, %c0_21, %c0_22] : memref<1x1x128xf32, #tpu.memory_space<vmem>>, vector<1x1x128xf32>
      %25 = vector.shape_cast %24 : vector<1x1x128xf32> to vector<1x128xf32>
      %26 = vector.shape_cast %23 : vector<1x128xf32> to vector<1x1x128xf32>
      tpu.vector_store %arg6[%c0_20, %c0_21, %c0_22], %26 {strides = array<i32>} : memref<1x1x128xf32, #tpu.memory_space<vmem>>, vector<1x1x128xf32>,
      %c0_23 = arith.constant 0 : index
      %c0_24 = arith.constant 0 : index
      %c0_25 = arith.constant 0 : index
      %27 = vector.load %arg7[%c0_23, %c0_24, %c0_25] : memref<1x1x128xf32, #tpu.memory_space<vmem>>, vector<1x1x128xf32>
      %28 = vector.shape_cast %27 : vector<1x1x128xf32> to vector<1x128xf32>
      %29 = arith.mulf %16, %16 : vector<1024x128xf32>
      %cst_26 = arith.constant dense<0.000000e+00> : vector<128xf32>
      %30 = vector.multi_reduction <add>, %29, %cst_26 [0] : vector<1024x128xf32> to vector<128xf32>
      %31 = vector.shape_cast %30 : vector<128xf32> to vector<1x128xf32>
      %32 = arith.addf %28, %31 : vector<1x128xf32>
      %c0_27 = arith.constant 0 : index
      %c0_28 = arith.constant 0 : index
      %c0_29 = arith.constant 0 : index
      %33 = vector.load %arg7[%c0_27, %c0_28, %c0_29] : memref<1x1x128xf32, #tpu.memory_space<vmem>>, vector<1x1x128xf32>
      %34 = vector.shape_cast %33 : vector<1x1x128xf32> to vector<1x128xf32>
      %35 = vector.shape_cast %32 : vector<1x128xf32> to vector<1x1x128xf32>
      tpu.vector_store %arg7[%c0_27, %c0_28, %c0_29], %35 {strides = array<i32>} : memref<1x1x128xf32, #tpu.memory_space<vmem>>, vector<1x1x128xf32>,
    } else {
    }
    return
  }
  func.func @transform_0(%arg0: i32, %arg1: i32, %arg2: i32) -> (i32, i32) {
    %c4_i32 = arith.constant 4 : i32
    %0 = arith.muli %arg0, %c4_i32 : i32
    %1 = arith.addi %0, %arg1 : i32
    %c0_i32 = arith.constant 0 : i32
    return %1, %arg2 : i32, i32
  }
  func.func @transform_1(%arg0: i32, %arg1: i32, %arg2: i32) -> (i32, i32) {
    %c0_i32 = arith.constant 0 : i32
    %c0_i32_0 = arith.constant 0 : i32
    return %arg2, %c0_i32 : i32, i32
  }
  func.func @transform_2(%arg0: i32, %arg1: i32, %arg2: i32) -> (i32, i32) {
    %c4_i32 = arith.constant 4 : i32
    %0 = arith.muli %arg0, %c4_i32 : i32
    %1 = arith.addi %0, %arg1 : i32
    %c0_i32 = arith.constant 0 : i32
    %c0_i32_0 = arith.constant 0 : i32
    return %1, %c0_i32 : i32, i32
  }
  func.func @transform_3(%arg0: i32, %arg1: i32, %arg2: i32) -> (i32, i32, i32) {
    %c0_i32 = arith.constant 0 : i32
    %c0_i32_0 = arith.constant 0 : i32
    %c0_i32_1 = arith.constant 0 : i32
    return %arg0, %c0_i32, %c0_i32_0 : i32, i32, i32
  }
  func.func @transform_4(%arg0: i32, %arg1: i32, %arg2: i32) -> (i32, i32, i32) {
    %c0_i32 = arith.constant 0 : i32
    %c0_i32_0 = arith.constant 0 : i32
    %c0_i32_1 = arith.constant 0 : i32
    return %arg0, %c0_i32, %c0_i32_0 : i32, i32, i32
  }
}

module attributes {stable_mosaic.version = 11 : i64} {
  func.func @_bn_relu_kernel(%arg0: i32, %arg1: memref<2048x128xbf16, #tpu.memory_space<vmem>>, %arg2: memref<1x128xf32, #tpu.memory_space<vmem>>, %arg3: memref<1x128xf32, #tpu.memory_space<vmem>>, %arg4: memref<2048x128xf32, #tpu.memory_space<vmem>>) attributes {dimension_semantics = [#tpu.dimension_semantics<parallel>], iteration_bounds = array<i64: 4>, scalar_prefetch = 0 : i64, scratch_operands = 0 : i64, tpu.core_type = #tpu.core_type<tc>, window_params = [{transform_indices = @transform_0, window_bounds = array<i64: 2048, 128>}, {pipeline_mode = #tpu.pipeline_mode<synchronous>, transform_indices = @transform_1, window_bounds = array<i64: 1, 128>}, {pipeline_mode = #tpu.pipeline_mode<synchronous>, transform_indices = @transform_2, window_bounds = array<i64: 1, 128>}, {transform_indices = @transform_3, window_bounds = array<i64: 2048, 128>}]} {
    %c0 = arith.constant 0 : index
    %c0_0 = arith.constant 0 : index
    %0 = vector.load %arg1[%c0, %c0_0] : memref<2048x128xbf16, #tpu.memory_space<vmem>>, vector<2048x128xbf16>
    %1 = arith.extf %0 : vector<2048x128xbf16> to vector<2048x128xf32>
    %c0_1 = arith.constant 0 : index
    %c0_2 = arith.constant 0 : index
    %2 = vector.load %arg2[%c0_1, %c0_2] : memref<1x128xf32, #tpu.memory_space<vmem>>, vector<1x128xf32>
    %3 = vector.broadcast %2 : vector<1x128xf32> to vector<2048x128xf32>
    %4 = arith.mulf %1, %3 : vector<2048x128xf32>
    %c0_3 = arith.constant 0 : index
    %c0_4 = arith.constant 0 : index
    %5 = vector.load %arg3[%c0_3, %c0_4] : memref<1x128xf32, #tpu.memory_space<vmem>>, vector<1x128xf32>
    %6 = vector.broadcast %5 : vector<1x128xf32> to vector<2048x128xf32>
    %7 = arith.addf %4, %6 : vector<2048x128xf32>
    %cst = arith.constant 0.000000e+00 : f32
    %8 = vector.broadcast %cst : f32 to vector<2048x128xf32>
    %9 = arith.maximumf %7, %8 : vector<2048x128xf32>
    %c0_5 = arith.constant 0 : index
    %c0_6 = arith.constant 0 : index
    %10 = vector.load %arg4[%c0_5, %c0_6] : memref<2048x128xf32, #tpu.memory_space<vmem>>, vector<2048x128xf32>
    tpu.vector_store %arg4[%c0_5, %c0_6], %9 {strides = array<i32>} : memref<2048x128xf32, #tpu.memory_space<vmem>>, vector<2048x128xf32>,
    return
  }
  func.func @transform_0(%arg0: i32) -> (i32, i32) {
    %c0_i32 = arith.constant 0 : i32
    %c0_i32_0 = arith.constant 0 : i32
    return %arg0, %c0_i32 : i32, i32
  }
  func.func @transform_1(%arg0: i32) -> (i32, i32) {
    %c0_i32 = arith.constant 0 : i32
    %c0_i32_0 = arith.constant 0 : i32
    %c0_i32_1 = arith.constant 0 : i32
    return %c0_i32, %c0_i32_0 : i32, i32
  }
  func.func @transform_2(%arg0: i32) -> (i32, i32) {
    %c0_i32 = arith.constant 0 : i32
    %c0_i32_0 = arith.constant 0 : i32
    %c0_i32_1 = arith.constant 0 : i32
    return %c0_i32, %c0_i32_0 : i32, i32
  }
  func.func @transform_3(%arg0: i32) -> (i32, i32) {
    %c0_i32 = arith.constant 0 : i32
    %c0_i32_0 = arith.constant 0 : i32
    return %arg0, %c0_i32 : i32, i32
  }
}

</mosaic_0001>

<bundles_post_ra>
// kernel: conv3d_bn_relu.2
= control target key start
LH: loop header
LB: loop body
LE: loop exit
PB: predicated region body
PF: predicated region fallthrough
CT: control target
= control target key end

     0   :  { %s4398_s15 = smov 0   ;;  %s4400_s16 = smov 0   ;;  %s5347_s0 = inlined_call_operand.vmem [shape: bf16[8192,128], index: 0, kind: input, shape index: {}]   ;;  %s5348_s1 = inlined_call_operand.vmem [shape: bf16[128,128], index: 1, kind: input, shape index: {}]   ;;  %s5349_s2 = inlined_call_operand.vmem [shape: bf16[8192,128], index: 2, kind: output, shape index: {0}]   ;;  %s5350_s3 = inlined_call_operand.vmem [shape: f32[2,1,128], index: 3, kind: output, shape index: {1}]   ;;  %s5351_s4 = inlined_call_operand.vmem [shape: f32[2,1,128], index: 4, kind: output, shape index: {2}]  }
   0x1   :  { %s4402_s17 = smov 0   ;;  %s4404_s18 = smov 0  }
   0x2   :  { %s4406_s19 = smov 0  }
   0x3 LB: > { %s30_s20 = sadd.s32 1, %s4362_s17  ;;  %s34_s21 = sadd.s32 1, %s4366_s18  ;;  %s4370_s19 = sphi %s4406_s19, %s15_s19   ;;  %s4366_s18 = sphi %s4404_s18, %s5423_s18   ;;  %s4362_s17 = sphi %s4402_s17, %s5422_s17   ;;  %s4358_s16 = sphi %s4400_s16, %s5421_s16   ;;  %s4354_s15 = sphi %s4398_s15, %s5420_s15  }
   0x4   : > { %p32_p0 = scmp.ge.s32.totalorder %s30_s20, 4  ;;  %p3264_p1 = scmp.ge.s32.totalorder %s4370_s19, 1 }
   0x5   : > { %p215_p2 = scmp.lt.s32.totalorder %s4370_s19, 9 }
   0x6   : > { %s5425_s20 = smov (%p32_p0, %s30_s20), 0  ;;  %s5427_s21 = smov (!%p32_p0, %s34_s21), %s4366_s18 }
   0x7   : > { %p216_p3 = pnand %p3264_p1, %p215_p2  ;;  %p36_p4 = scmp.ge.s32.totalorder %s5427_s21, 2 }
   0x9   : > { %s5429_s21 = smov (%p36_p4, %s5427_s21), 0  ;;  %219 = sbr.rel (%p216_p3) target bundleno = 657 (0x291), region = 28 }
  0x10   : > { %p288_p5 = scmp.lt.s32.totalorder %s4358_s16, 1  ;;  %v4260_v0 = vld [vmem:[%s5348_s1] sm:$0xff]   ;;  %v4261_v1 = vld [vmem:[%s5348_s1 + $0x8] sm:$0xff]   ;;  %s3265_s26 = sshll.u32 %s4358_s16, 2  ;;  %v4262_v2 = vld [vmem:[%s5348_s1 + $0x10] sm:$0xff]  }
  0x11   : > { %4058 = vmatprep.subr.bf16.mxu0 %v4260_v0  ;;  %4202 = vmatprep.subr.bf16.mxu1 %v4260_v0  ;;  %s260_s27 = sadd.s32 %s4354_s15, %s3265_s26  ;;  %v4263_v3 = vld [vmem:[%s5348_s1 + $0x18] sm:$0xff]   ;;  %v4264_v4 = vld [vmem:[%s5348_s1 + $0x20] sm:$0xff]   ;;  %v4265_v7 = vld [vmem:[%s5348_s1 + $0x28] sm:$0xff]   ;;  %p1932_p7 = scmp.eq.s32.totalorder %s4354_s15, 0 }
  0x12   : > { %s5431_s16 = smov (!%p288_p5, %s4358_s16), 1  ;;  %4059 = vmatpush3.bf16.msra.mxu0 %v4260_v0  ;;  %4210 = vmatpush3.bf16.msra.mxu1 %v4260_v0  ;;  %s3266_s10 = sshll.u32 %s260_s27, 7  ;;  %v4266_v8 = vld [vmem:[%s5348_s1 + $0x30] sm:$0xff]   ;;  %v4267_v9 = vld [vmem:[%s5348_s1 + $0x38] sm:$0xff]  }
  0x13   : > { %s4440_s30 = scalar_lea.vmem %s5350_s3, %s5431_s16  ;;  %s4445_s7 = scalar_lea.vmem %s5351_s4, %s5431_s16  ;;  %4060 = vmatprep.subr.bf16.mxu0 %v4261_v1  ;;  %4203 = vmatprep.subr.bf16.mxu1 %v4261_v1 }
  0x14   : > { %p262_p6 = scmp.lt.s32.totalorder %s3266_s10, 1023 }
  0x16   : > { %4061 = vmatpush3.bf16.msra.mxu0 %v4261_v1  ;;  %4211 = vmatpush3.bf16.msra.mxu1 %v4261_v1  ;;  %s5433_s10 = smov (!%p262_p6, %s3266_s10), 1023 }
  0x17   : > { %4062 = vmatprep.subr.bf16.mxu0 %v4262_v2  ;;  %4204 = vmatprep.subr.bf16.mxu1 %v4262_v2  ;;  %s3267_s13 = sshll.u32 %s5433_s10, 2 }
  0x18   : > { %s4459_s24 = scalar_lea.vmem %s5347_s0, %s3267_s13  ;;  %s4464_s27 = scalar_lea.vmem %s5349_s2, %s3267_s13 }
  0x19   : > { %v4268_v5 = vld [vmem:[%s4459_s24] sm:$0xff]   ;;  %v4270_v10 = vld [vmem:[%s4459_s24 + $0x8] sm:$0xff]   ;;  %v4272_v12 = vld [vmem:[%s4459_s24 + $0x10] sm:$0xff]  }
  0x1a   : > { %4063 = vmatpush3.bf16.msra.mxu0 %v4262_v2  ;;  %4212 = vmatpush3.bf16.msra.mxu1 %v4262_v2  ;;  %v4269_v6 = vld [vmem:[%s4459_s24 + $0x100] sm:$0xff]   ;;  %v4271_v11 = vld [vmem:[%s4459_s24 + $0x108] sm:$0xff]   ;;  %v4273_v13 = vld [vmem:[%s4459_s24 + $0x110] sm:$0xff]  }
  0x1b   : > { %4064 = vmatprep.subr.bf16.mxu0 %v4263_v3  ;;  %4205 = vmatprep.subr.bf16.mxu1 %v4263_v3  ;;  %v4274_v14 = vld [vmem:[%s4459_s24 + $0x18] sm:$0xff]   ;;  %v4276_v16 = vld [vmem:[%s4459_s24 + $0x20] sm:$0xff]   ;;  %v4278_v18 = vld [vmem:[%s4459_s24 + $0x28] sm:$0xff]  }
  0x1c   : > { %4074 = vmatprep.mubr.bf16.mxu0 %v4268_v5  ;;  %4138 = vmatprep.mubr.bf16.mxu1 %v4269_v6  ;;  %v4275_v15 = vld [vmem:[%s4459_s24 + $0x118] sm:$0xff]   ;;  %v4277_v17 = vld [vmem:[%s4459_s24 + $0x120] sm:$0xff]   ;;  %v4279_v19 = vld [vmem:[%s4459_s24 + $0x128] sm:$0xff]  }
  0x1d   : > { %v4280_v20 = vld [vmem:[%s4459_s24 + $0x30] sm:$0xff]   ;;  %v4282_v22 = vld [vmem:[%s4459_s24 + $0x38] sm:$0xff]   ;;  %v4284_v24 = vld [vmem:[%s4459_s24 + $0x40] sm:$0xff]  }
  0x1e   : > { %4065 = vmatpush3.bf16.msra.mxu0 %v4263_v3  ;;  %4213 = vmatpush3.bf16.msra.mxu1 %v4263_v3  ;;  %v4281_v21 = vld [vmem:[%s4459_s24 + $0x130] sm:$0xff]   ;;  %v4283_v23 = vld [vmem:[%s4459_s24 + $0x138] sm:$0xff]   ;;  %v4285_v25 = vld [vmem:[%s4459_s24 + $0x140] sm:$0xff]  }
  0x1f   : > { %4066 = vmatprep.subr.bf16.mxu0 %v4264_v4  ;;  %4206 = vmatprep.subr.bf16.mxu1 %v4264_v4  ;;  %v4286_v26 = vld [vmem:[%s4459_s24 + $0x48] sm:$0xff]   ;;  %v4288_v28 = vld [vmem:[%s4459_s24 + $0x50] sm:$0xff]   ;;  %v4290_v30 = vld [vmem:[%s4459_s24 + $0x58] sm:$0xff]  }
  0x20   : > { %v4287_v27 = vld [vmem:[%s4459_s24 + $0x148] sm:$0xff]   ;;  %v4289_v29 = vld [vmem:[%s4459_s24 + $0x150] sm:$0xff]   ;;  %v4291_v31 = vld [vmem:[%s4459_s24 + $0x158] sm:$0xff]  }
  0x21   : > { %v4292_v32 = vld [vmem:[%s4459_s24 + $0x60] sm:$0xff]   ;;  %v4294_v34 = vld [vmem:[%s4459_s24 + $0x68] sm:$0xff]   ;;  %v4296_v36 = vld [vmem:[%s4459_s24 + $0x70] sm:$0xff]  }
  0x22   : > { %4067 = vmatpush3.bf16.msra.mxu0 %v4264_v4  ;;  %4214 = vmatpush3.bf16.msra.mxu1 %v4264_v4  ;;  %v4293_v33 = vld [vmem:[%s4459_s24 + $0x160] sm:$0xff]   ;;  %v4295_v35 = vld [vmem:[%s4459_s24 + $0x168] sm:$0xff]   ;;  %v4297_v37 = vld [vmem:[%s4459_s24 + $0x170] sm:$0xff]  }
  0x23   : > { %4068 = vmatprep.subr.bf16.mxu0 %v4265_v7  ;;  %4207 = vmatprep.subr.bf16.mxu1 %v4265_v7  ;;  %v4298_v38 = vld [vmem:[%s4459_s24 + $0x78] sm:$0xff]   ;;  %v4300_v40 = vld [vmem:[%s4459_s24 + $0x80] sm:$0xff]   ;;  %v4302_v42 = vld [vmem:[%s4459_s24 + $0x88] sm:$0xff]  }
  0x24   : > { %v4299_v39 = vld [vmem:[%s4459_s24 + $0x178] sm:$0xff]   ;;  %v4301_v41 = vld [vmem:[%s4459_s24 + $0x180] sm:$0xff]   ;;  %v4303_v43 = vld [vmem:[%s4459_s24 + $0x188] sm:$0xff]  }
  0x25   : > { %v4304_v44 = vld [vmem:[%s4459_s24 + $0x90] sm:$0xff]   ;;  %v4306_v46 = vld [vmem:[%s4459_s24 + $0x98] sm:$0xff]   ;;  %v4308_v48 = vld [vmem:[%s4459_s24 + $0xa0] sm:$0xff]  }
  0x26   : > { %4069 = vmatpush3.bf16.msra.mxu0 %v4265_v7  ;;  %4215 = vmatpush3.bf16.msra.mxu1 %v4265_v7  ;;  %v4305_v45 = vld [vmem:[%s4459_s24 + $0x190] sm:$0xff]   ;;  %v4307_v47 = vld [vmem:[%s4459_s24 + $0x198] sm:$0xff]   ;;  %v4309_v49 = vld [vmem:[%s4459_s24 + $0x1a0] sm:$0xff]  }
  0x27   : > { %4070 = vmatprep.subr.bf16.mxu0 %v4266_v8  ;;  %4208 = vmatprep.subr.bf16.mxu1 %v4266_v8  ;;  %v4310_v50 = vld [vmem:[%s4459_s24 + $0xa8] sm:$0xff]   ;;  %v4312_v52 = vld [vmem:[%s4459_s24 + $0xb0] sm:$0xff]   ;;  %v4314_v54 = vld [vmem:[%s4459_s24 + $0xb8] sm:$0xff]  }
  0x28   : > { %v4311_v51 = vld [vmem:[%s4459_s24 + $0x1a8] sm:$0xff]   ;;  %v4313_v53 = vld [vmem:[%s4459_s24 + $0x1b0] sm:$0xff]   ;;  %v4315_v55 = vld [vmem:[%s4459_s24 + $0x1b8] sm:$0xff]  }
  0x29   : > { %v4316_v56 = vld [vmem:[%s4459_s24 + $0xc0] sm:$0xff]   ;;  %v4318_v58 = vld [vmem:[%s4459_s24 + $0xc8] sm:$0xff]   ;;  %v4320_v60 = vld [vmem:[%s4459_s24 + $0xd0] sm:$0xff]  }
  0x2a   : > { %4071 = vmatpush3.bf16.msra.mxu0 %v4266_v8  ;;  %4216 = vmatpush3.bf16.msra.mxu1 %v4266_v8  ;;  %v4317_v57 = vld [vmem:[%s4459_s24 + $0x1c0] sm:$0xff]   ;;  %v4319_v59 = vld [vmem:[%s4459_s24 + $0x1c8] sm:$0xff]   ;;  %v4321_v61 = vld [vmem:[%s4459_s24 + $0x1d0] sm:$0xff]  }
  0x2b   : > { %4072 = vmatprep.subr.bf16.mxu0 %v4267_v9  ;;  %4209 = vmatprep.subr.bf16.mxu1 %v4267_v9  ;;  %v4322_v62 = vld [vmem:[%s4459_s24 + $0xd8] sm:$0xff]   ;;  %v4324_v0 = vld [vmem:[%s4459_s24 + $0xe0] sm:$0xff]   ;;  %v4326_v2 = vld [vmem:[%s4459_s24 + $0xe8] sm:$0xff]  }
  0x2c   : > { %v4323_v63 = vld [vmem:[%s4459_s24 + $0x1d8] sm:$0xff]   ;;  %v4325_v1 = vld [vmem:[%s4459_s24 + $0x1e0] sm:$0xff]   ;;  %v4327_v3 = vld [vmem:[%s4459_s24 + $0x1e8] sm:$0xff]  }
  0x2d   : > { %v4328_v4 = vld [vmem:[%s4459_s24 + $0xf0] sm:$0xff]   ;;  %v4330_v6 = vld [vmem:[%s4459_s24 + $0xf8] sm:$0xff]  }
  0x2e   : > { %4073 = vmatpush3.bf16.msra.mxu0 %v4267_v9  ;;  %4217 = vmatpush3.bf16.msra.mxu1 %v4267_v9  ;;  %v4329_v5 = vld [vmem:[%s4459_s24 + $0x1f0] sm:$0xff]   ;;  %v4331_v7 = vld [vmem:[%s4459_s24 + $0x1f8] sm:$0xff]  }
  0x31   : > { %4075 = vmatmul.mubr.bf16.vlgmr.msra.gmra.mrb[0].mxu0 %v4270_v10  ;;  %4139 = vmatmul.mubr.bf16.vlgmr.msra.gmra.mrb[0].mxu1 %v4271_v11 }
  0x32   : > { %4078 = vmatprep.mubr.bf16.mxu0 %v4272_v12  ;;  %4142 = vmatprep.mubr.bf16.mxu1 %v4273_v13 }
  0x39   : > { %4079 = vmatmul.mubr.bf16.gmra.mrb[4].mxu0 %v4274_v14  ;;  %4143 = vmatmul.mubr.bf16.gmra.mrb[4].mxu1 %v4275_v15 }
  0x3a   : > { %4082 = vmatprep.mubr.bf16.mxu0 %v4276_v16  ;;  %4146 = vmatprep.mubr.bf16.mxu1 %v4277_v17 }
  0x41   : > { %4083 = vmatmul.mubr.bf16.gmra.mrb[8].mxu0 %v4278_v18  ;;  %4147 = vmatmul.mubr.bf16.gmra.mrb[8].mxu1 %v4279_v19 }
  0x42   : > { %4086 = vmatprep.mubr.bf16.mxu0 %v4280_v20  ;;  %4150 = vmatprep.mubr.bf16.mxu1 %v4281_v21 }
  0x49   : > { %4087 = vmatmul.mubr.bf16.gmra.mrb[12].mxu0 %v4282_v22  ;;  %4151 = vmatmul.mubr.bf16.gmra.mrb[12].mxu1 %v4283_v23 }
  0x4a   : > { %4090 = vmatprep.mubr.bf16.mxu0 %v4284_v24  ;;  %4154 = vmatprep.mubr.bf16.mxu1 %v4285_v25 }
  0x51   : > { %4091 = vmatmul.mubr.bf16.gmra.mrb[16].mxu0 %v4286_v26  ;;  %4155 = vmatmul.mubr.bf16.gmra.mrb[16].mxu1 %v4287_v27 }
  0x52   : > { %4094 = vmatprep.mubr.bf16.mxu0 %v4288_v28  ;;  %4158 = vmatprep.mubr.bf16.mxu1 %v4289_v29 }
  0x59   : > { %4095 = vmatmul.mubr.bf16.gmra.mrb[20].mxu0 %v4290_v30  ;;  %4159 = vmatmul.mubr.bf16.gmra.mrb[20].mxu1 %v4291_v31 }
  0x5a   : > { %4098 = vmatprep.mubr.bf16.mxu0 %v4292_v32  ;;  %4162 = vmatprep.mubr.bf16.mxu1 %v4293_v33 }
  0x61   : > { %4099 = vmatmul.mubr.bf16.gmra.mrb[24].mxu0 %v4294_v34  ;;  %4163 = vmatmul.mubr.bf16.gmra.mrb[24].mxu1 %v4295_v35 }
  0x62   : > { %4102 = vmatprep.mubr.bf16.mxu0 %v4296_v36  ;;  %4166 = vmatprep.mubr.bf16.mxu1 %v4297_v37 }
  0x69   : > { %4103 = vmatmul.mubr.bf16.gmra.mrb[28].mxu0 %v4298_v38  ;;  %4167 = vmatmul.mubr.bf16.gmra.mrb[28].mxu1 %v4299_v39 }
  0x6a   : > { %4106 = vmatprep.mubr.bf16.mxu0 %v4300_v40  ;;  %4170 = vmatprep.mubr.bf16.mxu1 %v4301_v41 }
  0x71   : > { %4107 = vmatmul.mubr.bf16.gmra.mrb[32].mxu0 %v4302_v42  ;;  %4171 = vmatmul.mubr.bf16.gmra.mrb[32].mxu1 %v4303_v43 }
  0x72   : > { %4110 = vmatprep.mubr.bf16.mxu0 %v4304_v44  ;;  %4174 = vmatprep.mubr.bf16.mxu1 %v4305_v45 }
  0x79   : > { %4111 = vmatmul.mubr.bf16.gmra.mrb[36].mxu0 %v4306_v46  ;;  %4175 = vmatmul.mubr.bf16.gmra.mrb[36].mxu1 %v4307_v47 }
  0x7a   : > { %4114 = vmatprep.mubr.bf16.mxu0 %v4308_v48  ;;  %4178 = vmatprep.mubr.bf16.mxu1 %v4309_v49 }
  0x81   : > { %4115 = vmatmul.mubr.bf16.gmra.mrb[40].mxu0 %v4310_v50  ;;  %4179 = vmatmul.mubr.bf16.gmra.mrb[40].mxu1 %v4311_v51 }
  0x82   : > { %4118 = vmatprep.mubr.bf16.mxu0 %v4312_v52  ;;  %4182 = vmatprep.mubr.bf16.mxu1 %v4313_v53 }
  0x89   : > { %4119 = vmatmul.mubr.bf16.gmra.mrb[44].mxu0 %v4314_v54  ;;  %4183 = vmatmul.mubr.bf16.gmra.mrb[44].mxu1 %v4315_v55 }
  0x8a   : > { %4122 = vmatprep.mubr.bf16.mxu0 %v4316_v56  ;;  %4186 = vmatprep.mubr.bf16.mxu1 %v4317_v57 }
  0x91   : > { %4123 = vmatmul.mubr.bf16.gmra.mrb[48].mxu0 %v4318_v58  ;;  %4187 = vmatmul.mubr.bf16.gmra.mrb[48].mxu1 %v4319_v59 }
  0x92   : > { %4126 = vmatprep.mubr.bf16.mxu0 %v4320_v60  ;;  %4190 = vmatprep.mubr.bf16.mxu1 %v4321_v61 }
  0x99   : > { %4127 = vmatmul.mubr.bf16.gmra.mrb[52].mxu0 %v4322_v62  ;;  %4191 = vmatmul.mubr.bf16.gmra.mrb[52].mxu1 %v4323_v63 }
  0x9a   : > { %4130 = vmatprep.mubr.bf16.mxu0 %v4324_v0  ;;  %4194 = vmatprep.mubr.bf16.mxu1 %v4325_v1 }
  0xa1   : > { %4131 = vmatmul.mubr.bf16.gmra.mrb[56].mxu0 %v4326_v2  ;;  %4195 = vmatmul.mubr.bf16.gmra.mrb[56].mxu1 %v4327_v3 }
  0xa2   : > { %4134 = vmatprep.mubr.bf16.mxu0 %v4328_v4  ;;  %4198 = vmatprep.mubr.bf16.mxu1 %v4329_v5 }
  0xa9   : > { %4135 = vmatmul.mubr.bf16.gmra.mrb[60].mxu0 %v4330_v6  ;;  %4199 = vmatmul.mubr.bf16.gmra.mrb[60].mxu1 %v4331_v7 }
 0x104   : > { %v4076_v8 = vpop.f32.mrb[0].mxu0  ;;  %v4140_v9 = vpop.f32.mrb[0].mxu1 }
 0x105   : > { %v1165_v10 = vpop.f32.mrb[1].mxu0  ;;  %v1421_v11 = vpop.f32.mrb[1].mxu1  ;;  %1806 = vst [vmem:[#allocation2 + $0x10] sm:$0xff] %v4076_v8  ;;  %1870 = vst [vmem:[#allocation2 + $0x210] sm:$0xff] %v4140_v9 }
 0x106   : > { %v4077_v12 = vpop.f32.mrb[2].mxu0  ;;  %v4141_v13 = vpop.f32.mrb[2].mxu1  ;;  %1804 = vst [vmem:[#allocation2] sm:$0xff] %v1165_v10  ;;  %1868 = vst [vmem:[#allocation2 + $0x200] sm:$0xff] %v1421_v11 }
 0x107   : > { %v1168_v14 = vpop.f32.mrb[3].mxu0  ;;  %v1424_v15 = vpop.f32.mrb[3].mxu1  ;;  %1807 = vst [vmem:[#allocation2 + $0x18] sm:$0xff] %v4077_v12  ;;  %1871 = vst [vmem:[#allocation2 + $0x218] sm:$0xff] %v4141_v13 }
 0x108   : > { %1805 = vst [vmem:[#allocation2 + $0x8] sm:$0xff] %v1168_v14  ;;  %1869 = vst [vmem:[#allocation2 + $0x208] sm:$0xff] %v1424_v15 }
 0x10c   : > { %v4080_v16 = vpop.f32.mrb[4].mxu0  ;;  %v4144_v17 = vpop.f32.mrb[4].mxu1 }
 0x10d   : > { %v1181_v18 = vpop.f32.mrb[5].mxu0  ;;  %v1437_v19 = vpop.f32.mrb[5].mxu1  ;;  %1810 = vst [vmem:[#allocation2 + $0x30] sm:$0xff] %v4080_v16  ;;  %1874 = vst [vmem:[#allocation2 + $0x230] sm:$0xff] %v4144_v17 }
 0x10e   : > { %v4081_v20 = vpop.f32.mrb[6].mxu0  ;;  %v4145_v21 = vpop.f32.mrb[6].mxu1  ;;  %1808 = vst [vmem:[#allocation2 + $0x20] sm:$0xff] %v1181_v18  ;;  %1872 = vst [vmem:[#allocation2 + $0x220] sm:$0xff] %v1437_v19 }
 0x10f   : > { %v1184_v22 = vpop.f32.mrb[7].mxu0  ;;  %v1440_v23 = vpop.f32.mrb[7].mxu1  ;;  %1811 = vst [vmem:[#allocation2 + $0x38] sm:$0xff] %v4081_v20  ;;  %1875 = vst [vmem:[#allocation2 + $0x238] sm:$0xff] %v4145_v21 }
 0x110   : > { %1809 = vst [vmem:[#allocation2 + $0x28] sm:$0xff] %v1184_v22  ;;  %1873 = vst [vmem:[#allocation2 + $0x228] sm:$0xff] %v1440_v23 }
 0x114   : > { %v4084_v24 = vpop.f32.mrb[8].mxu0  ;;  %v4148_v25 = vpop.f32.mrb[8].mxu1 }
 0x115   : > { %v1197_v26 = vpop.f32.mrb[9].mxu0  ;;  %v1453_v27 = vpop.f32.mrb[9].mxu1  ;;  %1814 = vst [vmem:[#allocation2 + $0x50] sm:$0xff] %v4084_v24  ;;  %1878 = vst [vmem:[#allocation2 + $0x250] sm:$0xff] %v4148_v25 }
 0x116   : > { %v4085_v28 = vpop.f32.mrb[10].mxu0  ;;  %v4149_v29 = vpop.f32.mrb[10].mxu1  ;;  %1812 = vst [vmem:[#allocation2 + $0x40] sm:$0xff] %v1197_v26  ;;  %1876 = vst [vmem:[#allocation2 + $0x240] sm:$0xff] %v1453_v27 }
 0x117   : > { %v1200_v30 = vpop.f32.mrb[11].mxu0  ;;  %v1456_v31 = vpop.f32.mrb[11].mxu1  ;;  %1815 = vst [vmem:[#allocation2 + $0x58] sm:$0xff] %v4085_v28  ;;  %1879 = vst [vmem:[#allocation2 + $0x258] sm:$0xff] %v4149_v29 }
 0x118   : > { %1813 = vst [vmem:[#allocation2 + $0x48] sm:$0xff] %v1200_v30  ;;  %1877 = vst [vmem:[#allocation2 + $0x248] sm:$0xff] %v1456_v31 }
 0x11c   : > { %v4088_v32 = vpop.f32.mrb[12].mxu0  ;;  %v4152_v33 = vpop.f32.mrb[12].mxu1 }
 0x11d   : > { %v1213_v34 = vpop.f32.mrb[13].mxu0  ;;  %v1469_v35 = vpop.f32.mrb[13].mxu1  ;;  %1818 = vst [vmem:[#allocation2 + $0x70] sm:$0xff] %v4088_v32  ;;  %1882 = vst [vmem:[#allocation2 + $0x270] sm:$0xff] %v4152_v33 }
 0x11e   : > { %v4089_v36 = vpop.f32.mrb[14].mxu0  ;;  %v4153_v37 = vpop.f32.mrb[14].mxu1  ;;  %1816 = vst [vmem:[#allocation2 + $0x60] sm:$0xff] %v1213_v34  ;;  %1880 = vst [vmem:[#allocation2 + $0x260] sm:$0xff] %v1469_v35 }
 0x11f   : > { %v1216_v38 = vpop.f32.mrb[15].mxu0  ;;  %v1472_v39 = vpop.f32.mrb[15].mxu1  ;;  %1819 = vst [vmem:[#allocation2 + $0x78] sm:$0xff] %v4089_v36  ;;  %1883 = vst [vmem:[#allocation2 + $0x278] sm:$0xff] %v4153_v37 }
 0x120   : > { %1817 = vst [vmem:[#allocation2 + $0x68] sm:$0xff] %v1216_v38  ;;  %1881 = vst [vmem:[#allocation2 + $0x268] sm:$0xff] %v1472_v39 }
 0x124   : > { %v4092_v40 = vpop.f32.mrb[16].mxu0  ;;  %v4156_v41 = vpop.f32.mrb[16].mxu1 }
 0x125   : > { %v1229_v42 = vpop.f32.mrb[17].mxu0  ;;  %v1485_v43 = vpop.f32.mrb[17].mxu1  ;;  %1822 = vst [vmem:[#allocation2 + $0x90] sm:$0xff] %v4092_v40  ;;  %1886 = vst [vmem:[#allocation2 + $0x290] sm:$0xff] %v4156_v41 }
 0x126   : > { %v4093_v44 = vpop.f32.mrb[18].mxu0  ;;  %v4157_v45 = vpop.f32.mrb[18].mxu1  ;;  %1820 = vst [vmem:[#allocation2 + $0x80] sm:$0xff] %v1229_v42  ;;  %1884 = vst [vmem:[#allocation2 + $0x280] sm:$0xff] %v1485_v43 }
 0x127   : > { %v1232_v46 = vpop.f32.mrb[19].mxu0  ;;  %v1488_v47 = vpop.f32.mrb[19].mxu1  ;;  %1823 = vst [vmem:[#allocation2 + $0x98] sm:$0xff] %v4093_v44  ;;  %1887 = vst [vmem:[#allocation2 + $0x298] sm:$0xff] %v4157_v45 }
 0x128   : > { %1821 = vst [vmem:[#allocation2 + $0x88] sm:$0xff] %v1232_v46  ;;  %1885 = vst [vmem:[#allocation2 + $0x288] sm:$0xff] %v1488_v47 }
 0x12c   : > { %v4096_v48 = vpop.f32.mrb[20].mxu0  ;;  %v4160_v49 = vpop.f32.mrb[20].mxu1 }
 0x12d   : > { %v1245_v50 = vpop.f32.mrb[21].mxu0  ;;  %v1501_v51 = vpop.f32.mrb[21].mxu1  ;;  %1826 = vst [vmem:[#allocation2 + $0xb0] sm:$0xff] %v4096_v48  ;;  %1890 = vst [vmem:[#allocation2 + $0x2b0] sm:$0xff] %v4160_v49 }
 0x12e   : > { %v4097_v52 = vpop.f32.mrb[22].mxu0  ;;  %v4161_v53 = vpop.f32.mrb[22].mxu1  ;;  %1824 = vst [vmem:[#allocation2 + $0xa0] sm:$0xff] %v1245_v50  ;;  %1888 = vst [vmem:[#allocation2 + $0x2a0] sm:$0xff] %v1501_v51 }
 0x12f   : > { %v1248_v54 = vpop.f32.mrb[23].mxu0  ;;  %v1504_v55 = vpop.f32.mrb[23].mxu1  ;;  %1827 = vst [vmem:[#allocation2 + $0xb8] sm:$0xff] %v4097_v52  ;;  %1891 = vst [vmem:[#allocation2 + $0x2b8] sm:$0xff] %v4161_v53 }
 0x130   : > { %1825 = vst [vmem:[#allocation2 + $0xa8] sm:$0xff] %v1248_v54  ;;  %1889 = vst [vmem:[#allocation2 + $0x2a8] sm:$0xff] %v1504_v55 }
 0x134   : > { %v4100_v56 = vpop.f32.mrb[24].mxu0  ;;  %v4164_v57 = vpop.f32.mrb[24].mxu1 }
 0x135   : > { %v1261_v58 = vpop.f32.mrb[25].mxu0  ;;  %v1517_v59 = vpop.f32.mrb[25].mxu1  ;;  %1830 = vst [vmem:[#allocation2 + $0xd0] sm:$0xff] %v4100_v56  ;;  %1894 = vst [vmem:[#allocation2 + $0x2d0] sm:$0xff] %v4164_v57 }
 0x136   : > { %v4101_v60 = vpop.f32.mrb[26].mxu0  ;;  %v4165_v61 = vpop.f32.mrb[26].mxu1  ;;  %1828 = vst [vmem:[#allocation2 + $0xc0] sm:$0xff] %v1261_v58  ;;  %1892 = vst [vmem:[#allocation2 + $0x2c0] sm:$0xff] %v1517_v59 }
 0x137   : > { %v1264_v62 = vpop.f32.mrb[27].mxu0  ;;  %v1520_v63 = vpop.f32.mrb[27].mxu1  ;;  %1831 = vst [vmem:[#allocation2 + $0xd8] sm:$0xff] %v4101_v60  ;;  %1895 = vst [vmem:[#allocation2 + $0x2d8] sm:$0xff] %v4165_v61 }
 0x138   : > { %1829 = vst [vmem:[#allocation2 + $0xc8] sm:$0xff] %v1264_v62  ;;  %1893 = vst [vmem:[#allocation2 + $0x2c8] sm:$0xff] %v1520_v63 }
 0x13c   : > { %v4104_v0 = vpop.f32.mrb[28].mxu0  ;;  %v4168_v1 = vpop.f32.mrb[28].mxu1 }
 0x13d   : > { %v1277_v2 = vpop.f32.mrb[29].mxu0  ;;  %v1533_v3 = vpop.f32.mrb[29].mxu1  ;;  %1834 = vst [vmem:[#allocation2 + $0xf0] sm:$0xff] %v4104_v0  ;;  %1898 = vst [vmem:[#allocation2 + $0x2f0] sm:$0xff] %v4168_v1 }
 0x13e   : > { %v4105_v4 = vpop.f32.mrb[30].mxu0  ;;  %v4169_v5 = vpop.f32.mrb[30].mxu1  ;;  %1832 = vst [vmem:[#allocation2 + $0xe0] sm:$0xff] %v1277_v2  ;;  %1896 = vst [vmem:[#allocation2 + $0x2e0] sm:$0xff] %v1533_v3 }
 0x13f   : > { %v1280_v6 = vpop.f32.mrb[31].mxu0  ;;  %v1536_v7 = vpop.f32.mrb[31].mxu1  ;;  %1835 = vst [vmem:[#allocation2 + $0xf8] sm:$0xff] %v4105_v4  ;;  %1899 = vst [vmem:[#allocation2 + $0x2f8] sm:$0xff] %v4169_v5 }
 0x140   : > { %1833 = vst [vmem:[#allocation2 + $0xe8] sm:$0xff] %v1280_v6  ;;  %1897 = vst [vmem:[#allocation2 + $0x2e8] sm:$0xff] %v1536_v7 }
 0x144   : > { %v4108_v8 = vpop.f32.mrb[32].mxu0  ;;  %v4172_v9 = vpop.f32.mrb[32].mxu1 }
 0x145   : > { %v1293_v10 = vpop.f32.mrb[33].mxu0  ;;  %v1549_v11 = vpop.f32.mrb[33].mxu1  ;;  %1838 = vst [vmem:[#allocation2 + $0x110] sm:$0xff] %v4108_v8  ;;  %1902 = vst [vmem:[#allocation2 + $0x310] sm:$0xff] %v4172_v9  ;;  %v4372_v8 = vmov (%p1932_p7), 0.0  }
 0x146   : > { %v4109_v12 = vpop.f32.mrb[34].mxu0  ;;  %v4173_v13 = vpop.f32.mrb[34].mxu1  ;;  %1836 = vst [vmem:[#allocation2 + $0x100] sm:$0xff] %v1293_v10  ;;  %1900 = vst [vmem:[#allocation2 + $0x300] sm:$0xff] %v1549_v11 }
 0x147   : > { %v1296_v14 = vpop.f32.mrb[35].mxu0  ;;  %v1552_v15 = vpop.f32.mrb[35].mxu1  ;;  %1839 = vst [vmem:[#allocation2 + $0x118] sm:$0xff] %v4109_v12  ;;  %1903 = vst [vmem:[#allocation2 + $0x318] sm:$0xff] %v4173_v13 }
 0x148   : > { %1837 = vst [vmem:[#allocation2 + $0x108] sm:$0xff] %v1296_v14  ;;  %1901 = vst [vmem:[#allocation2 + $0x308] sm:$0xff] %v1552_v15 }
 0x149   : > { %1937 = vst [vmem:[%s4440_s30] sm:$0x1] (%p1932_p7), %v4372_v8  ;;  %1938 = vst [vmem:[%s4445_s7] sm:$0x1] (%p1932_p7), %v4372_v8 }
 0x14c   : > { %v4112_v16 = vpop.f32.mrb[36].mxu0  ;;  %v4176_v17 = vpop.f32.mrb[36].mxu1 }
 0x14d   : > { %v1309_v18 = vpop.f32.mrb[37].mxu0  ;;  %v1565_v19 = vpop.f32.mrb[37].mxu1  ;;  %1842 = vst [vmem:[#allocation2 + $0x130] sm:$0xff] %v4112_v16  ;;  %1906 = vst [vmem:[#allocation2 + $0x330] sm:$0xff] %v4176_v17 }
 0x14e   : > { %v4113_v20 = vpop.f32.mrb[38].mxu0  ;;  %v4177_v21 = vpop.f32.mrb[38].mxu1  ;;  %1840 = vst [vmem:[#allocation2 + $0x120] sm:$0xff] %v1309_v18  ;;  %1904 = vst [vmem:[#allocation2 + $0x320] sm:$0xff] %v1565_v19 }
 0x14f   : > { %v1312_v22 = vpop.f32.mrb[39].mxu0  ;;  %v1568_v23 = vpop.f32.mrb[39].mxu1  ;;  %1843 = vst [vmem:[#allocation2 + $0x138] sm:$0xff] %v4113_v20  ;;  %1907 = vst [vmem:[#allocation2 + $0x338] sm:$0xff] %v4177_v21 }
 0x150   : > { %1841 = vst [vmem:[#allocation2 + $0x128] sm:$0xff] %v1312_v22  ;;  %1905 = vst [vmem:[#allocation2 + $0x328] sm:$0xff] %v1568_v23 }
 0x154   : > { %v4116_v24 = vpop.f32.mrb[40].mxu0  ;;  %v4180_v25 = vpop.f32.mrb[40].mxu1 }
 0x155   : > { %v1325_v26 = vpop.f32.mrb[41].mxu0  ;;  %v1581_v27 = vpop.f32.mrb[41].mxu1  ;;  %1846 = vst [vmem:[#allocation2 + $0x150] sm:$0xff] %v4116_v24  ;;  %1910 = vst [vmem:[#allocation2 + $0x350] sm:$0xff] %v4180_v25 }
 0x156   : > { %v4117_v28 = vpop.f32.mrb[42].mxu0  ;;  %v4181_v29 = vpop.f32.mrb[42].mxu1  ;;  %1844 = vst [vmem:[#allocation2 + $0x140] sm:$0xff] %v1325_v26  ;;  %1908 = vst [vmem:[#allocation2 + $0x340] sm:$0xff] %v1581_v27 }
 0x157   : > { %v1328_v30 = vpop.f32.mrb[43].mxu0  ;;  %v1584_v31 = vpop.f32.mrb[43].mxu1  ;;  %1847 = vst [vmem:[#allocation2 + $0x158] sm:$0xff] %v4117_v28  ;;  %1911 = vst [vmem:[#allocation2 + $0x358] sm:$0xff] %v4181_v29 }
 0x158   : > { %1845 = vst [vmem:[#allocation2 + $0x148] sm:$0xff] %v1328_v30  ;;  %1909 = vst [vmem:[#allocation2 + $0x348] sm:$0xff] %v1584_v31 }
 0x15c   : > { %v4120_v32 = vpop.f32.mrb[44].mxu0  ;;  %v4184_v33 = vpop.f32.mrb[44].mxu1 }
 0x15d   : > { %v1341_v34 = vpop.f32.mrb[45].mxu0  ;;  %v1597_v35 = vpop.f32.mrb[45].mxu1  ;;  %1850 = vst [vmem:[#allocation2 + $0x170] sm:$0xff] %v4120_v32  ;;  %1914 = vst [vmem:[#allocation2 + $0x370] sm:$0xff] %v4184_v33 }
 0x15e   : > { %v4121_v36 = vpop.f32.mrb[46].mxu0  ;;  %v4185_v37 = vpop.f32.mrb[46].mxu1  ;;  %1848 = vst [vmem:[#allocation2 + $0x160] sm:$0xff] %v1341_v34  ;;  %1912 = vst [vmem:[#allocation2 + $0x360] sm:$0xff] %v1597_v35 }
 0x15f   : > { %v1344_v38 = vpop.f32.mrb[47].mxu0  ;;  %v1600_v39 = vpop.f32.mrb[47].mxu1  ;;  %1851 = vst [vmem:[#allocation2 + $0x178] sm:$0xff] %v4121_v36  ;;  %1915 = vst [vmem:[#allocation2 + $0x378] sm:$0xff] %v4185_v37 }
 0x160   : > { %1849 = vst [vmem:[#allocation2 + $0x168] sm:$0xff] %v1344_v38  ;;  %1913 = vst [vmem:[#allocation2 + $0x368] sm:$0xff] %v1600_v39 }
 0x164   : > { %v4124_v40 = vpop.f32.mrb[48].mxu0  ;;  %v4188_v41 = vpop.f32.mrb[48].mxu1 }
 0x165   : > { %v1357_v42 = vpop.f32.mrb[49].mxu0  ;;  %v1613_v43 = vpop.f32.mrb[49].mxu1  ;;  %1854 = vst [vmem:[#allocation2 + $0x190] sm:$0xff] %v4124_v40  ;;  %1918 = vst [vmem:[#allocation2 + $0x390] sm:$0xff] %v4188_v41 }
 0x166   : > { %v4125_v44 = vpop.f32.mrb[50].mxu0  ;;  %v4189_v45 = vpop.f32.mrb[50].mxu1  ;;  %1852 = vst [vmem:[#allocation2 + $0x180] sm:$0xff] %v1357_v42  ;;  %1916 = vst [vmem:[#allocation2 + $0x380] sm:$0xff] %v1613_v43 }
 0x167   : > { %v1360_v46 = vpop.f32.mrb[51].mxu0  ;;  %v1616_v47 = vpop.f32.mrb[51].mxu1  ;;  %1855 = vst [vmem:[#allocation2 + $0x198] sm:$0xff] %v4125_v44  ;;  %1919 = vst [vmem:[#allocation2 + $0x398] sm:$0xff] %v4189_v45 }
 0x168   : > { %1853 = vst [vmem:[#allocation2 + $0x188] sm:$0xff] %v1360_v46  ;;  %1917 = vst [vmem:[#allocation2 + $0x388] sm:$0xff] %v1616_v47 }
 0x16c   : > { %v4128_v48 = vpop.f32.mrb[52].mxu0  ;;  %v4192_v49 = vpop.f32.mrb[52].mxu1 }
 0x16d   : > { %v1373_v50 = vpop.f32.mrb[53].mxu0  ;;  %v1629_v51 = vpop.f32.mrb[53].mxu1  ;;  %1858 = vst [vmem:[#allocation2 + $0x1b0] sm:$0xff] %v4128_v48  ;;  %1922 = vst [vmem:[#allocation2 + $0x3b0] sm:$0xff] %v4192_v49 }
 0x16e   : > { %v4129_v52 = vpop.f32.mrb[54].mxu0  ;;  %v4193_v53 = vpop.f32.mrb[54].mxu1  ;;  %1856 = vst [vmem:[#allocation2 + $0x1a0] sm:$0xff] %v1373_v50  ;;  %1920 = vst [vmem:[#allocation2 + $0x3a0] sm:$0xff] %v1629_v51 }
 0x16f   : > { %v1376_v54 = vpop.f32.mrb[55].mxu0  ;;  %v1632_v55 = vpop.f32.mrb[55].mxu1  ;;  %1859 = vst [vmem:[#allocation2 + $0x1b8] sm:$0xff] %v4129_v52  ;;  %1923 = vst [vmem:[#allocation2 + $0x3b8] sm:$0xff] %v4193_v53 }
 0x170   : > { %1857 = vst [vmem:[#allocation2 + $0x1a8] sm:$0xff] %v1376_v54  ;;  %1921 = vst [vmem:[#allocation2 + $0x3a8] sm:$0xff] %v1632_v55 }
 0x174   : > { %v4132_v56 = vpop.f32.mrb[56].mxu0  ;;  %v4196_v57 = vpop.f32.mrb[56].mxu1 }
 0x175   : > { %v1389_v58 = vpop.f32.mrb[57].mxu0  ;;  %v1645_v59 = vpop.f32.mrb[57].mxu1  ;;  %1862 = vst [vmem:[#allocation2 + $0x1d0] sm:$0xff] %v4132_v56  ;;  %1926 = vst [vmem:[#allocation2 + $0x3d0] sm:$0xff] %v4196_v57 }
 0x176   : > { %v4133_v60 = vpop.f32.mrb[58].mxu0  ;;  %v4197_v61 = vpop.f32.mrb[58].mxu1  ;;  %1860 = vst [vmem:[#allocation2 + $0x1c0] sm:$0xff] %v1389_v58  ;;  %1924 = vst [vmem:[#allocation2 + $0x3c0] sm:$0xff] %v1645_v59 }
 0x177   : > { %v1392_v62 = vpop.f32.mrb[59].mxu0  ;;  %v1648_v63 = vpop.f32.mrb[59].mxu1  ;;  %1863 = vst [vmem:[#allocation2 + $0x1d8] sm:$0xff] %v4133_v60  ;;  %1927 = vst [vmem:[#allocation2 + $0x3d8] sm:$0xff] %v4197_v61 }
 0x178   : > { %1861 = vst [vmem:[#allocation2 + $0x1c8] sm:$0xff] %v1392_v62  ;;  %1925 = vst [vmem:[#allocation2 + $0x3c8] sm:$0xff] %v1648_v63 }
 0x17a   : > { %1936 = sbr.rel (!%p1932_p7) target bundleno = 385 (0x181), region = 36 }
 0x17c   : > { %v4136_v0 = vpop.f32.mrb[60].mxu0  ;;  %v4200_v1 = vpop.f32.mrb[60].mxu1 }
 0x17d   : > { %v1405_v2 = vpop.f32.mrb[61].mxu0  ;;  %v1661_v3 = vpop.f32.mrb[61].mxu1  ;;  %1866 = vst [vmem:[#allocation2 + $0x1f0] sm:$0xff] %v4136_v0  ;;  %1930 = vst [vmem:[#allocation2 + $0x3f0] sm:$0xff] %v4200_v1 }
 0x17e   : > { %v4137_v4 = vpop.f32.mrb[62].mxu0  ;;  %v4201_v5 = vpop.f32.mrb[62].mxu1  ;;  %1864 = vst [vmem:[#allocation2 + $0x1e0] sm:$0xff] %v1405_v2  ;;  %1928 = vst [vmem:[#allocation2 + $0x3e0] sm:$0xff] %v1661_v3 }
 0x17f   : > { %v1408_v6 = vpop.f32.mrb[63].mxu0  ;;  %v1664_v7 = vpop.f32.mrb[63].mxu1  ;;  %1867 = vst [vmem:[#allocation2 + $0x1f8] sm:$0xff] %v4137_v4  ;;  %1931 = vst [vmem:[#allocation2 + $0x3f8] sm:$0xff] %v4201_v5 }
 0x180   : > { %1865 = vst [vmem:[#allocation2 + $0x1e8] sm:$0xff] %v1408_v6  ;;  %1929 = vst [vmem:[#allocation2 + $0x3e8] sm:$0xff] %v1664_v7 }
 0x181 PF: > { %v1942_v9 = vld [vmem:[#allocation2] sm:$0xff]  ;;  %v1943_v10 = vld [vmem:[#allocation2 + $0x8] sm:$0xff]  ;;  %v1944_v11 = vld [vmem:[#allocation2 + $0x10] sm:$0xff] }
 0x182   : > { %v3606_v12 = vpack.c.bf16 %v1943_v10, %v1942_v9  ;;  %v2711_v13 = vadd.f32 %v1943_v10, %v1942_v9  ;;  %v2847_v14 = vmul.f32 %v1942_v9, %v1942_v9  ;;  %v2848_v15 = vmul.f32 %v1943_v10, %v1943_v10  ;;  %v1945_v16 = vld [vmem:[#allocation2 + $0x18] sm:$0xff]  ;;  %v1946_v17 = vld [vmem:[#allocation2 + $0x20] sm:$0xff]  ;;  %v1947_v18 = vld [vmem:[#allocation2 + $0x28] sm:$0xff] }
 0x183   : > { %v3611_v19 = vpack.c.bf16 %v1945_v16, %v1944_v11  ;;  %v2849_v20 = vmul.f32 %v1944_v11, %v1944_v11  ;;  %v3616_v21 = vpack.c.bf16 %v1947_v18, %v1946_v17  ;;  %v1948_v22 = vld [vmem:[#allocation2 + $0x30] sm:$0xff]  ;;  %v2850_v25 = vmul.f32 %v1945_v16, %v1945_v16  ;;  %v1949_v26 = vld [vmem:[#allocation2 + $0x38] sm:$0xff]  ;;  %v4545_v27 = vld [vmem:[#allocation2 + $0x40] sm:$0xff] }
 0x184   : > { %3607 = vst [vmem:[%s4464_s27] sm:$0xff] %v3606_v12   ;;  %v2975_v23 = vadd.f32 %v2848_v15, %v2847_v14  ;;  %v2712_v24 = vadd.f32 %v2711_v13, %v1944_v11  ;;  %v4547_v28 = vld [vmem:[#allocation2 + $0x48] sm:$0xff]  ;;  %v3621_v29 = vpack.c.bf16 %v1949_v26, %v1948_v22  ;;  %v4553_v31 = vld [vmem:[#allocation2 + $0x50] sm:$0xff]  ;;  %v2851_v34 = vmul.f32 %v1946_v17, %v1946_v17  ;;  %v4555_v35 = vld [vmem:[#allocation2 + $0x58] sm:$0xff] }
 0x185   : > { %3923 = vst [vmem:[%s4464_s27 + $0x8] sm:$0xff] %v3611_v19   ;;  %3924 = vst [vmem:[%s4464_s27 + $0x10] sm:$0xff] %v3616_v21   ;;  %v3626_v30 = vpack.c.bf16 %v4547_v28, %v4545_v27  ;;  %v4557_v36 = vld [vmem:[#allocation2 + $0x60] sm:$0xff]  ;;  %v4559_v37 = vld [vmem:[#allocation2 + $0x68] sm:$0xff]  ;;  %v3631_v38 = vpack.c.bf16 %v4555_v35, %v4553_v31  ;;  %v2852_v43 = vmul.f32 %v1947_v18, %v1947_v18 }
 0x186   : > { %v2713_v32 = vadd.f32 %v2712_v24, %v1945_v16  ;;  %v2976_v33 = vadd.f32 %v2975_v23, %v2849_v20  ;;  %3925 = vst [vmem:[%s4464_s27 + $0x18] sm:$0xff] %v3621_v29   ;;  %v3636_v39 = vpack.c.bf16 %v4559_v37, %v4557_v36  ;;  %v4567_v40 = vld [vmem:[#allocation2 + $0x70] sm:$0xff]  ;;  %v4569_v44 = vld [vmem:[#allocation2 + $0x78] sm:$0xff]  ;;  %v4571_v45 = vld [vmem:[#allocation2 + $0x80] sm:$0xff]  ;;  %v2853_v52 = vmul.f32 %v1948_v22, %v1948_v22 }
 0x187   : > { %3926 = vst [vmem:[%s4464_s27 + $0x20] sm:$0xff] %v3626_v30   ;;  %v4573_v46 = vld [vmem:[#allocation2 + $0x88] sm:$0xff]  ;;  %3927 = vst [vmem:[%s4464_s27 + $0x28] sm:$0xff] %v3631_v38   ;;  %v3641_v47 = vpack.c.bf16 %v4569_v44, %v4567_v40  ;;  %v4581_v49 = vld [vmem:[#allocation2 + $0x90] sm:$0xff]  ;;  %v2854_v61 = vmul.f32 %v1949_v26, %v1949_v26  ;;  %v2855_v6 = vmul.f32 %v4545_v27, %v4545_v27 }
 0x188   : > { %v2977_v41 = vadd.f32 %v2976_v33, %v2850_v25  ;;  %v2714_v42 = vadd.f32 %v2713_v32, %v1946_v17  ;;  %3928 = vst [vmem:[%s4464_s27 + $0x30] sm:$0xff] %v3636_v39   ;;  %v3646_v48 = vpack.c.bf16 %v4573_v46, %v4571_v45  ;;  %v4583_v53 = vld [vmem:[#allocation2 + $0x98] sm:$0xff]  ;;  %v4585_v54 = vld [vmem:[#allocation2 + $0xa0] sm:$0xff]  ;;  %v4587_v55 = vld [vmem:[#allocation2 + $0xa8] sm:$0xff]  ;;  %v2856_v15 = vmul.f32 %v4547_v28, %v4547_v28 }
 0x189   : > { %3929 = vst [vmem:[%s4464_s27 + $0x38] sm:$0xff] %v3641_v47   ;;  %v3651_v56 = vpack.c.bf16 %v4583_v53, %v4581_v49  ;;  %v3656_v57 = vpack.c.bf16 %v4587_v55, %v4585_v54  ;;  %v4595_v58 = vld [vmem:[#allocation2 + $0xb0] sm:$0xff]  ;;  %v4597_v62 = vld [vmem:[#allocation2 + $0xb8] sm:$0xff]  ;;  %v4599_v63 = vld [vmem:[#allocation2 + $0xc0] sm:$0xff]  ;;  %v2857_v24 = vmul.f32 %v4553_v31, %v4553_v31 }
 0x18a   : > { %v2715_v50 = vadd.f32 %v2714_v42, %v1947_v18  ;;  %v2978_v51 = vadd.f32 %v2977_v41, %v2851_v34  ;;  %3930 = vst [vmem:[%s4464_s27 + $0x40] sm:$0xff] %v3646_v48   ;;  %v4601_v0 = vld [vmem:[#allocation2 + $0xc8] sm:$0xff]  ;;  %v3661_v1 = vpack.c.bf16 %v4597_v62, %v4595_v58  ;;  %v4609_v3 = vld [vmem:[#allocation2 + $0xd0] sm:$0xff]  ;;  %v4613_v7 = vld [vmem:[#allocation2 + $0xd8] sm:$0xff]  ;;  %v2858_v34 = vmul.f32 %v4555_v35, %v4555_v35 }
 0x18b   : > { %3931 = vst [vmem:[%s4464_s27 + $0x48] sm:$0xff] %v3651_v56   ;;  %3932 = vst [vmem:[%s4464_s27 + $0x50] sm:$0xff] %v3656_v57   ;;  %v3666_v2 = vpack.c.bf16 %v4601_v0, %v4599_v63  ;;  %v4615_v8 = vld [vmem:[#allocation2 + $0xe0] sm:$0xff]  ;;  %v4617_v9 = vld [vmem:[#allocation2 + $0xe8] sm:$0xff]  ;;  %v3671_v10 = vpack.c.bf16 %v4613_v7, %v4609_v3 }
 0x18c   : > { %v2979_v59 = vadd.f32 %v2978_v51, %v2852_v43  ;;  %v2716_v60 = vadd.f32 %v2715_v50, %v1948_v22  ;;  %3933 = vst [vmem:[%s4464_s27 + $0x58] sm:$0xff] %v3661_v1   ;;  %v3676_v11 = vpack.c.bf16 %v4617_v9, %v4615_v8  ;;  %v4625_v12 = vld [vmem:[#allocation2 + $0xf0] sm:$0xff]  ;;  %v4630_v16 = vld [vmem:[#allocation2 + $0xf8] sm:$0xff]  ;;  %v4632_v17 = vld [vmem:[#allocation2 + $0x100] sm:$0xff]  ;;  %v2859_v50 = vmul.f32 %v4557_v36, %v4557_v36 }
 0x18d   : > { %3934 = vst [vmem:[%s4464_s27 + $0x60] sm:$0xff] %v3666_v2   ;;  %v4634_v18 = vld [vmem:[#allocation2 + $0x108] sm:$0xff]  ;;  %3935 = vst [vmem:[%s4464_s27 + $0x68] sm:$0xff] %v3671_v10   ;;  %v3681_v19 = vpack.c.bf16 %v4630_v16, %v4625_v12  ;;  %v4642_v21 = vld [vmem:[#allocation2 + $0x110] sm:$0xff]  ;;  %v2860_v1 = vmul.f32 %v4559_v37, %v4559_v37 }
 0x18e   : > { %v2717_v4 = vadd.f32 %v2716_v60, %v1949_v26  ;;  %v2980_v5 = vadd.f32 %v2979_v59, %v2853_v52  ;;  %3936 = vst [vmem:[%s4464_s27 + $0x70] sm:$0xff] %v3676_v11   ;;  %v3686_v20 = vpack.c.bf16 %v4634_v18, %v4632_v17  ;;  %v4647_v25 = vld [vmem:[#allocation2 + $0x118] sm:$0xff]  ;;  %v4649_v26 = vld [vmem:[#allocation2 + $0x120] sm:$0xff]  ;;  %v4659_v30 = vld [vmem:[#allocation2 + $0x130] sm:$0xff] }
 0x18f   : > { %3937 = vst [vmem:[%s4464_s27 + $0x78] sm:$0xff] %v3681_v19   ;;  %v3691_v29 = vpack.c.bf16 %v4647_v25, %v4642_v21  ;;  %v4664_v38 = vld [vmem:[#allocation2 + $0x138] sm:$0xff]  ;;  %v4666_v39 = vld [vmem:[#allocation2 + $0x140] sm:$0xff]  ;;  %v4668_v41 = vld [vmem:[#allocation2 + $0x148] sm:$0xff] }
 0x190   : > { %v2981_v13 = vadd.f32 %v2980_v5, %v2854_v61  ;;  %v2718_v14 = vadd.f32 %v2717_v4, %v4545_v27  ;;  %v4651_v27 = vld [vmem:[#allocation2 + $0x128] sm:$0xff]  ;;  %3938 = vst [vmem:[%s4464_s27 + $0x80] sm:$0xff] %v3686_v20   ;;  %v3701_v42 = vpack.c.bf16 %v4664_v38, %v4659_v30  ;;  %v3706_v43 = vpack.c.bf16 %v4668_v41, %v4666_v39  ;;  %v4681_v51 = vld [vmem:[#allocation2 + $0x158] sm:$0xff]  ;;  %v4683_v52 = vld [vmem:[#allocation2 + $0x160] sm:$0xff] }
 0x191   : > { %3939 = vst [vmem:[%s4464_s27 + $0x88] sm:$0xff] %v3691_v29   ;;  %v4685_v56 = vld [vmem:[#allocation2 + $0x168] sm:$0xff]  ;;  %v4693_v59 = vld [vmem:[#allocation2 + $0x170] sm:$0xff]  ;;  %v4698_v2 = vld [vmem:[#allocation2 + $0x178] sm:$0xff] }
 0x192   : > { %v2719_v22 = vadd.f32 %v2718_v14, %v4547_v28  ;;  %v2982_v23 = vadd.f32 %v2981_v13, %v2855_v6  ;;  %v3696_v28 = vpack.c.bf16 %v4651_v27, %v4649_v26  ;;  %3941 = vst [vmem:[%s4464_s27 + $0x98] sm:$0xff] %v3701_v42   ;;  %3942 = vst [vmem:[%s4464_s27 + $0xa0] sm:$0xff] %v3706_v43   ;;  %v4700_v4 = vld [vmem:[#allocation2 + $0x180] sm:$0xff]  ;;  %v4702_v5 = vld [vmem:[#allocation2 + $0x188] sm:$0xff] }
 0x193   : > { %v3721_v6 = vpack.c.bf16 %v4698_v2, %v4693_v59  ;;  %v3726_v10 = vpack.c.bf16 %v4702_v5, %v4700_v4  ;;  %v2861_v14 = vmul.f32 %v4567_v40, %v4567_v40  ;;  %v4717_v19 = vld [vmem:[#allocation2 + $0x1a0] sm:$0xff]  ;;  %v4719_v20 = vld [vmem:[#allocation2 + $0x1a8] sm:$0xff] }
 0x194   : > { %v2983_v32 = vadd.f32 %v2982_v23, %v2856_v15  ;;  %v2720_v33 = vadd.f32 %v2719_v22, %v4553_v31  ;;  %3940 = vst [vmem:[%s4464_s27 + $0x90] sm:$0xff] %v3696_v28   ;;  %v4676_v31 = vld [vmem:[#allocation2 + $0x150] sm:$0xff]  ;;  %v4715_v15 = vld [vmem:[#allocation2 + $0x198] sm:$0xff]  ;;  %v2862_v28 = vmul.f32 %v4569_v44, %v4569_v44 }
 0x195   : > { %v3711_v57 = vpack.c.bf16 %v4681_v51, %v4676_v31  ;;  %3945 = vst [vmem:[%s4464_s27 + $0xb8] sm:$0xff] %v3721_v6   ;;  %3946 = vst [vmem:[%s4464_s27 + $0xc0] sm:$0xff] %v3726_v10   ;;  %v4727_v23 = vld [vmem:[#allocation2 + $0x1b0] sm:$0xff] }
 0x196   : > { %v2721_v47 = vadd.f32 %v2720_v33, %v4555_v35  ;;  %v2984_v48 = vadd.f32 %v2983_v32, %v2857_v24  ;;  %v3716_v35 = vpack.c.bf16 %v4685_v56, %v4683_v52  ;;  %v4732_v32 = vld [vmem:[#allocation2 + $0x1b8] sm:$0xff]  ;;  %v4734_v33 = vld [vmem:[#allocation2 + $0x1c0] sm:$0xff] }
 0x197   : > { %3943 = vst [vmem:[%s4464_s27 + $0xa8] sm:$0xff] %v3711_v57   ;;  %v3741_v42 = vpack.c.bf16 %v4732_v32, %v4727_v23  ;;  %v4749_v57 = vld [vmem:[#allocation2 + $0x1d8] sm:$0xff] }
 0x198   : > { %v2985_v60 = vadd.f32 %v2984_v48, %v2858_v34  ;;  %v2722_v61 = vadd.f32 %v2721_v47, %v4557_v36  ;;  %3944 = vst [vmem:[%s4464_s27 + $0xb0] sm:$0xff] %v3716_v35   ;;  %v4710_v36 = vld [vmem:[#allocation2 + $0x190] sm:$0xff]  ;;  %v4736_v34 = vld [vmem:[#allocation2 + $0x1c8] sm:$0xff]  ;;  %v4751_v35 = vld [vmem:[#allocation2 + $0x1e0] sm:$0xff] }
 0x199   : > { %v3731_v22 = vpack.c.bf16 %v4715_v15, %v4710_v36  ;;  %v3746_v43 = vpack.c.bf16 %v4736_v34, %v4734_v33  ;;  %3949 = vst [vmem:[%s4464_s27 + $0xd8] sm:$0xff] %v3741_v42   ;;  %v2865_v42 = vmul.f32 %v4581_v49, %v4581_v49 }
 0x19a   : > { %v2723_v11 = vadd.f32 %v2722_v61, %v4559_v37  ;;  %v2986_v13 = vadd.f32 %v2985_v60, %v2859_v50  ;;  %v3736_v37 = vpack.c.bf16 %v4719_v20, %v4717_v19  ;;  %v2863_v50 = vmul.f32 %v4571_v45, %v4571_v45  ;;  %v4753_v60 = vld [vmem:[#allocation2 + $0x1e8] sm:$0xff] }
 0x19b   : > { %3947 = vst [vmem:[%s4464_s27 + $0xc8] sm:$0xff] %v3731_v22   ;;  %3950 = vst [vmem:[%s4464_s27 + $0xe0] sm:$0xff] %v3746_v43   ;;  %v4770_v22 = vld [vmem:[#allocation2 + $0x208] sm:$0xff]  ;;  %v4783_v43 = vld [vmem:[#allocation2 + $0x218] sm:$0xff] }
 0x19c   : > { %v2987_v24 = vadd.f32 %v2986_v13, %v2860_v1  ;;  %v2724_v29 = vadd.f32 %v2723_v11, %v4567_v40  ;;  %3948 = vst [vmem:[%s4464_s27 + $0xd0] sm:$0xff] %v3736_v37   ;;  %v4744_v40 = vld [vmem:[#allocation2 + $0x1d0] sm:$0xff]  ;;  %v2864_v11 = vmul.f32 %v4573_v46, %v4573_v46  ;;  %v4766_v13 = vld [vmem:[#allocation2 + $0x1f8] sm:$0xff]  ;;  %5386 = vst [vmem:[#allocation3_spill] sm:$0xff] %v4770_v22 }
 0x19d   : > { %v3751_v61 = vpack.c.bf16 %v4749_v57, %v4744_v40  ;;  %v4761_v1 = vld [vmem:[#allocation2 + $0x1f0] sm:$0xff]  ;;  %5387 = vst [vmem:[#allocation4_spill] sm:$0xff] %v4783_v43 }
 0x19e   : > { %v2725_v47 = vadd.f32 %v2724_v29, %v4569_v44  ;;  %v2988_v48 = vadd.f32 %v2987_v24, %v2861_v14  ;;  %v3756_v44 = vpack.c.bf16 %v4753_v60, %v4751_v35  ;;  %v4768_v14 = vld [vmem:[#allocation2 + $0x200] sm:$0xff]  ;;  %v3761_v37 = vpack.c.bf16 %v4766_v13, %v4761_v1 }
 0x19f   : > { %3951 = vst [vmem:[%s4464_s27 + $0xe8] sm:$0xff] %v3751_v61   ;;  %v3766_v24 = vpack.c.bf16 %v4770_v22, %v4768_v14  ;;  %v4800_v22 = vld [vmem:[#allocation2 + $0x238] sm:$0xff] }
 0x1a0   : > { %v2989_v6 = vadd.f32 %v2988_v48, %v2862_v28  ;;  %v2726_v10 = vadd.f32 %v2725_v47, %v4571_v45  ;;  %3952 = vst [vmem:[%s4464_s27 + $0xf0] sm:$0xff] %v3756_v44   ;;  %v4778_v45 = vld [vmem:[#allocation2 + $0x210] sm:$0xff]  ;;  %v4785_v47 = vld [vmem:[#allocation2 + $0x220] sm:$0xff]  ;;  %v4787_v48 = vld [vmem:[#allocation2 + $0x228] sm:$0xff] }
 0x1a1   : > { %5388 = vst [vmem:[#allocation5_spill] sm:$0xff] %v4785_v47  ;;  %5389 = vst [vmem:[#allocation6_spill] sm:$0xff] %v4787_v48  ;;  %v3771_v61 = vpack.c.bf16 %v4783_v43, %v4778_v45  ;;  %v4817_v43 = vld [vmem:[#allocation2 + $0x258] sm:$0xff] }
 0x1a2   : > { %v2727_v29 = vadd.f32 %v2726_v10, %v4573_v46  ;;  %v2990_v28 = vadd.f32 %v2989_v6, %v2863_v50  ;;  %3953 = vst [vmem:[%s4464_s27 + $0xf8] sm:$0xff] %v3761_v37   ;;  %3954 = vst [vmem:[%s4464_s27 + $0x100] sm:$0xff] %v3766_v24   ;;  %v3776_v46 = vpack.c.bf16 %v4787_v48, %v4785_v47  ;;  %v4795_v50 = vld [vmem:[#allocation2 + $0x230] sm:$0xff]  ;;  %v4802_v37 = vld [vmem:[#allocation2 + $0x240] sm:$0xff] }
 0x1a3   : > { %v2866_v10 = vmul.f32 %v4583_v53, %v4583_v53  ;;  %5390 = vst [vmem:[#allocation7_spill] sm:$0xff] %v4800_v22  ;;  %5391 = vst [vmem:[#allocation8_spill] sm:$0xff] %v4802_v37  ;;  %v4804_v24 = vld [vmem:[#allocation2 + $0x248] sm:$0xff]  ;;  %v3781_v48 = vpack.c.bf16 %v4800_v22, %v4795_v50  ;;  %v2867_v47 = vmul.f32 %v4585_v54, %v4585_v54  ;;  %v4834_v22 = vld [vmem:[#allocation2 + $0x278] sm:$0xff] }
 0x1a4   : > { %v2991_v44 = vadd.f32 %v2990_v28, %v2864_v11  ;;  %v2728_v6 = vadd.f32 %v2727_v29, %v4581_v49  ;;  %5392 = vst [vmem:[#allocation9_spill] sm:$0xff] %v4804_v24  ;;  %3955 = vst [vmem:[%s4464_s27 + $0x108] sm:$0xff] %v3771_v61   ;;  %v3786_v11 = vpack.c.bf16 %v4804_v24, %v4802_v37  ;;  %v4812_v49 = vld [vmem:[#allocation2 + $0x250] sm:$0xff]  ;;  %v4819_v61 = vld [vmem:[#allocation2 + $0x260] sm:$0xff] }
 0x1a5   : > { %3956 = vst [vmem:[%s4464_s27 + $0x110] sm:$0xff] %v3776_v46   ;;  %5393 = vst [vmem:[#allocation10_spill] sm:$0xff] %v4817_v43  ;;  %v4821_v46 = vld [vmem:[#allocation2 + $0x268] sm:$0xff]  ;;  %v3791_v24 = vpack.c.bf16 %v4817_v43, %v4812_v49  ;;  %v2868_v37 = vmul.f32 %v4587_v55, %v4587_v55  ;;  %v4851_v43 = vld [vmem:[#allocation2 + $0x298] sm:$0xff] }
 0x1a6   : > { %v2729_v29 = vadd.f32 %v2728_v6, %v4583_v53  ;;  %v2992_v28 = vadd.f32 %v2991_v44, %v2865_v42  ;;  %5394 = vst [vmem:[#allocation11_spill] sm:$0xff] %v4819_v61  ;;  %5395 = vst [vmem:[#allocation12_spill] sm:$0xff] %v4821_v46  ;;  %v3796_v53 = vpack.c.bf16 %v4821_v46, %v4819_v61  ;;  %v4829_v42 = vld [vmem:[#allocation2 + $0x270] sm:$0xff] }
 0x1a7   : > { %3957 = vst [vmem:[%s4464_s27 + $0x118] sm:$0xff] %v3781_v48   ;;  %3958 = vst [vmem:[%s4464_s27 + $0x120] sm:$0xff] %v3786_v11   ;;  %v4836_v48 = vld [vmem:[#allocation2 + $0x280] sm:$0xff]  ;;  %v4838_v11 = vld [vmem:[#allocation2 + $0x288] sm:$0xff]  ;;  %v3801_v46 = vpack.c.bf16 %v4834_v22, %v4829_v42  ;;  %v2869_v61 = vmul.f32 %v4595_v58, %v4595_v58 }
 0x1a8   : > { %v2993_v44 = vadd.f32 %v2992_v28, %v2866_v10  ;;  %v2730_v6 = vadd.f32 %v2729_v29, %v4585_v54  ;;  %5396 = vst [vmem:[#allocation13_spill] sm:$0xff] %v4834_v22  ;;  %5397 = vst [vmem:[#allocation14_spill] sm:$0xff] %v4836_v48  ;;  %v3806_v10 = vpack.c.bf16 %v4838_v11, %v4836_v48  ;;  %v4846_v54 = vld [vmem:[#allocation2 + $0x290] sm:$0xff]  ;;  %v4868_v22 = vld [vmem:[#allocation2 + $0x2b8] sm:$0xff] }
 0x1a9   : > { %5398 = vst [vmem:[#allocation15_spill] sm:$0xff] %v4838_v11  ;;  %3959 = vst [vmem:[%s4464_s27 + $0x128] sm:$0xff] %v3791_v24   ;;  %v4853_v24 = vld [vmem:[#allocation2 + $0x2a0] sm:$0xff]  ;;  %v3811_v11 = vpack.c.bf16 %v4851_v43, %v4846_v54  ;;  %v4866_v48 = vld [vmem:[#allocation2 + $0x2b0] sm:$0xff] }
 0x1aa   : > { %3960 = vst [vmem:[%s4464_s27 + $0x130] sm:$0xff] %v3796_v53   ;;  %v2731_v29 = vadd.f32 %v2730_v6, %v4587_v55  ;;  %v2994_v28 = vadd.f32 %v2993_v44, %v2867_v47  ;;  %5399 = vst [vmem:[#allocation16_spill] sm:$0xff] %v4851_v43  ;;  %v4855_v53 = vld [vmem:[#allocation2 + $0x2a8] sm:$0xff]  ;;  %v2870_v44 = vmul.f32 %v4597_v62, %v4597_v62 }
 0x1ab   : > { %5400 = vst [vmem:[#allocation17_spill] sm:$0xff] %v4855_v53  ;;  %3961 = vst [vmem:[%s4464_s27 + $0x138] sm:$0xff] %v3801_v46   ;;  %v3816_v55 = vpack.c.bf16 %v4855_v53, %v4853_v24  ;;  %v3821_v46 = vpack.c.bf16 %v4868_v22, %v4866_v48  ;;  %v4881_v53 = vld [vmem:[#allocation2 + $0x2c0] sm:$0xff] }
 0x1ac   : > { %3962 = vst [vmem:[%s4464_s27 + $0x140] sm:$0xff] %v3806_v10   ;;  %v2995_v6 = vadd.f32 %v2994_v28, %v2868_v37  ;;  %v2732_v47 = vadd.f32 %v2731_v29, %v4595_v58  ;;  %3963 = vst [vmem:[%s4464_s27 + $0x148] sm:$0xff] %v3811_v11   ;;  %v2871_v37 = vmul.f32 %v4599_v63, %v4599_v63  ;;  %v4883_v11 = vld [vmem:[#allocation2 + $0x2c8] sm:$0xff] }
 0x1ad   : > { %3964 = vst [vmem:[%s4464_s27 + $0x150] sm:$0xff] %v3816_v55   ;;  %3965 = vst [vmem:[%s4464_s27 + $0x158] sm:$0xff] %v3821_v46   ;;  %v2872_v28 = vmul.f32 %v4601_v0, %v4601_v0  ;;  %v3826_v55 = vpack.c.bf16 %v4883_v11, %v4881_v53  ;;  %v4896_v46 = vld [vmem:[#allocation2 + $0x2d8] sm:$0xff] }
 0x1ae   : > { %v2733_v10 = vadd.f32 %v2732_v47, %v4597_v62  ;;  %v2996_v43 = vadd.f32 %v2995_v6, %v2869_v61  ;;  %v2873_v6 = vmul.f32 %v4609_v3, %v4609_v3  ;;  %v2874_v47 = vmul.f32 %v4613_v7, %v4613_v7 }
 0x1af   : > { %3966 = vst [vmem:[%s4464_s27 + $0x160] sm:$0xff] %v3826_v55   ;;  %v4907_v55 = vld [vmem:[#allocation2 + $0x2e0] sm:$0xff] }
 0x1b0   : > { %v2997_v58 = vadd.f32 %v2996_v43, %v2870_v44  ;;  %v2734_v29 = vadd.f32 %v2733_v10, %v4599_v63  ;;  %v4894_v44 = vld [vmem:[#allocation2 + $0x2d0] sm:$0xff] }
 0x1b1   : > { %v3831_v10 = vpack.c.bf16 %v4896_v46, %v4894_v44 }
 0x1b2   : > { %v2735_v62 = vadd.f32 %v2734_v29, %v4601_v0  ;;  %v2998_v61 = vadd.f32 %v2997_v58, %v2871_v37  ;;  %v2875_v58 = vmul.f32 %v4615_v8, %v4615_v8 }
 0x1b3   : > { %3967 = vst [vmem:[%s4464_s27 + $0x168] sm:$0xff] %v3831_v10   ;;  %v4920_v10 = vld [vmem:[#allocation2 + $0x2f0] sm:$0xff] }
 0x1b4   : > { %v2999_v43 = vadd.f32 %v2998_v61, %v2872_v28  ;;  %v2736_v63 = vadd.f32 %v2735_v62, %v4609_v3  ;;  %v2876_v28 = vmul.f32 %v4617_v9, %v4617_v9  ;;  %v4909_v62 = vld [vmem:[#allocation2 + $0x2e8] sm:$0xff] }
 0x1b5   : > { %v3836_v61 = vpack.c.bf16 %v4909_v62, %v4907_v55 }
 0x1b6   : > { %v2737_v0 = vadd.f32 %v2736_v63, %v4613_v7  ;;  %v3000_v37 = vadd.f32 %v2999_v43, %v2873_v6  ;;  %v2877_v43 = vmul.f32 %v4625_v12, %v4625_v12 }
 0x1b7   : > { %3968 = vst [vmem:[%s4464_s27 + $0x170] sm:$0xff] %v3836_v61   ;;  %v4933_v61 = vld [vmem:[#allocation2 + $0x300] sm:$0xff] }
 0x1b8   : > { %v3001_v29 = vadd.f32 %v3000_v37, %v2874_v47  ;;  %v2738_v3 = vadd.f32 %v2737_v0, %v4615_v8  ;;  %v2878_v47 = vmul.f32 %v4630_v16, %v4630_v16  ;;  %v4922_v0 = vld [vmem:[#allocation2 + $0x2f8] sm:$0xff] }
 0x1b9   : > { %v3841_v37 = vpack.c.bf16 %v4922_v0, %v4920_v10 }
 0x1ba   : > { %v2739_v7 = vadd.f32 %v2738_v3, %v4617_v9  ;;  %v3002_v6 = vadd.f32 %v3001_v29, %v2875_v58  ;;  %v2879_v29 = vmul.f32 %v4632_v17, %v4632_v17 }
 0x1bb   : > { %3969 = vst [vmem:[%s4464_s27 + $0x178] sm:$0xff] %v3841_v37   ;;  %v4946_v37 = vld [vmem:[#allocation2 + $0x310] sm:$0xff] }
 0x1bc   : > { %v3003_v63 = vadd.f32 %v3002_v6, %v2876_v28  ;;  %v2740_v8 = vadd.f32 %v2739_v7, %v4625_v12  ;;  %v2880_v28 = vmul.f32 %v4634_v18, %v4634_v18  ;;  %v4935_v7 = vld [vmem:[#allocation2 + $0x308] sm:$0xff] }
 0x1bd   : > { %v3846_v6 = vpack.c.bf16 %v4935_v7, %v4933_v61 }
 0x1be   : > { %v2741_v9 = vadd.f32 %v2740_v8, %v4630_v16  ;;  %v3004_v58 = vadd.f32 %v3003_v63, %v2877_v43  ;;  %v2881_v63 = vmul.f32 %v4642_v21, %v4642_v21 }
 0x1bf   : > { %3970 = vst [vmem:[%s4464_s27 + $0x180] sm:$0xff] %v3846_v6   ;;  %v4959_v6 = vld [vmem:[#allocation2 + $0x320] sm:$0xff] }
 0x1c0   : > { %v3005_v3 = vadd.f32 %v3004_v58, %v2878_v47  ;;  %v2742_v12 = vadd.f32 %v2741_v9, %v4632_v17  ;;  %v2882_v47 = vmul.f32 %v4647_v25, %v4647_v25  ;;  %v4948_v9 = vld [vmem:[#allocation2 + $0x318] sm:$0xff] }
 0x1c1   : > { %v3851_v58 = vpack.c.bf16 %v4948_v9, %v4946_v37 }
 0x1c2   : > { %v2743_v16 = vadd.f32 %v2742_v12, %v4634_v18  ;;  %v3006_v43 = vadd.f32 %v3005_v3, %v2879_v29  ;;  %v2883_v3 = vmul.f32 %v4649_v26, %v4649_v26 }
 0x1c3   : > { %3971 = vst [vmem:[%s4464_s27 + $0x188] sm:$0xff] %v3851_v58   ;;  %v4972_v58 = vld [vmem:[#allocation2 + $0x330] sm:$0xff] }
 0x1c4   : > { %v3007_v8 = vadd.f32 %v3006_v43, %v2880_v28  ;;  %v2744_v17 = vadd.f32 %v2743_v16, %v4642_v21  ;;  %v2884_v28 = vmul.f32 %v4651_v27, %v4651_v27  ;;  %v4961_v16 = vld [vmem:[#allocation2 + $0x328] sm:$0xff] }
 0x1c5   : > { %v3856_v43 = vpack.c.bf16 %v4961_v16, %v4959_v6 }
 0x1c6   : > { %v2745_v18 = vadd.f32 %v2744_v17, %v4647_v25  ;;  %v3008_v29 = vadd.f32 %v3007_v8, %v2881_v63  ;;  %v2885_v8 = vmul.f32 %v4659_v30, %v4659_v30 }
 0x1c7   : > { %3972 = vst [vmem:[%s4464_s27 + $0x190] sm:$0xff] %v3856_v43   ;;  %v4985_v43 = vld [vmem:[#allocation2 + $0x340] sm:$0xff] }
 0x1c8   : > { %v3009_v12 = vadd.f32 %v3008_v29, %v2882_v47  ;;  %v2746_v21 = vadd.f32 %v2745_v18, %v4649_v26  ;;  %v2886_v47 = vmul.f32 %v4664_v38, %v4664_v38  ;;  %v4974_v18 = vld [vmem:[#allocation2 + $0x338] sm:$0xff] }
 0x1c9   : > { %v3861_v29 = vpack.c.bf16 %v4974_v18, %v4972_v58 }
 0x1ca   : > { %v2747_v25 = vadd.f32 %v2746_v21, %v4651_v27  ;;  %v3010_v63 = vadd.f32 %v3009_v12, %v2883_v3  ;;  %v2887_v12 = vmul.f32 %v4666_v39, %v4666_v39 }
 0x1cb   : > { %3973 = vst [vmem:[%s4464_s27 + $0x198] sm:$0xff] %v3861_v29   ;;  %v4998_v29 = vld [vmem:[#allocation2 + $0x350] sm:$0xff] }
 0x1cc   : > { %v3011_v17 = vadd.f32 %v3010_v63, %v2884_v28  ;;  %v2748_v26 = vadd.f32 %v2747_v25, %v4659_v30  ;;  %v2888_v28 = vmul.f32 %v4668_v41, %v4668_v41  ;;  %v4987_v25 = vld [vmem:[#allocation2 + $0x348] sm:$0xff] }
 0x1cd   : > { %v3866_v63 = vpack.c.bf16 %v4987_v25, %v4985_v43 }
 0x1ce   : > { %v2749_v27 = vadd.f32 %v2748_v26, %v4664_v38  ;;  %v3012_v3 = vadd.f32 %v3011_v17, %v2885_v8  ;;  %v2889_v17 = vmul.f32 %v4676_v31, %v4676_v31 }
 0x1cf   : > { %3974 = vst [vmem:[%s4464_s27 + $0x1a0] sm:$0xff] %v3866_v63   ;;  %v5011_v63 = vld [vmem:[#allocation2 + $0x360] sm:$0xff] }
 0x1d0   : > { %v3013_v21 = vadd.f32 %v3012_v3, %v2886_v47  ;;  %v2750_v30 = vadd.f32 %v2749_v27, %v4666_v39  ;;  %v2890_v47 = vmul.f32 %v4681_v51, %v4681_v51  ;;  %v5000_v27 = vld [vmem:[#allocation2 + $0x358] sm:$0xff] }
 0x1d1   : > { %v3871_v3 = vpack.c.bf16 %v5000_v27, %v4998_v29 }
 0x1d2   : > { %v2751_v38 = vadd.f32 %v2750_v30, %v4668_v41  ;;  %v3014_v8 = vadd.f32 %v3013_v21, %v2887_v12  ;;  %v2891_v21 = vmul.f32 %v4683_v52, %v4683_v52 }
 0x1d3   : > { %3975 = vst [vmem:[%s4464_s27 + $0x1a8] sm:$0xff] %v3871_v3   ;;  %v5024_v3 = vld [vmem:[#allocation2 + $0x370] sm:$0xff] }
 0x1d4   : > { %v3015_v26 = vadd.f32 %v3014_v8, %v2888_v28  ;;  %v2752_v39 = vadd.f32 %v2751_v38, %v4676_v31  ;;  %v2892_v28 = vmul.f32 %v4685_v56, %v4685_v56  ;;  %v5013_v38 = vld [vmem:[#allocation2 + $0x368] sm:$0xff] }
 0x1d5   : > { %v3876_v8 = vpack.c.bf16 %v5013_v38, %v5011_v63 }
 0x1d6   : > { %v2753_v41 = vadd.f32 %v2752_v39, %v4681_v51  ;;  %v3016_v12 = vadd.f32 %v3015_v26, %v2889_v17  ;;  %v2893_v26 = vmul.f32 %v4693_v59, %v4693_v59 }
 0x1d7   : > { %3976 = vst [vmem:[%s4464_s27 + $0x1b0] sm:$0xff] %v3876_v8   ;;  %v5037_v8 = vld [vmem:[#allocation2 + $0x380] sm:$0xff] }
 0x1d8   : > { %v3017_v30 = vadd.f32 %v3016_v12, %v2890_v47  ;;  %v2754_v31 = vadd.f32 %v2753_v41, %v4683_v52  ;;  %v2894_v47 = vmul.f32 %v4698_v2, %v4698_v2  ;;  %v5026_v41 = vld [vmem:[#allocation2 + $0x378] sm:$0xff] }
 0x1d9   : > { %v3881_v12 = vpack.c.bf16 %v5026_v41, %v5024_v3 }
 0x1da   : > { %v2755_v51 = vadd.f32 %v2754_v31, %v4685_v56  ;;  %v3018_v17 = vadd.f32 %v3017_v30, %v2891_v21  ;;  %v2895_v30 = vmul.f32 %v4700_v4, %v4700_v4 }
 0x1db   : > { %3977 = vst [vmem:[%s4464_s27 + $0x1b8] sm:$0xff] %v3881_v12   ;;  %v5050_v12 = vld [vmem:[#allocation2 + $0x390] sm:$0xff] }
 0x1dc   : > { %v3019_v39 = vadd.f32 %v3018_v17, %v2892_v28  ;;  %v2756_v52 = vadd.f32 %v2755_v51, %v4693_v59  ;;  %v2896_v28 = vmul.f32 %v4702_v5, %v4702_v5  ;;  %v5039_v51 = vld [vmem:[#allocation2 + $0x388] sm:$0xff] }
 0x1dd   : > { %v3886_v17 = vpack.c.bf16 %v5039_v51, %v5037_v8 }
 0x1de   : > { %v2757_v56 = vadd.f32 %v2756_v52, %v4698_v2  ;;  %v3020_v21 = vadd.f32 %v3019_v39, %v2893_v26  ;;  %v2897_v39 = vmul.f32 %v4710_v36, %v4710_v36 }
 0x1df   : > { %3978 = vst [vmem:[%s4464_s27 + $0x1c0] sm:$0xff] %v3886_v17   ;;  %v5063_v17 = vld [vmem:[#allocation2 + $0x3a0] sm:$0xff] }
 0x1e0   : > { %v3021_v31 = vadd.f32 %v3020_v21, %v2894_v47  ;;  %v2758_v59 = vadd.f32 %v2757_v56, %v4700_v4  ;;  %v2898_v47 = vmul.f32 %v4715_v15, %v4715_v15  ;;  %v5052_v56 = vld [vmem:[#allocation2 + $0x398] sm:$0xff] }
 0x1e1   : > { %v3891_v21 = vpack.c.bf16 %v5052_v56, %v5050_v12 }
 0x1e2   : > { %v2759_v2 = vadd.f32 %v2758_v59, %v4702_v5  ;;  %v3022_v26 = vadd.f32 %v3021_v31, %v2895_v30  ;;  %v2899_v31 = vmul.f32 %v4717_v19, %v4717_v19 }
 0x1e3   : > { %3979 = vst [vmem:[%s4464_s27 + $0x1c8] sm:$0xff] %v3891_v21   ;;  %v5076_v21 = vld [vmem:[#allocation2 + $0x3b0] sm:$0xff] }
 0x1e4   : > { %v3023_v52 = vadd.f32 %v3022_v26, %v2896_v28  ;;  %v2760_v4 = vadd.f32 %v2759_v2, %v4710_v36  ;;  %v2900_v28 = vmul.f32 %v4719_v20, %v4719_v20  ;;  %v5065_v2 = vld [vmem:[#allocation2 + $0x3a8] sm:$0xff] }
 0x1e5   : > { %v3896_v26 = vpack.c.bf16 %v5065_v2, %v5063_v17 }
 0x1e6   : > { %v2761_v5 = vadd.f32 %v2760_v4, %v4715_v15  ;;  %v3024_v30 = vadd.f32 %v3023_v52, %v2897_v39  ;;  %v2901_v52 = vmul.f32 %v4727_v23, %v4727_v23 }
 0x1e7   : > { %3980 = vst [vmem:[%s4464_s27 + $0x1d0] sm:$0xff] %v3896_v26   ;;  %v5089_v26 = vld [vmem:[#allocation2 + $0x3c0] sm:$0xff] }
 0x1e8   : > { %v3025_v59 = vadd.f32 %v3024_v30, %v2898_v47  ;;  %v2762_v36 = vadd.f32 %v2761_v5, %v4717_v19  ;;  %v2902_v47 = vmul.f32 %v4732_v32, %v4732_v32  ;;  %v5078_v5 = vld [vmem:[#allocation2 + $0x3b8] sm:$0xff] }
 0x1e9   : > { %v3901_v30 = vpack.c.bf16 %v5078_v5, %v5076_v21 }
 0x1ea   : > { %v2763_v15 = vadd.f32 %v2762_v36, %v4719_v20  ;;  %v3026_v39 = vadd.f32 %v3025_v59, %v2899_v31  ;;  %v2903_v59 = vmul.f32 %v4734_v33, %v4734_v33 }
 0x1eb   : > { %3981 = vst [vmem:[%s4464_s27 + $0x1d8] sm:$0xff] %v3901_v30   ;;  %v5102_v30 = vld [vmem:[#allocation2 + $0x3d0] sm:$0xff] }
 0x1ec   : > { %v3027_v4 = vadd.f32 %v3026_v39, %v2900_v28  ;;  %v2764_v19 = vadd.f32 %v2763_v15, %v4727_v23  ;;  %v2904_v28 = vmul.f32 %v4736_v34, %v4736_v34  ;;  %v5091_v15 = vld [vmem:[#allocation2 + $0x3c8] sm:$0xff] }
 0x1ed   : > { %v3906_v39 = vpack.c.bf16 %v5091_v15, %v5089_v26 }
 0x1ee   : > { %v2765_v20 = vadd.f32 %v2764_v19, %v4732_v32  ;;  %v3028_v31 = vadd.f32 %v3027_v4, %v2901_v52  ;;  %v2905_v4 = vmul.f32 %v4744_v40, %v4744_v40 }
 0x1ef   : > { %3982 = vst [vmem:[%s4464_s27 + $0x1e0] sm:$0xff] %v3906_v39   ;;  %v5115_v39 = vld [vmem:[#allocation2 + $0x3e0] sm:$0xff] }
 0x1f0   : > { %v3029_v36 = vadd.f32 %v3028_v31, %v2902_v47  ;;  %v2766_v23 = vadd.f32 %v2765_v20, %v4734_v33  ;;  %v2906_v47 = vmul.f32 %v4749_v57, %v4749_v57  ;;  %v5104_v20 = vld [vmem:[#allocation2 + $0x3d8] sm:$0xff] }
 0x1f1   : > { %v3911_v31 = vpack.c.bf16 %v5104_v20, %v5102_v30 }
 0x1f2   : > { %v2767_v32 = vadd.f32 %v2766_v23, %v4736_v34  ;;  %v3030_v52 = vadd.f32 %v3029_v36, %v2903_v59  ;;  %v2907_v36 = vmul.f32 %v4751_v35, %v4751_v35 }
 0x1f3   : > { %3983 = vst [vmem:[%s4464_s27 + $0x1e8] sm:$0xff] %v3911_v31   ;;  %v5128_v31 = vld [vmem:[#allocation2 + $0x3f0] sm:$0xff] }
 0x1f4   : > { %v3031_v19 = vadd.f32 %v3030_v52, %v2904_v28  ;;  %v2768_v33 = vadd.f32 %v2767_v32, %v4744_v40  ;;  %v2908_v28 = vmul.f32 %v4753_v60, %v4753_v60  ;;  %v5117_v32 = vld [vmem:[#allocation2 + $0x3e8] sm:$0xff] }
 0x1f5   : > { %5401 = vst [vmem:[#allocation18_spill] sm:$0xff] %v5117_v32  ;;  %v3916_v52 = vpack.c.bf16 %v5117_v32, %v5115_v39  ;;  %v2913_v32 = vmul.f32 %v4778_v45, %v4778_v45 }
 0x1f6   : > { %v2769_v34 = vadd.f32 %v2768_v33, %v4749_v57  ;;  %v3032_v59 = vadd.f32 %v3031_v19, %v2905_v4  ;;  %v2909_v19 = vmul.f32 %v4761_v1, %v4761_v1 }
 0x1f7   : > { %3984 = vst [vmem:[%s4464_s27 + $0x1f0] sm:$0xff] %v3916_v52  }
 0x1f8   : > { %v3033_v23 = vadd.f32 %v3032_v59, %v2906_v47  ;;  %v2770_v40 = vadd.f32 %v2769_v34, %v4751_v35  ;;  %v2910_v47 = vmul.f32 %v4766_v13, %v4766_v13  ;;  %v5130_v34 = vld [vmem:[#allocation2 + $0x3f8] sm:$0xff] }
 0x1f9   : > { %5402 = vst [vmem:[#allocation19_spill] sm:$0xff] %v5130_v34  ;;  %v3921_v59 = vpack.c.bf16 %v5130_v34, %v5128_v31 }
 0x1fa   : > { %v2771_v57 = vadd.f32 %v2770_v40, %v4753_v60  ;;  %v3034_v4 = vadd.f32 %v3033_v23, %v2907_v36  ;;  %v2911_v23 = vmul.f32 %v4768_v14, %v4768_v14 }
 0x1fb   : > { %3985 = vst [vmem:[%s4464_s27 + $0x1f8] sm:$0xff] %v3921_v59   ;;  %v5405_v59 = vld [vmem:[#allocation5_spill] sm:$0xff] }
 0x1fc   : > { %v3035_v33 = vadd.f32 %v3034_v4, %v2908_v28  ;;  %v2772_v35 = vadd.f32 %v2771_v57, %v4761_v1  ;;  %v5403_v28 = vld [vmem:[#allocation3_spill] sm:$0xff] }
 0x1fd   : > { %v2912_v52 = vmul.f32 %v5403_v28, %v5403_v28 }
 0x1fe   : > { %v2773_v60 = vadd.f32 %v2772_v35, %v4766_v13  ;;  %v3036_v36 = vadd.f32 %v3035_v33, %v2909_v19  ;;  %v5404_v19 = vld [vmem:[#allocation4_spill] sm:$0xff] }
 0x1ff   : > { %v2914_v33 = vmul.f32 %v5404_v19, %v5404_v19 }
 0x200   : > { %v3037_v40 = vadd.f32 %v3036_v36, %v2910_v47  ;;  %v2774_v1 = vadd.f32 %v2773_v60, %v4768_v14  ;;  %v2915_v14 = vmul.f32 %v5405_v59, %v5405_v59 }
 0x202   : > { %v2775_v57 = vadd.f32 %v2774_v1, %v5403_v28  ;;  %v3038_v4 = vadd.f32 %v3037_v40, %v2911_v23  ;;  %v5406_v1 = vld [vmem:[#allocation6_spill] sm:$0xff] }
 0x203   : > { %v2916_v23 = vmul.f32 %v5406_v1, %v5406_v1 }
 0x204   : > { %v3039_v34 = vadd.f32 %v3038_v4, %v2912_v52  ;;  %v2776_v13 = vadd.f32 %v2775_v57, %v4778_v45  ;;  %v2917_v45 = vmul.f32 %v4795_v50, %v4795_v50  ;;  %v5407_v4 = vld [vmem:[#allocation7_spill] sm:$0xff] }
 0x206   : > { %v2777_v35 = vadd.f32 %v2776_v13, %v5404_v19  ;;  %v3040_v47 = vadd.f32 %v3039_v34, %v2913_v32  ;;  %v2918_v32 = vmul.f32 %v5407_v4, %v5407_v4  ;;  %v5408_v19 = vld [vmem:[#allocation8_spill] sm:$0xff] }
 0x208   : > { %v3041_v60 = vadd.f32 %v3040_v47, %v2914_v33  ;;  %v2778_v36 = vadd.f32 %v2777_v35, %v5405_v59  ;;  %v2919_v33 = vmul.f32 %v5408_v19, %v5408_v19  ;;  %v5409_v59 = vld [vmem:[#allocation9_spill] sm:$0xff] }
 0x20a   : > { %v2779_v40 = vadd.f32 %v2778_v36, %v5406_v1  ;;  %v3042_v28 = vadd.f32 %v3041_v60, %v2915_v14  ;;  %v2920_v14 = vmul.f32 %v5409_v59, %v5409_v59 }
 0x20c   : > { %v3043_v52 = vadd.f32 %v3042_v28, %v2916_v23  ;;  %v2780_v57 = vadd.f32 %v2779_v40, %v4795_v50  ;;  %v2921_v50 = vmul.f32 %v4812_v49, %v4812_v49  ;;  %v5410_v40 = vld [vmem:[#allocation10_spill] sm:$0xff] }
 0x20d   : > { %v2922_v28 = vmul.f32 %v5410_v40, %v5410_v40 }
 0x20e   : > { %v2781_v34 = vadd.f32 %v2780_v57, %v5407_v4  ;;  %v3044_v13 = vadd.f32 %v3043_v52, %v2917_v45  ;;  %v5411_v57 = vld [vmem:[#allocation11_spill] sm:$0xff] }
 0x20f   : > { %v2923_v4 = vmul.f32 %v5411_v57, %v5411_v57 }
 0x210   : > { %v3045_v35 = vadd.f32 %v3044_v13, %v2918_v32  ;;  %v2782_v47 = vadd.f32 %v2781_v34, %v5408_v19  ;;  %v5412_v13 = vld [vmem:[#allocation12_spill] sm:$0xff] }
 0x211   : > { %v2924_v19 = vmul.f32 %v5412_v13, %v5412_v13 }
 0x212   : > { %v2783_v60 = vadd.f32 %v2782_v47, %v5409_v59  ;;  %v3046_v36 = vadd.f32 %v3045_v35, %v2919_v33 }
 0x214   : > { %v3047_v1 = vadd.f32 %v3046_v36, %v2920_v14  ;;  %v2784_v23 = vadd.f32 %v2783_v60, %v4812_v49  ;;  %v2925_v49 = vmul.f32 %v4829_v42, %v4829_v42  ;;  %v5413_v14 = vld [vmem:[#allocation13_spill] sm:$0xff] }
 0x215   : > { %v2926_v60 = vmul.f32 %v5413_v14, %v5413_v14 }
 0x216   : > { %v2785_v45 = vadd.f32 %v2784_v23, %v5410_v40  ;;  %v3048_v52 = vadd.f32 %v3047_v1, %v2921_v50  ;;  %v5414_v1 = vld [vmem:[#allocation14_spill] sm:$0xff] }
 0x217   : > { %v2927_v23 = vmul.f32 %v5414_v1, %v5414_v1 }
 0x218   : > { %v3049_v32 = vadd.f32 %v3048_v52, %v2922_v28  ;;  %v2786_v34 = vadd.f32 %v2785_v45, %v5411_v57  ;;  %v5415_v45 = vld [vmem:[#allocation15_spill] sm:$0xff] }
 0x219   : > { %v2928_v52 = vmul.f32 %v5415_v45, %v5415_v45 }
 0x21a   : > { %v2787_v33 = vadd.f32 %v2786_v34, %v5412_v13  ;;  %v3050_v35 = vadd.f32 %v3049_v32, %v2923_v4  ;;  %v5416_v13 = vld [vmem:[#allocation16_spill] sm:$0xff] }
 0x21c   : > { %v3051_v47 = vadd.f32 %v3050_v35, %v2924_v19  ;;  %v2788_v59 = vadd.f32 %v2787_v33, %v4829_v42  ;;  %v2929_v42 = vmul.f32 %v4846_v54, %v4846_v54  ;;  %v2930_v19 = vmul.f32 %v5416_v13, %v5416_v13 }
 0x21e   : > { %v2789_v36 = vadd.f32 %v2788_v59, %v5413_v14  ;;  %v3052_v50 = vadd.f32 %v3051_v47, %v2925_v49  ;;  %v2931_v49 = vmul.f32 %v4853_v24, %v4853_v24  ;;  %v5417_v14 = vld [vmem:[#allocation17_spill] sm:$0xff] }
 0x220   : > { %v3053_v40 = vadd.f32 %v3052_v50, %v2926_v60  ;;  %v2790_v28 = vadd.f32 %v2789_v36, %v5414_v1  ;;  %v2932_v60 = vmul.f32 %v5417_v14, %v5417_v14 }
 0x222   : > { %v2791_v57 = vadd.f32 %v2790_v28, %v5415_v45  ;;  %v3054_v4 = vadd.f32 %v3053_v40, %v2927_v23  ;;  %v2934_v40 = vmul.f32 %v4868_v22, %v4868_v22 }
 0x224   : > { %v3055_v32 = vadd.f32 %v3054_v4, %v2928_v52  ;;  %v2792_v34 = vadd.f32 %v2791_v57, %v4846_v54  ;;  %v2933_v54 = vmul.f32 %v4866_v48, %v4866_v48  ;;  %v2936_v4 = vmul.f32 %v4883_v11, %v4883_v11 }
 0x226   : > { %v2793_v33 = vadd.f32 %v2792_v34, %v5416_v13  ;;  %v3056_v35 = vadd.f32 %v3055_v32, %v2929_v42 }
 0x228   : > { %v3057_v47 = vadd.f32 %v3056_v35, %v2930_v19  ;;  %v2794_v59 = vadd.f32 %v2793_v33, %v4853_v24  ;;  %v2935_v24 = vmul.f32 %v4881_v53, %v4881_v53 }
 0x22a   : > { %v2795_v36 = vadd.f32 %v2794_v59, %v5417_v14  ;;  %v3058_v50 = vadd.f32 %v3057_v47, %v2931_v49 }
 0x22c   : > { %v3059_v1 = vadd.f32 %v3058_v50, %v2932_v60  ;;  %v2796_v23 = vadd.f32 %v2795_v36, %v4866_v48  ;;  %v2937_v48 = vmul.f32 %v4894_v44, %v4894_v44 }
 0x22e   : > { %v2797_v28 = vadd.f32 %v2796_v23, %v4868_v22  ;;  %v3060_v45 = vadd.f32 %v3059_v1, %v2933_v54  ;;  %v2938_v22 = vmul.f32 %v4896_v46, %v4896_v46 }
 0x230   : > { %v3061_v52 = vadd.f32 %v3060_v45, %v2934_v40  ;;  %v2798_v57 = vadd.f32 %v2797_v28, %v4881_v53  ;;  %v2939_v53 = vmul.f32 %v4907_v55, %v4907_v55 }
 0x232   : > { %v2799_v42 = vadd.f32 %v2798_v57, %v4883_v11  ;;  %v3062_v32 = vadd.f32 %v3061_v52, %v2935_v24  ;;  %v2940_v11 = vmul.f32 %v4909_v62, %v4909_v62 }
 0x234   : > { %v3063_v34 = vadd.f32 %v3062_v32, %v2936_v4  ;;  %v2800_v13 = vadd.f32 %v2799_v42, %v4894_v44  ;;  %v2941_v44 = vmul.f32 %v4920_v10, %v4920_v10 }
 0x236   : > { %v2801_v19 = vadd.f32 %v2800_v13, %v4896_v46  ;;  %v3064_v33 = vadd.f32 %v3063_v34, %v2937_v48  ;;  %v2942_v46 = vmul.f32 %v4922_v0, %v4922_v0 }
 0x238   : > { %v3065_v35 = vadd.f32 %v3064_v33, %v2938_v22  ;;  %v2802_v49 = vadd.f32 %v2801_v19, %v4907_v55  ;;  %v2943_v55 = vmul.f32 %v4933_v61, %v4933_v61 }
 0x23a   : > { %v2803_v47 = vadd.f32 %v2802_v49, %v4909_v62  ;;  %v3066_v59 = vadd.f32 %v3065_v35, %v2939_v53  ;;  %v2944_v62 = vmul.f32 %v4935_v7, %v4935_v7 }
 0x23c   : > { %v3067_v14 = vadd.f32 %v3066_v59, %v2940_v11  ;;  %v2804_v60 = vadd.f32 %v2803_v47, %v4920_v10  ;;  %v2945_v10 = vmul.f32 %v4946_v37, %v4946_v37 }
 0x23e   : > { %v2805_v36 = vadd.f32 %v2804_v60, %v4922_v0  ;;  %v3068_v50 = vadd.f32 %v3067_v14, %v2941_v44  ;;  %v2946_v0 = vmul.f32 %v4948_v9, %v4948_v9 }
 0x240   : > { %v3069_v54 = vadd.f32 %v3068_v50, %v2942_v46  ;;  %v2806_v1 = vadd.f32 %v2805_v36, %v4933_v61  ;;  %v2947_v61 = vmul.f32 %v4959_v6, %v4959_v6 }
 0x242   : > { %v2807_v23 = vadd.f32 %v2806_v1, %v4935_v7  ;;  %v3070_v40 = vadd.f32 %v3069_v54, %v2943_v55  ;;  %v2948_v7 = vmul.f32 %v4961_v16, %v4961_v16 }
 0x244   : > { %v3071_v28 = vadd.f32 %v3070_v40, %v2944_v62  ;;  %v2808_v45 = vadd.f32 %v2807_v23, %v4946_v37  ;;  %v2949_v37 = vmul.f32 %v4972_v58, %v4972_v58 }
 0x246   : > { %v2809_v24 = vadd.f32 %v2808_v45, %v4948_v9  ;;  %v3072_v52 = vadd.f32 %v3071_v28, %v2945_v10  ;;  %v2950_v9 = vmul.f32 %v4974_v18, %v4974_v18 }
 0x248   : > { %v3073_v57 = vadd.f32 %v3072_v52, %v2946_v0  ;;  %v2810_v4 = vadd.f32 %v2809_v24, %v4959_v6  ;;  %v2951_v6 = vmul.f32 %v4985_v43, %v4985_v43 }
 0x24a   : > { %v2811_v42 = vadd.f32 %v2810_v4, %v4961_v16  ;;  %v3074_v32 = vadd.f32 %v3073_v57, %v2947_v61  ;;  %v2952_v16 = vmul.f32 %v4987_v25, %v4987_v25 }
 0x24c   : > { %v3075_v48 = vadd.f32 %v3074_v32, %v2948_v7  ;;  %v2812_v34 = vadd.f32 %v2811_v42, %v4972_v58  ;;  %v2953_v58 = vmul.f32 %v4998_v29, %v4998_v29 }
 0x24e   : > { %v2813_v13 = vadd.f32 %v2812_v34, %v4974_v18  ;;  %v3076_v22 = vadd.f32 %v3075_v48, %v2949_v37  ;;  %v2954_v18 = vmul.f32 %v5000_v27, %v5000_v27 }
 0x250   : > { %v3077_v19 = vadd.f32 %v3076_v22, %v2950_v9  ;;  %v2814_v33 = vadd.f32 %v2813_v13, %v4985_v43  ;;  %v2955_v43 = vmul.f32 %v5011_v63, %v5011_v63 }
 0x252   : > { %v2815_v53 = vadd.f32 %v2814_v33, %v4987_v25  ;;  %v3078_v35 = vadd.f32 %v3077_v19, %v2951_v6  ;;  %v2956_v25 = vmul.f32 %v5013_v38, %v5013_v38 }
 0x254   : > { %v3079_v49 = vadd.f32 %v3078_v35, %v2952_v16  ;;  %v2816_v11 = vadd.f32 %v2815_v53, %v4998_v29  ;;  %v2957_v29 = vmul.f32 %v5024_v3, %v5024_v3 }
 0x256   : > { %v2817_v47 = vadd.f32 %v2816_v11, %v5000_v27  ;;  %v3080_v59 = vadd.f32 %v3079_v49, %v2953_v58  ;;  %v2958_v27 = vmul.f32 %v5026_v41, %v5026_v41  ;;  %v5419_v11 = vld [vmem:[#allocation19_spill] sm:$0xff] }
 0x258   : > { %v3081_v44 = vadd.f32 %v3080_v59, %v2954_v18  ;;  %v2818_v14 = vadd.f32 %v2817_v47, %v5011_v63  ;;  %v2959_v63 = vmul.f32 %v5037_v8, %v5037_v8  ;;  %v2974_v18 = vmul.f32 %v5419_v11, %v5419_v11 }
 0x25a   : > { %v2819_v60 = vadd.f32 %v2818_v14, %v5013_v38  ;;  %v3082_v46 = vadd.f32 %v3081_v44, %v2955_v43  ;;  %v2960_v38 = vmul.f32 %v5039_v51, %v5039_v51 }
 0x25c   : > { %v3083_v36 = vadd.f32 %v3082_v46, %v2956_v25  ;;  %v2820_v50 = vadd.f32 %v2819_v60, %v5024_v3  ;;  %v2961_v3 = vmul.f32 %v5050_v12, %v5050_v12 }
 0x25e   : > { %v2821_v55 = vadd.f32 %v2820_v50, %v5026_v41  ;;  %v3084_v54 = vadd.f32 %v3083_v36, %v2957_v29  ;;  %v2962_v41 = vmul.f32 %v5052_v56, %v5052_v56 }
 0x260   : > { %v3085_v1 = vadd.f32 %v3084_v54, %v2958_v27  ;;  %v2822_v62 = vadd.f32 %v2821_v55, %v5037_v8  ;;  %v2963_v8 = vmul.f32 %v5063_v17, %v5063_v17  ;;  %v2846_v54 = vld [vmem:[%s4445_s7] sm:$0x1] }
 0x262   : > { %v2823_v23 = vadd.f32 %v2822_v62, %v5039_v51  ;;  %v3086_v40 = vadd.f32 %v3085_v1, %v2959_v63  ;;  %v2964_v51 = vmul.f32 %v5065_v2, %v5065_v2 }
 0x264   : > { %v3087_v10 = vadd.f32 %v3086_v40, %v2960_v38  ;;  %v2824_v28 = vadd.f32 %v2823_v23, %v5050_v12  ;;  %v2965_v12 = vmul.f32 %v5076_v21, %v5076_v21 }
 0x266   : > { %v2825_v45 = vadd.f32 %v2824_v28, %v5052_v56  ;;  %v3088_v0 = vadd.f32 %v3087_v10, %v2961_v3  ;;  %v2966_v56 = vmul.f32 %v5078_v5, %v5078_v5 }
 0x268   : > { %v3089_v24 = vadd.f32 %v3088_v0, %v2962_v41  ;;  %v2826_v52 = vadd.f32 %v2825_v45, %v5063_v17  ;;  %v2967_v17 = vmul.f32 %v5089_v26, %v5089_v26 }
 0x26a   : > { %v2827_v61 = vadd.f32 %v2826_v52, %v5065_v2  ;;  %v3090_v57 = vadd.f32 %v3089_v24, %v2963_v8  ;;  %v2968_v2 = vmul.f32 %v5091_v15, %v5091_v15 }
 0x26c   : > { %v3091_v4 = vadd.f32 %v3090_v57, %v2964_v51  ;;  %v2828_v7 = vadd.f32 %v2827_v61, %v5076_v21  ;;  %v2969_v21 = vmul.f32 %v5102_v30, %v5102_v30 }
 0x26e   : > { %v2829_v42 = vadd.f32 %v2828_v7, %v5078_v5  ;;  %v3092_v32 = vadd.f32 %v3091_v4, %v2965_v12  ;;  %v2970_v5 = vmul.f32 %v5104_v20, %v5104_v20 }
 0x270   : > { %v3093_v37 = vadd.f32 %v3092_v32, %v2966_v56  ;;  %v2830_v48 = vadd.f32 %v2829_v42, %v5089_v26  ;;  %v2971_v26 = vmul.f32 %v5115_v39, %v5115_v39 }
 0x272   : > { %v2831_v34 = vadd.f32 %v2830_v48, %v5091_v15  ;;  %v3094_v9 = vadd.f32 %v3093_v37, %v2967_v17  ;;  %v5418_v15 = vld [vmem:[#allocation18_spill] sm:$0xff] }
 0x273   : > { %v2972_v53 = vmul.f32 %v5418_v15, %v5418_v15 }
 0x274   : > { %v3095_v13 = vadd.f32 %v3094_v9, %v2968_v2  ;;  %v2832_v22 = vadd.f32 %v2831_v34, %v5102_v30  ;;  %v2973_v30 = vmul.f32 %v5128_v31, %v5128_v31 }
 0x276   : > { %v2833_v6 = vadd.f32 %v2832_v22, %v5104_v20  ;;  %v3096_v19 = vadd.f32 %v3095_v13, %v2969_v21 }
 0x278   : > { %v3097_v33 = vadd.f32 %v3096_v19, %v2970_v5  ;;  %v2834_v16 = vadd.f32 %v2833_v6, %v5115_v39 }
 0x27a   : > { %v2835_v35 = vadd.f32 %v2834_v16, %v5418_v15  ;;  %v3098_v58 = vadd.f32 %v3097_v33, %v2971_v26 }
 0x27c   : > { %v3099_v49 = vadd.f32 %v3098_v58, %v2972_v53  ;;  %v2836_v20 = vadd.f32 %v2835_v35, %v5128_v31  ;;  %v2710_v31 = vld [vmem:[%s4440_s30] sm:$0x1] }
 0x27e   : > { %v2837_v47 = vadd.f32 %v2836_v20, %v5419_v11  ;;  %v3100_v39 = vadd.f32 %v3099_v49, %v2973_v30 }
 0x280   : > { %v2838_v59 = vrot.slane %v2837_v47, 4  ;;  %v3101_v43 = vadd.f32 %v3100_v39, %v2974_v18 }
 0x282   : > { %v2839_v44 = vadd.f32 %v2838_v59, %v2837_v47  ;;  %v3102_v14 = vrot.slane %v3101_v43, 4 }
 0x284   : > { %v2840_v25 = vrot.slane %v2839_v44, 2  ;;  %v3103_v60 = vadd.f32 %v3102_v14, %v3101_v43 }
 0x286   : > { %v2841_v46 = vadd.f32 %v2840_v25, %v2839_v44  ;;  %v3104_v29 = vrot.slane %v3103_v60, 2 }
 0x288   : > { %v2842_v36 = vrot.slane %v2841_v46, 1  ;;  %v3105_v50 = vadd.f32 %v3104_v29, %v3103_v60 }
 0x28a   : > { %v2843_v27 = vadd.f32 %v2842_v36, %v2841_v46  ;;  %v3106_v55 = vrot.slane %v3105_v50, 1 }
 0x28c   : > { %v2844_v63 = vadd.f32 %v2843_v27, %v2710_v31  ;;  %v3107_v1 = vadd.f32 %v3106_v55, %v3105_v50 }
 0x28e   : > { %2845 = vst [vmem:[%s4440_s30] sm:$0x1] %v2844_v63  ;;  %v3108_v62 = vadd.f32 %v3107_v1, %v2846_v54 }
 0x290   : > { %3109 = vst [vmem:[%s4445_s7] sm:$0x1] %v3108_v62 }
 0x291 PF: > { %s15_s19 = sadd.s32 1, %s4370_s19   ;;  %s5420_s15 = smov %s4362_s17 }
 0x292   : > { %p12_p8 = scmp.ge.s32.totalorder %s15_s19, 10   ;;  %s5421_s16 = smov %s4366_s18 }
 0x293   : > { %s5422_s17 = smov %s5425_s20  ;;  %s5423_s18 = smov %s5429_s21 }
 0x294   :  { %14 = sbr.rel (!%p12_p8) target bundleno = 3 (0x3), region = 97 }

// kernel: conv3d_bn_relu.3
= control target key start
LH: loop header
LB: loop body
LE: loop exit
PB: predicated region body
PF: predicated region fallthrough
CT: control target
= control target key end

     0   :  { %s2472_s12 = smov 0   ;;  %s3423_s0 = inlined_call_operand.vmem [shape: bf16[8192,128], index: 0, kind: input, shape index: {}]   ;;  %s3424_s1 = inlined_call_operand.vmem [shape: f32[1,128], index: 1, kind: input, shape index: {}]   ;;  %s3425_s2 = inlined_call_operand.vmem [shape: f32[1,128], index: 2, kind: input, shape index: {}]   ;;  %s3426_s3 = inlined_call_operand.vmem [shape: f32[8192,128], index: 3, kind: output, shape index: {}]  }
   0x1 LB: > { %s1780_s13 = sadd.s32 4294967295, %s2450_s12   ;;  %p1784_p0 = scmp.ge.s32.totalorder %s2450_s12, 1  ;;  %s2450_s12 = sphi %s2472_s12, %s13_s12  }
   0x2   : > { %p138_p1 = scmp.lt.s32.totalorder %s2450_s12, 5 }
   0x4   : > { %p139_p2 = pnand %p1784_p0, %p138_p1 }
   0x5   : > { %s1785_s14 = sshll.u32 (!%p139_p2), %s1780_s13, 8  ;;  %v2491_v0 = vld [vmem:[%s3424_s1] ss:$0 sm:$0xff] (!%p139_p2) }
   0x6   : > { %142 = sbr.rel (%p139_p2) target bundleno = 277 (0x115), region = 32  ;;  %p163_p3 = scmp.lt.s32.totalorder (!%p139_p2), %s1785_s14, 1023  ;;  %v2500_v9 = vld [vmem:[%s3425_s2] ss:$0 sm:$0xff] (!%p139_p2) }
   0xd   : > { %s3428_s14 = smov (!%p163_p3, %s1785_s14), 1023 }
   0xe   : > { %s1786_s15 = sshll.u32 %s3428_s14, 2  ;;  %s1788_s23 = sshll.u32 %s3428_s14, 3 }
   0xf   : > { %s2486_s18 = scalar_lea.vmem %s3423_s0, %s1786_s15  ;;  %s2518_s26 = scalar_lea.vmem %s3426_s3, %s1788_s23 }
  0x10   : > { %v1794_v1 = vld [vmem:[%s2486_s18] sm:$0xff]   ;;  %v2305_v2 = vld [vmem:[%s2486_s18 + $0x8] sm:$0xff]   ;;  %v2306_v3 = vld [vmem:[%s2486_s18 + $0x10] sm:$0xff]  }
  0x11   : > { %v1795_v4 = vunpack.c.l.bf16 %v1794_v1  ;;  %v1796_v5 = vunpack.c.h.bf16 %v1794_v1  ;;  %v1799_v6 = vunpack.c.l.bf16 %v2305_v2  ;;  %v1800_v7 = vunpack.c.h.bf16 %v2305_v2  ;;  %v2307_v8 = vld [vmem:[%s2486_s18 + $0x18] sm:$0xff]   ;;  %v2308_v30 = vld [vmem:[%s2486_s18 + $0x20] sm:$0xff]   ;;  %v2309_v31 = vld [vmem:[%s2486_s18 + $0x28] sm:$0xff]  }
  0x12   : > { %v1803_v10 = vunpack.c.l.bf16 %v2306_v3  ;;  %v1804_v11 = vunpack.c.h.bf16 %v2306_v3  ;;  %v1807_v12 = vunpack.c.l.bf16 %v2307_v8  ;;  %v1808_v13 = vunpack.c.h.bf16 %v2307_v8  ;;  %v2310_v36 = vld [vmem:[%s2486_s18 + $0x30] sm:$0xff]   ;;  %v2311_v37 = vld [vmem:[%s2486_s18 + $0x38] sm:$0xff]   ;;  %v2312_v3 = vld [vmem:[%s2486_s18 + $0x40] sm:$0xff]  }
  0x13   : > { %v693_v14 = vmul.f32 %v1795_v4, %v2491_v0  ;;  %v694_v15 = vmul.f32 %v1796_v5, %v2491_v0  ;;  %v695_v16 = vmul.f32 %v1799_v6, %v2491_v0  ;;  %v696_v17 = vmul.f32 %v1800_v7, %v2491_v0  ;;  %v2313_v4 = vld [vmem:[%s2486_s18 + $0x48] sm:$0xff]  }
  0x14   : > { %v697_v18 = vmul.f32 %v1803_v10, %v2491_v0  ;;  %v698_v19 = vmul.f32 %v1804_v11, %v2491_v0  ;;  %v699_v20 = vmul.f32 %v1807_v12, %v2491_v0  ;;  %v700_v21 = vmul.f32 %v1808_v13, %v2491_v0  ;;  %v2314_v10 = vld [vmem:[%s2486_s18 + $0x50] sm:$0xff]   ;;  %v2315_v11 = vld [vmem:[%s2486_s18 + $0x58] sm:$0xff]  }
  0x15   : > { %v956_v22 = vadd.f32 %v2500_v9, %v693_v14  ;;  %v957_v23 = vadd.f32 %v2500_v9, %v694_v15  ;;  %v958_v24 = vadd.f32 %v2500_v9, %v695_v16  ;;  %v959_v25 = vadd.f32 %v2500_v9, %v696_v17 }
  0x16   : > { %v960_v26 = vadd.f32 %v2500_v9, %v697_v18  ;;  %v961_v27 = vadd.f32 %v2500_v9, %v698_v19  ;;  %v962_v28 = vadd.f32 %v2500_v9, %v699_v20  ;;  %v963_v29 = vadd.f32 %v2500_v9, %v700_v21 }
  0x17   : > { %v1212_v32 = vmax.f32 %v956_v22, 0.0  ;;  %v1213_v33 = vmax.f32 %v957_v23, 0.0  ;;  %v1214_v34 = vmax.f32 %v958_v24, 0.0  ;;  %v1215_v35 = vmax.f32 %v959_v25, 0.0 }
  0x18   : > { %v1216_v38 = vmax.f32 %v960_v26, 0.0  ;;  %v1217_v39 = vmax.f32 %v961_v27, 0.0  ;;  %v1218_v40 = vmax.f32 %v962_v28, 0.0  ;;  %v1219_v41 = vmax.f32 %v963_v29, 0.0 }
  0x19   : > { %1468 = vst [vmem:[%s2518_s26] sm:$0xff] %v1212_v32  ;;  %1469 = vst [vmem:[%s2518_s26 + $0x8] sm:$0xff] %v1213_v33  ;;  %v1811_v42 = vunpack.c.l.bf16 %v2308_v30  ;;  %v1812_v43 = vunpack.c.h.bf16 %v2308_v30  ;;  %v1815_v44 = vunpack.c.l.bf16 %v2309_v31  ;;  %v1816_v45 = vunpack.c.h.bf16 %v2309_v31 }
  0x1a   : > { %1470 = vst [vmem:[%s2518_s26 + $0x10] sm:$0xff] %v1214_v34  ;;  %1471 = vst [vmem:[%s2518_s26 + $0x18] sm:$0xff] %v1215_v35  ;;  %v1819_v46 = vunpack.c.l.bf16 %v2310_v36  ;;  %v1820_v47 = vunpack.c.h.bf16 %v2310_v36  ;;  %v1823_v48 = vunpack.c.l.bf16 %v2311_v37  ;;  %v1824_v49 = vunpack.c.h.bf16 %v2311_v37 }
  0x1b   : > { %1472 = vst [vmem:[%s2518_s26 + $0x20] sm:$0xff] %v1216_v38  ;;  %1473 = vst [vmem:[%s2518_s26 + $0x28] sm:$0xff] %v1217_v39  ;;  %v701_v50 = vmul.f32 %v1811_v42, %v2491_v0  ;;  %v702_v51 = vmul.f32 %v1812_v43, %v2491_v0  ;;  %v703_v52 = vmul.f32 %v1815_v44, %v2491_v0  ;;  %v1827_v16 = vunpack.c.l.bf16 %v2312_v3 }
  0x1c   : > { %1474 = vst [vmem:[%s2518_s26 + $0x30] sm:$0xff] %v1218_v40  ;;  %1475 = vst [vmem:[%s2518_s26 + $0x38] sm:$0xff] %v1219_v41  ;;  %v704_v53 = vmul.f32 %v1816_v45, %v2491_v0  ;;  %v705_v54 = vmul.f32 %v1819_v46, %v2491_v0  ;;  %v706_v55 = vmul.f32 %v1820_v47, %v2491_v0  ;;  %v1828_v17 = vunpack.c.h.bf16 %v2312_v3  ;;  %v2316_v40 = vld [vmem:[%s2486_s18 + $0x60] sm:$0xff]   ;;  %v2317_v41 = vld [vmem:[%s2486_s18 + $0x68] sm:$0xff]  }
  0x1d   : > { %v707_v56 = vmul.f32 %v1823_v48, %v2491_v0  ;;  %v708_v57 = vmul.f32 %v1824_v49, %v2491_v0  ;;  %v964_v58 = vadd.f32 %v2500_v9, %v701_v50  ;;  %v965_v59 = vadd.f32 %v2500_v9, %v702_v51  ;;  %v2318_v46 = vld [vmem:[%s2486_s18 + $0x70] sm:$0xff]   ;;  %v2319_v47 = vld [vmem:[%s2486_s18 + $0x78] sm:$0xff]  }
  0x1e   : > { %v966_v60 = vadd.f32 %v2500_v9, %v703_v52  ;;  %v967_v61 = vadd.f32 %v2500_v9, %v704_v53  ;;  %v968_v62 = vadd.f32 %v2500_v9, %v705_v54  ;;  %v969_v63 = vadd.f32 %v2500_v9, %v706_v55 }
  0x1f   : > { %v970_v1 = vadd.f32 %v2500_v9, %v707_v56  ;;  %v971_v2 = vadd.f32 %v2500_v9, %v708_v57  ;;  %v1220_v5 = vmax.f32 %v964_v58, 0.0  ;;  %v1221_v6 = vmax.f32 %v965_v59, 0.0 }
  0x20   : > { %v1222_v7 = vmax.f32 %v966_v60, 0.0  ;;  %v1223_v8 = vmax.f32 %v967_v61, 0.0  ;;  %v1224_v12 = vmax.f32 %v968_v62, 0.0  ;;  %v1225_v13 = vmax.f32 %v969_v63, 0.0 }
  0x21   : > { %v1226_v14 = vmax.f32 %v970_v1, 0.0  ;;  %v1227_v15 = vmax.f32 %v971_v2, 0.0  ;;  %1476 = vst [vmem:[%s2518_s26 + $0x40] sm:$0xff] %v1220_v5  ;;  %1477 = vst [vmem:[%s2518_s26 + $0x48] sm:$0xff] %v1221_v6  ;;  %v1831_v18 = vunpack.c.l.bf16 %v2313_v4  ;;  %v1832_v19 = vunpack.c.h.bf16 %v2313_v4 }
  0x22   : > { %1478 = vst [vmem:[%s2518_s26 + $0x50] sm:$0xff] %v1222_v7  ;;  %1479 = vst [vmem:[%s2518_s26 + $0x58] sm:$0xff] %v1223_v8  ;;  %v1835_v20 = vunpack.c.l.bf16 %v2314_v10  ;;  %v1836_v21 = vunpack.c.h.bf16 %v2314_v10  ;;  %v1839_v22 = vunpack.c.l.bf16 %v2315_v11  ;;  %v1840_v23 = vunpack.c.h.bf16 %v2315_v11 }
  0x23   : > { %1480 = vst [vmem:[%s2518_s26 + $0x60] sm:$0xff] %v1224_v12  ;;  %1481 = vst [vmem:[%s2518_s26 + $0x68] sm:$0xff] %v1225_v13  ;;  %v709_v24 = vmul.f32 %v1827_v16, %v2491_v0  ;;  %v710_v25 = vmul.f32 %v1828_v17, %v2491_v0  ;;  %v711_v26 = vmul.f32 %v1831_v18, %v2491_v0  ;;  %v1843_v52 = vunpack.c.l.bf16 %v2316_v40 }
  0x24   : > { %1482 = vst [vmem:[%s2518_s26 + $0x70] sm:$0xff] %v1226_v14  ;;  %1483 = vst [vmem:[%s2518_s26 + $0x78] sm:$0xff] %v1227_v15  ;;  %v712_v27 = vmul.f32 %v1832_v19, %v2491_v0  ;;  %v713_v28 = vmul.f32 %v1835_v20, %v2491_v0  ;;  %v714_v29 = vmul.f32 %v1836_v21, %v2491_v0  ;;  %v1844_v53 = vunpack.c.h.bf16 %v2316_v40  ;;  %v2320_v14 = vld [vmem:[%s2486_s18 + $0x80] sm:$0xff]   ;;  %v2321_v15 = vld [vmem:[%s2486_s18 + $0x88] sm:$0xff]  }
  0x25   : > { %v715_v30 = vmul.f32 %v1839_v22, %v2491_v0  ;;  %v716_v31 = vmul.f32 %v1840_v23, %v2491_v0  ;;  %v972_v32 = vadd.f32 %v2500_v9, %v709_v24  ;;  %v973_v33 = vadd.f32 %v2500_v9, %v710_v25  ;;  %v2322_v20 = vld [vmem:[%s2486_s18 + $0x90] sm:$0xff]   ;;  %v2323_v21 = vld [vmem:[%s2486_s18 + $0x98] sm:$0xff]  }
  0x26   : > { %v974_v34 = vadd.f32 %v2500_v9, %v711_v26  ;;  %v975_v35 = vadd.f32 %v2500_v9, %v712_v27  ;;  %v976_v36 = vadd.f32 %v2500_v9, %v713_v28  ;;  %v977_v37 = vadd.f32 %v2500_v9, %v714_v29 }
  0x27   : > { %v978_v38 = vadd.f32 %v2500_v9, %v715_v30  ;;  %v979_v39 = vadd.f32 %v2500_v9, %v716_v31  ;;  %v1228_v42 = vmax.f32 %v972_v32, 0.0  ;;  %v1229_v43 = vmax.f32 %v973_v33, 0.0 }
  0x28   : > { %v1230_v44 = vmax.f32 %v974_v34, 0.0  ;;  %v1231_v45 = vmax.f32 %v975_v35, 0.0  ;;  %v1232_v48 = vmax.f32 %v976_v36, 0.0  ;;  %v1233_v49 = vmax.f32 %v977_v37, 0.0 }
  0x29   : > { %v1234_v50 = vmax.f32 %v978_v38, 0.0  ;;  %v1235_v51 = vmax.f32 %v979_v39, 0.0  ;;  %1484 = vst [vmem:[%s2518_s26 + $0x80] sm:$0xff] %v1228_v42  ;;  %1485 = vst [vmem:[%s2518_s26 + $0x88] sm:$0xff] %v1229_v43  ;;  %v1847_v54 = vunpack.c.l.bf16 %v2317_v41  ;;  %v1848_v55 = vunpack.c.h.bf16 %v2317_v41 }
  0x2a   : > { %1486 = vst [vmem:[%s2518_s26 + $0x90] sm:$0xff] %v1230_v44  ;;  %1487 = vst [vmem:[%s2518_s26 + $0x98] sm:$0xff] %v1231_v45  ;;  %v1851_v56 = vunpack.c.l.bf16 %v2318_v46  ;;  %v1852_v57 = vunpack.c.h.bf16 %v2318_v46  ;;  %v1855_v58 = vunpack.c.l.bf16 %v2319_v47  ;;  %v1856_v59 = vunpack.c.h.bf16 %v2319_v47 }
  0x2b   : > { %1488 = vst [vmem:[%s2518_s26 + $0xa0] sm:$0xff] %v1232_v48  ;;  %1489 = vst [vmem:[%s2518_s26 + $0xa8] sm:$0xff] %v1233_v49  ;;  %v717_v60 = vmul.f32 %v1843_v52, %v2491_v0  ;;  %v718_v61 = vmul.f32 %v1844_v53, %v2491_v0  ;;  %v719_v62 = vmul.f32 %v1847_v54, %v2491_v0  ;;  %v1859_v26 = vunpack.c.l.bf16 %v2320_v14 }
  0x2c   : > { %1490 = vst [vmem:[%s2518_s26 + $0xb0] sm:$0xff] %v1234_v50  ;;  %1491 = vst [vmem:[%s2518_s26 + $0xb8] sm:$0xff] %v1235_v51  ;;  %v720_v63 = vmul.f32 %v1848_v55, %v2491_v0  ;;  %v721_v1 = vmul.f32 %v1851_v56, %v2491_v0  ;;  %v722_v2 = vmul.f32 %v1852_v57, %v2491_v0  ;;  %v1860_v27 = vunpack.c.h.bf16 %v2320_v14  ;;  %v2324_v50 = vld [vmem:[%s2486_s18 + $0xa0] sm:$0xff]   ;;  %v2325_v51 = vld [vmem:[%s2486_s18 + $0xa8] sm:$0xff]  }
  0x2d   : > { %v723_v3 = vmul.f32 %v1855_v58, %v2491_v0  ;;  %v724_v4 = vmul.f32 %v1856_v59, %v2491_v0  ;;  %v980_v5 = vadd.f32 %v2500_v9, %v717_v60  ;;  %v981_v6 = vadd.f32 %v2500_v9, %v718_v61  ;;  %v2326_v56 = vld [vmem:[%s2486_s18 + $0xb0] sm:$0xff]   ;;  %v2327_v57 = vld [vmem:[%s2486_s18 + $0xb8] sm:$0xff]  }
  0x2e   : > { %v982_v7 = vadd.f32 %v2500_v9, %v719_v62  ;;  %v983_v8 = vadd.f32 %v2500_v9, %v720_v63  ;;  %v984_v10 = vadd.f32 %v2500_v9, %v721_v1  ;;  %v985_v11 = vadd.f32 %v2500_v9, %v722_v2 }
  0x2f   : > { %v986_v12 = vadd.f32 %v2500_v9, %v723_v3  ;;  %v987_v13 = vadd.f32 %v2500_v9, %v724_v4  ;;  %v1236_v16 = vmax.f32 %v980_v5, 0.0  ;;  %v1237_v17 = vmax.f32 %v981_v6, 0.0 }
  0x30   : > { %v1238_v18 = vmax.f32 %v982_v7, 0.0  ;;  %v1239_v19 = vmax.f32 %v983_v8, 0.0  ;;  %v1240_v22 = vmax.f32 %v984_v10, 0.0  ;;  %v1241_v23 = vmax.f32 %v985_v11, 0.0 }
  0x31   : > { %v1242_v24 = vmax.f32 %v986_v12, 0.0  ;;  %v1243_v25 = vmax.f32 %v987_v13, 0.0  ;;  %1492 = vst [vmem:[%s2518_s26 + $0xc0] sm:$0xff] %v1236_v16  ;;  %1493 = vst [vmem:[%s2518_s26 + $0xc8] sm:$0xff] %v1237_v17  ;;  %v1863_v28 = vunpack.c.l.bf16 %v2321_v15  ;;  %v1864_v29 = vunpack.c.h.bf16 %v2321_v15 }
  0x32   : > { %1494 = vst [vmem:[%s2518_s26 + $0xd0] sm:$0xff] %v1238_v18  ;;  %1495 = vst [vmem:[%s2518_s26 + $0xd8] sm:$0xff] %v1239_v19  ;;  %v1867_v30 = vunpack.c.l.bf16 %v2322_v20  ;;  %v1868_v31 = vunpack.c.h.bf16 %v2322_v20  ;;  %v1871_v32 = vunpack.c.l.bf16 %v2323_v21  ;;  %v1872_v33 = vunpack.c.h.bf16 %v2323_v21 }
  0x33   : > { %1496 = vst [vmem:[%s2518_s26 + $0xe0] sm:$0xff] %v1240_v22  ;;  %1497 = vst [vmem:[%s2518_s26 + $0xe8] sm:$0xff] %v1241_v23  ;;  %v725_v34 = vmul.f32 %v1859_v26, %v2491_v0  ;;  %v726_v35 = vmul.f32 %v1860_v27, %v2491_v0  ;;  %v727_v36 = vmul.f32 %v1863_v28, %v2491_v0  ;;  %v1875_v62 = vunpack.c.l.bf16 %v2324_v50 }
  0x34   : > { %1498 = vst [vmem:[%s2518_s26 + $0xf0] sm:$0xff] %v1242_v24  ;;  %1499 = vst [vmem:[%s2518_s26 + $0xf8] sm:$0xff] %v1243_v25  ;;  %v728_v37 = vmul.f32 %v1864_v29, %v2491_v0  ;;  %v729_v38 = vmul.f32 %v1867_v30, %v2491_v0  ;;  %v730_v39 = vmul.f32 %v1868_v31, %v2491_v0  ;;  %v1876_v63 = vunpack.c.h.bf16 %v2324_v50  ;;  %v2328_v24 = vld [vmem:[%s2486_s18 + $0xc0] sm:$0xff]   ;;  %v2329_v25 = vld [vmem:[%s2486_s18 + $0xc8] sm:$0xff]  }
  0x35   : > { %v731_v40 = vmul.f32 %v1871_v32, %v2491_v0  ;;  %v732_v41 = vmul.f32 %v1872_v33, %v2491_v0  ;;  %v988_v42 = vadd.f32 %v2500_v9, %v725_v34  ;;  %v989_v43 = vadd.f32 %v2500_v9, %v726_v35  ;;  %v2330_v30 = vld [vmem:[%s2486_s18 + $0xd0] sm:$0xff]   ;;  %v2331_v31 = vld [vmem:[%s2486_s18 + $0xd8] sm:$0xff]  }
  0x36   : > { %v990_v44 = vadd.f32 %v2500_v9, %v727_v36  ;;  %v991_v45 = vadd.f32 %v2500_v9, %v728_v37  ;;  %v992_v46 = vadd.f32 %v2500_v9, %v729_v38  ;;  %v993_v47 = vadd.f32 %v2500_v9, %v730_v39 }
  0x37   : > { %v994_v48 = vadd.f32 %v2500_v9, %v731_v40  ;;  %v995_v49 = vadd.f32 %v2500_v9, %v732_v41  ;;  %v1244_v52 = vmax.f32 %v988_v42, 0.0  ;;  %v1245_v53 = vmax.f32 %v989_v43, 0.0 }
  0x38   : > { %v1246_v54 = vmax.f32 %v990_v44, 0.0  ;;  %v1247_v55 = vmax.f32 %v991_v45, 0.0  ;;  %v1248_v58 = vmax.f32 %v992_v46, 0.0  ;;  %v1249_v59 = vmax.f32 %v993_v47, 0.0 }
  0x39   : > { %v1250_v60 = vmax.f32 %v994_v48, 0.0  ;;  %v1251_v61 = vmax.f32 %v995_v49, 0.0  ;;  %1500 = vst [vmem:[%s2518_s26 + $0x100] sm:$0xff] %v1244_v52  ;;  %1501 = vst [vmem:[%s2518_s26 + $0x108] sm:$0xff] %v1245_v53  ;;  %v1879_v1 = vunpack.c.l.bf16 %v2325_v51  ;;  %v1880_v2 = vunpack.c.h.bf16 %v2325_v51 }
  0x3a   : > { %1502 = vst [vmem:[%s2518_s26 + $0x110] sm:$0xff] %v1246_v54  ;;  %1503 = vst [vmem:[%s2518_s26 + $0x118] sm:$0xff] %v1247_v55  ;;  %v1883_v3 = vunpack.c.l.bf16 %v2326_v56  ;;  %v1884_v4 = vunpack.c.h.bf16 %v2326_v56  ;;  %v1887_v5 = vunpack.c.l.bf16 %v2327_v57  ;;  %v1888_v6 = vunpack.c.h.bf16 %v2327_v57 }
  0x3b   : > { %1504 = vst [vmem:[%s2518_s26 + $0x120] sm:$0xff] %v1248_v58  ;;  %1505 = vst [vmem:[%s2518_s26 + $0x128] sm:$0xff] %v1249_v59  ;;  %v733_v7 = vmul.f32 %v1875_v62, %v2491_v0  ;;  %v734_v8 = vmul.f32 %v1876_v63, %v2491_v0  ;;  %v735_v10 = vmul.f32 %v1879_v1, %v2491_v0  ;;  %v1891_v36 = vunpack.c.l.bf16 %v2328_v24 }
  0x3c   : > { %1506 = vst [vmem:[%s2518_s26 + $0x130] sm:$0xff] %v1250_v60  ;;  %1507 = vst [vmem:[%s2518_s26 + $0x138] sm:$0xff] %v1251_v61  ;;  %v736_v11 = vmul.f32 %v1880_v2, %v2491_v0  ;;  %v737_v12 = vmul.f32 %v1883_v3, %v2491_v0  ;;  %v738_v13 = vmul.f32 %v1884_v4, %v2491_v0  ;;  %v1892_v37 = vunpack.c.h.bf16 %v2328_v24  ;;  %v2332_v60 = vld [vmem:[%s2486_s18 + $0xe0] sm:$0xff]   ;;  %v2333_v61 = vld [vmem:[%s2486_s18 + $0xe8] sm:$0xff]  }
  0x3d   : > { %v739_v14 = vmul.f32 %v1887_v5, %v2491_v0  ;;  %v740_v15 = vmul.f32 %v1888_v6, %v2491_v0  ;;  %v996_v16 = vadd.f32 %v2500_v9, %v733_v7  ;;  %v997_v17 = vadd.f32 %v2500_v9, %v734_v8  ;;  %v2334_v3 = vld [vmem:[%s2486_s18 + $0xf0] sm:$0xff]   ;;  %v2335_v4 = vld [vmem:[%s2486_s18 + $0xf8] sm:$0xff]  }
  0x3e   : > { %v998_v18 = vadd.f32 %v2500_v9, %v735_v10  ;;  %v999_v19 = vadd.f32 %v2500_v9, %v736_v11  ;;  %v1000_v20 = vadd.f32 %v2500_v9, %v737_v12  ;;  %v1001_v21 = vadd.f32 %v2500_v9, %v738_v13 }
  0x3f   : > { %v1002_v22 = vadd.f32 %v2500_v9, %v739_v14  ;;  %v1003_v23 = vadd.f32 %v2500_v9, %v740_v15  ;;  %v1252_v26 = vmax.f32 %v996_v16, 0.0  ;;  %v1253_v27 = vmax.f32 %v997_v17, 0.0 }
  0x40   : > { %v1254_v28 = vmax.f32 %v998_v18, 0.0  ;;  %v1255_v29 = vmax.f32 %v999_v19, 0.0  ;;  %v1256_v32 = vmax.f32 %v1000_v20, 0.0  ;;  %v1257_v33 = vmax.f32 %v1001_v21, 0.0 }
  0x41   : > { %v1258_v34 = vmax.f32 %v1002_v22, 0.0  ;;  %v1259_v35 = vmax.f32 %v1003_v23, 0.0  ;;  %1508 = vst [vmem:[%s2518_s26 + $0x140] sm:$0xff] %v1252_v26  ;;  %1509 = vst [vmem:[%s2518_s26 + $0x148] sm:$0xff] %v1253_v27  ;;  %v1895_v38 = vunpack.c.l.bf16 %v2329_v25  ;;  %v1896_v39 = vunpack.c.h.bf16 %v2329_v25 }
  0x42   : > { %1510 = vst [vmem:[%s2518_s26 + $0x150] sm:$0xff] %v1254_v28  ;;  %1511 = vst [vmem:[%s2518_s26 + $0x158] sm:$0xff] %v1255_v29  ;;  %v1899_v40 = vunpack.c.l.bf16 %v2330_v30  ;;  %v1900_v41 = vunpack.c.h.bf16 %v2330_v30  ;;  %v1903_v42 = vunpack.c.l.bf16 %v2331_v31  ;;  %v1904_v43 = vunpack.c.h.bf16 %v2331_v31 }
  0x43   : > { %1512 = vst [vmem:[%s2518_s26 + $0x160] sm:$0xff] %v1256_v32  ;;  %1513 = vst [vmem:[%s2518_s26 + $0x168] sm:$0xff] %v1257_v33  ;;  %v741_v44 = vmul.f32 %v1891_v36, %v2491_v0  ;;  %v742_v45 = vmul.f32 %v1892_v37, %v2491_v0  ;;  %v743_v46 = vmul.f32 %v1895_v38, %v2491_v0  ;;  %v1907_v10 = vunpack.c.l.bf16 %v2332_v60 }
  0x44   : > { %1514 = vst [vmem:[%s2518_s26 + $0x170] sm:$0xff] %v1258_v34  ;;  %1515 = vst [vmem:[%s2518_s26 + $0x178] sm:$0xff] %v1259_v35  ;;  %v744_v47 = vmul.f32 %v1896_v39, %v2491_v0  ;;  %v745_v48 = vmul.f32 %v1899_v40, %v2491_v0  ;;  %v746_v49 = vmul.f32 %v1900_v41, %v2491_v0  ;;  %v1908_v11 = vunpack.c.h.bf16 %v2332_v60  ;;  %v2336_v34 = vld [vmem:[%s2486_s18 + $0x100] sm:$0xff]   ;;  %v2337_v35 = vld [vmem:[%s2486_s18 + $0x108] sm:$0xff]  }
  0x45   : > { %v747_v50 = vmul.f32 %v1903_v42, %v2491_v0  ;;  %v748_v51 = vmul.f32 %v1904_v43, %v2491_v0  ;;  %v1004_v52 = vadd.f32 %v2500_v9, %v741_v44  ;;  %v1005_v53 = vadd.f32 %v2500_v9, %v742_v45  ;;  %v2338_v40 = vld [vmem:[%s2486_s18 + $0x110] sm:$0xff]   ;;  %v2339_v41 = vld [vmem:[%s2486_s18 + $0x118] sm:$0xff]  }
  0x46   : > { %v1006_v54 = vadd.f32 %v2500_v9, %v743_v46  ;;  %v1007_v55 = vadd.f32 %v2500_v9, %v744_v47  ;;  %v1008_v56 = vadd.f32 %v2500_v9, %v745_v48  ;;  %v1009_v57 = vadd.f32 %v2500_v9, %v746_v49 }
  0x47   : > { %v1010_v58 = vadd.f32 %v2500_v9, %v747_v50  ;;  %v1011_v59 = vadd.f32 %v2500_v9, %v748_v51  ;;  %v1260_v62 = vmax.f32 %v1004_v52, 0.0  ;;  %v1261_v63 = vmax.f32 %v1005_v53, 0.0 }
  0x48   : > { %v1262_v1 = vmax.f32 %v1006_v54, 0.0  ;;  %v1263_v2 = vmax.f32 %v1007_v55, 0.0  ;;  %v1264_v5 = vmax.f32 %v1008_v56, 0.0  ;;  %v1265_v6 = vmax.f32 %v1009_v57, 0.0 }
  0x49   : > { %v1266_v7 = vmax.f32 %v1010_v58, 0.0  ;;  %v1267_v8 = vmax.f32 %v1011_v59, 0.0  ;;  %1516 = vst [vmem:[%s2518_s26 + $0x180] sm:$0xff] %v1260_v62  ;;  %1517 = vst [vmem:[%s2518_s26 + $0x188] sm:$0xff] %v1261_v63  ;;  %v1911_v12 = vunpack.c.l.bf16 %v2333_v61  ;;  %v1912_v13 = vunpack.c.h.bf16 %v2333_v61 }
  0x4a   : > { %1518 = vst [vmem:[%s2518_s26 + $0x190] sm:$0xff] %v1262_v1  ;;  %1519 = vst [vmem:[%s2518_s26 + $0x198] sm:$0xff] %v1263_v2  ;;  %v1915_v14 = vunpack.c.l.bf16 %v2334_v3  ;;  %v1916_v15 = vunpack.c.h.bf16 %v2334_v3  ;;  %v1919_v16 = vunpack.c.l.bf16 %v2335_v4  ;;  %v1920_v17 = vunpack.c.h.bf16 %v2335_v4 }
  0x4b   : > { %1520 = vst [vmem:[%s2518_s26 + $0x1a0] sm:$0xff] %v1264_v5  ;;  %1521 = vst [vmem:[%s2518_s26 + $0x1a8] sm:$0xff] %v1265_v6  ;;  %v749_v18 = vmul.f32 %v1907_v10, %v2491_v0  ;;  %v750_v19 = vmul.f32 %v1908_v11, %v2491_v0  ;;  %v751_v20 = vmul.f32 %v1911_v12, %v2491_v0  ;;  %v1923_v46 = vunpack.c.l.bf16 %v2336_v34 }
  0x4c   : > { %1522 = vst [vmem:[%s2518_s26 + $0x1b0] sm:$0xff] %v1266_v7  ;;  %1523 = vst [vmem:[%s2518_s26 + $0x1b8] sm:$0xff] %v1267_v8  ;;  %v752_v21 = vmul.f32 %v1912_v13, %v2491_v0  ;;  %v753_v22 = vmul.f32 %v1915_v14, %v2491_v0  ;;  %v754_v23 = vmul.f32 %v1916_v15, %v2491_v0  ;;  %v1924_v47 = vunpack.c.h.bf16 %v2336_v34  ;;  %v2340_v7 = vld [vmem:[%s2486_s18 + $0x120] sm:$0xff]   ;;  %v2341_v8 = vld [vmem:[%s2486_s18 + $0x128] sm:$0xff]  }
  0x4d   : > { %v755_v24 = vmul.f32 %v1919_v16, %v2491_v0  ;;  %v756_v25 = vmul.f32 %v1920_v17, %v2491_v0  ;;  %v1012_v26 = vadd.f32 %v2500_v9, %v749_v18  ;;  %v1013_v27 = vadd.f32 %v2500_v9, %v750_v19  ;;  %v2342_v14 = vld [vmem:[%s2486_s18 + $0x130] sm:$0xff]   ;;  %v2343_v15 = vld [vmem:[%s2486_s18 + $0x138] sm:$0xff]  }
  0x4e   : > { %v1014_v28 = vadd.f32 %v2500_v9, %v751_v20  ;;  %v1015_v29 = vadd.f32 %v2500_v9, %v752_v21  ;;  %v1016_v30 = vadd.f32 %v2500_v9, %v753_v22  ;;  %v1017_v31 = vadd.f32 %v2500_v9, %v754_v23 }
  0x4f   : > { %v1018_v32 = vadd.f32 %v2500_v9, %v755_v24  ;;  %v1019_v33 = vadd.f32 %v2500_v9, %v756_v25  ;;  %v1268_v36 = vmax.f32 %v1012_v26, 0.0  ;;  %v1269_v37 = vmax.f32 %v1013_v27, 0.0 }
  0x50   : > { %v1270_v38 = vmax.f32 %v1014_v28, 0.0  ;;  %v1271_v39 = vmax.f32 %v1015_v29, 0.0  ;;  %v1272_v42 = vmax.f32 %v1016_v30, 0.0  ;;  %v1273_v43 = vmax.f32 %v1017_v31, 0.0 }
  0x51   : > { %v1274_v44 = vmax.f32 %v1018_v32, 0.0  ;;  %v1275_v45 = vmax.f32 %v1019_v33, 0.0  ;;  %1524 = vst [vmem:[%s2518_s26 + $0x1c0] sm:$0xff] %v1268_v36  ;;  %1525 = vst [vmem:[%s2518_s26 + $0x1c8] sm:$0xff] %v1269_v37  ;;  %v1927_v48 = vunpack.c.l.bf16 %v2337_v35  ;;  %v1928_v49 = vunpack.c.h.bf16 %v2337_v35 }
  0x52   : > { %1526 = vst [vmem:[%s2518_s26 + $0x1d0] sm:$0xff] %v1270_v38  ;;  %1527 = vst [vmem:[%s2518_s26 + $0x1d8] sm:$0xff] %v1271_v39  ;;  %v1931_v50 = vunpack.c.l.bf16 %v2338_v40  ;;  %v1932_v51 = vunpack.c.h.bf16 %v2338_v40  ;;  %v1935_v52 = vunpack.c.l.bf16 %v2339_v41  ;;  %v1936_v53 = vunpack.c.h.bf16 %v2339_v41 }
  0x53   : > { %1528 = vst [vmem:[%s2518_s26 + $0x1e0] sm:$0xff] %v1272_v42  ;;  %1529 = vst [vmem:[%s2518_s26 + $0x1e8] sm:$0xff] %v1273_v43  ;;  %v757_v54 = vmul.f32 %v1923_v46, %v2491_v0  ;;  %v758_v55 = vmul.f32 %v1924_v47, %v2491_v0  ;;  %v759_v56 = vmul.f32 %v1927_v48, %v2491_v0  ;;  %v1939_v20 = vunpack.c.l.bf16 %v2340_v7 }
  0x54   : > { %1530 = vst [vmem:[%s2518_s26 + $0x1f0] sm:$0xff] %v1274_v44  ;;  %1531 = vst [vmem:[%s2518_s26 + $0x1f8] sm:$0xff] %v1275_v45  ;;  %v760_v57 = vmul.f32 %v1928_v49, %v2491_v0  ;;  %v761_v58 = vmul.f32 %v1931_v50, %v2491_v0  ;;  %v762_v59 = vmul.f32 %v1932_v51, %v2491_v0  ;;  %v1940_v21 = vunpack.c.h.bf16 %v2340_v7  ;;  %v2344_v44 = vld [vmem:[%s2486_s18 + $0x140] sm:$0xff]   ;;  %v2345_v45 = vld [vmem:[%s2486_s18 + $0x148] sm:$0xff]  }
  0x55   : > { %v763_v60 = vmul.f32 %v1935_v52, %v2491_v0  ;;  %v764_v61 = vmul.f32 %v1936_v53, %v2491_v0  ;;  %v1020_v62 = vadd.f32 %v2500_v9, %v757_v54  ;;  %v1021_v63 = vadd.f32 %v2500_v9, %v758_v55  ;;  %v2346_v50 = vld [vmem:[%s2486_s18 + $0x150] sm:$0xff]   ;;  %v2347_v51 = vld [vmem:[%s2486_s18 + $0x158] sm:$0xff]  }
  0x56   : > { %v1022_v1 = vadd.f32 %v2500_v9, %v759_v56  ;;  %v1023_v2 = vadd.f32 %v2500_v9, %v760_v57  ;;  %v1024_v3 = vadd.f32 %v2500_v9, %v761_v58  ;;  %v1025_v4 = vadd.f32 %v2500_v9, %v762_v59 }
  0x57   : > { %v1026_v5 = vadd.f32 %v2500_v9, %v763_v60  ;;  %v1027_v6 = vadd.f32 %v2500_v9, %v764_v61  ;;  %v1276_v10 = vmax.f32 %v1020_v62, 0.0  ;;  %v1277_v11 = vmax.f32 %v1021_v63, 0.0 }
  0x58   : > { %v1278_v12 = vmax.f32 %v1022_v1, 0.0  ;;  %v1279_v13 = vmax.f32 %v1023_v2, 0.0  ;;  %v1280_v16 = vmax.f32 %v1024_v3, 0.0  ;;  %v1281_v17 = vmax.f32 %v1025_v4, 0.0 }
  0x59   : > { %v1282_v18 = vmax.f32 %v1026_v5, 0.0  ;;  %v1283_v19 = vmax.f32 %v1027_v6, 0.0  ;;  %1532 = vst [vmem:[%s2518_s26 + $0x200] sm:$0xff] %v1276_v10  ;;  %1533 = vst [vmem:[%s2518_s26 + $0x208] sm:$0xff] %v1277_v11  ;;  %v1943_v22 = vunpack.c.l.bf16 %v2341_v8  ;;  %v1944_v23 = vunpack.c.h.bf16 %v2341_v8 }
  0x5a   : > { %1534 = vst [vmem:[%s2518_s26 + $0x210] sm:$0xff] %v1278_v12  ;;  %1535 = vst [vmem:[%s2518_s26 + $0x218] sm:$0xff] %v1279_v13  ;;  %v1947_v24 = vunpack.c.l.bf16 %v2342_v14  ;;  %v1948_v25 = vunpack.c.h.bf16 %v2342_v14  ;;  %v1951_v26 = vunpack.c.l.bf16 %v2343_v15  ;;  %v1952_v27 = vunpack.c.h.bf16 %v2343_v15 }
  0x5b   : > { %1536 = vst [vmem:[%s2518_s26 + $0x220] sm:$0xff] %v1280_v16  ;;  %1537 = vst [vmem:[%s2518_s26 + $0x228] sm:$0xff] %v1281_v17  ;;  %v765_v28 = vmul.f32 %v1939_v20, %v2491_v0  ;;  %v766_v29 = vmul.f32 %v1940_v21, %v2491_v0  ;;  %v767_v30 = vmul.f32 %v1943_v22, %v2491_v0  ;;  %v1955_v56 = vunpack.c.l.bf16 %v2344_v44 }
  0x5c   : > { %1538 = vst [vmem:[%s2518_s26 + $0x230] sm:$0xff] %v1282_v18  ;;  %1539 = vst [vmem:[%s2518_s26 + $0x238] sm:$0xff] %v1283_v19  ;;  %v768_v31 = vmul.f32 %v1944_v23, %v2491_v0  ;;  %v769_v32 = vmul.f32 %v1947_v24, %v2491_v0  ;;  %v770_v33 = vmul.f32 %v1948_v25, %v2491_v0  ;;  %v1956_v57 = vunpack.c.h.bf16 %v2344_v44  ;;  %v2348_v18 = vld [vmem:[%s2486_s18 + $0x160] sm:$0xff]   ;;  %v2349_v19 = vld [vmem:[%s2486_s18 + $0x168] sm:$0xff]  }
  0x5d   : > { %v771_v34 = vmul.f32 %v1951_v26, %v2491_v0  ;;  %v772_v35 = vmul.f32 %v1952_v27, %v2491_v0  ;;  %v1028_v36 = vadd.f32 %v2500_v9, %v765_v28  ;;  %v1029_v37 = vadd.f32 %v2500_v9, %v766_v29  ;;  %v2350_v24 = vld [vmem:[%s2486_s18 + $0x170] sm:$0xff]   ;;  %v2351_v25 = vld [vmem:[%s2486_s18 + $0x178] sm:$0xff]  }
  0x5e   : > { %v1030_v38 = vadd.f32 %v2500_v9, %v767_v30  ;;  %v1031_v39 = vadd.f32 %v2500_v9, %v768_v31  ;;  %v1032_v40 = vadd.f32 %v2500_v9, %v769_v32  ;;  %v1033_v41 = vadd.f32 %v2500_v9, %v770_v33 }
  0x5f   : > { %v1034_v42 = vadd.f32 %v2500_v9, %v771_v34  ;;  %v1035_v43 = vadd.f32 %v2500_v9, %v772_v35  ;;  %v1284_v46 = vmax.f32 %v1028_v36, 0.0  ;;  %v1285_v47 = vmax.f32 %v1029_v37, 0.0 }
  0x60   : > { %v1286_v48 = vmax.f32 %v1030_v38, 0.0  ;;  %v1287_v49 = vmax.f32 %v1031_v39, 0.0  ;;  %v1288_v52 = vmax.f32 %v1032_v40, 0.0  ;;  %v1289_v53 = vmax.f32 %v1033_v41, 0.0 }
  0x61   : > { %v1290_v54 = vmax.f32 %v1034_v42, 0.0  ;;  %v1291_v55 = vmax.f32 %v1035_v43, 0.0  ;;  %1540 = vst [vmem:[%s2518_s26 + $0x240] sm:$0xff] %v1284_v46  ;;  %1541 = vst [vmem:[%s2518_s26 + $0x248] sm:$0xff] %v1285_v47  ;;  %v1959_v58 = vunpack.c.l.bf16 %v2345_v45  ;;  %v1960_v59 = vunpack.c.h.bf16 %v2345_v45 }
  0x62   : > { %1542 = vst [vmem:[%s2518_s26 + $0x250] sm:$0xff] %v1286_v48  ;;  %1543 = vst [vmem:[%s2518_s26 + $0x258] sm:$0xff] %v1287_v49  ;;  %v1963_v60 = vunpack.c.l.bf16 %v2346_v50  ;;  %v1964_v61 = vunpack.c.h.bf16 %v2346_v50  ;;  %v1967_v62 = vunpack.c.l.bf16 %v2347_v51  ;;  %v1968_v63 = vunpack.c.h.bf16 %v2347_v51 }
  0x63   : > { %1544 = vst [vmem:[%s2518_s26 + $0x260] sm:$0xff] %v1288_v52  ;;  %1545 = vst [vmem:[%s2518_s26 + $0x268] sm:$0xff] %v1289_v53  ;;  %v773_v1 = vmul.f32 %v1955_v56, %v2491_v0  ;;  %v774_v2 = vmul.f32 %v1956_v57, %v2491_v0  ;;  %v775_v3 = vmul.f32 %v1959_v58, %v2491_v0  ;;  %v1971_v30 = vunpack.c.l.bf16 %v2348_v18  ;;  %v2352_v53 = vld [vmem:[%s2486_s18 + $0x180] sm:$0xff]  }
  0x64   : > { %1546 = vst [vmem:[%s2518_s26 + $0x270] sm:$0xff] %v1290_v54  ;;  %1547 = vst [vmem:[%s2518_s26 + $0x278] sm:$0xff] %v1291_v55  ;;  %v776_v4 = vmul.f32 %v1960_v59, %v2491_v0  ;;  %v777_v5 = vmul.f32 %v1963_v60, %v2491_v0  ;;  %v778_v6 = vmul.f32 %v1964_v61, %v2491_v0  ;;  %v1972_v31 = vunpack.c.h.bf16 %v2348_v18  ;;  %v2353_v54 = vld [vmem:[%s2486_s18 + $0x188] sm:$0xff]   ;;  %v2354_v59 = vld [vmem:[%s2486_s18 + $0x190] sm:$0xff]  }
  0x65   : > { %v779_v7 = vmul.f32 %v1967_v62, %v2491_v0  ;;  %v780_v8 = vmul.f32 %v1968_v63, %v2491_v0  ;;  %v1036_v10 = vadd.f32 %v2500_v9, %v773_v1  ;;  %v1037_v11 = vadd.f32 %v2500_v9, %v774_v2  ;;  %v2355_v60 = vld [vmem:[%s2486_s18 + $0x198] sm:$0xff]  }
  0x66   : > { %v1038_v12 = vadd.f32 %v2500_v9, %v775_v3  ;;  %v1039_v13 = vadd.f32 %v2500_v9, %v776_v4  ;;  %v1040_v14 = vadd.f32 %v2500_v9, %v777_v5  ;;  %v1041_v15 = vadd.f32 %v2500_v9, %v778_v6 }
  0x67   : > { %v1042_v16 = vadd.f32 %v2500_v9, %v779_v7  ;;  %v1043_v17 = vadd.f32 %v2500_v9, %v780_v8  ;;  %v1292_v20 = vmax.f32 %v1036_v10, 0.0  ;;  %v1293_v21 = vmax.f32 %v1037_v11, 0.0  ;;  %v2847_v10 = vld [vmem:[%s3424_s1] ss:$0 sm:$0xff] }
  0x68   : > { %v1294_v22 = vmax.f32 %v1038_v12, 0.0  ;;  %v1295_v23 = vmax.f32 %v1039_v13, 0.0  ;;  %v1296_v26 = vmax.f32 %v1040_v14, 0.0  ;;  %v1297_v27 = vmax.f32 %v1041_v15, 0.0 }
  0x69   : > { %v1298_v28 = vmax.f32 %v1042_v16, 0.0  ;;  %v1299_v29 = vmax.f32 %v1043_v17, 0.0  ;;  %1548 = vst [vmem:[%s2518_s26 + $0x280] sm:$0xff] %v1292_v20  ;;  %1549 = vst [vmem:[%s2518_s26 + $0x288] sm:$0xff] %v1293_v21  ;;  %v1975_v32 = vunpack.c.l.bf16 %v2349_v19  ;;  %v1976_v33 = vunpack.c.h.bf16 %v2349_v19  ;;  %v2860_v19 = vld [vmem:[%s3425_s2] ss:$0 sm:$0xff] }
  0x6a   : > { %1550 = vst [vmem:[%s2518_s26 + $0x290] sm:$0xff] %v1294_v22  ;;  %1551 = vst [vmem:[%s2518_s26 + $0x298] sm:$0xff] %v1295_v23  ;;  %v1979_v34 = vunpack.c.l.bf16 %v2350_v24  ;;  %v1980_v35 = vunpack.c.h.bf16 %v2350_v24  ;;  %v1983_v36 = vunpack.c.l.bf16 %v2351_v25  ;;  %v1984_v37 = vunpack.c.h.bf16 %v2351_v25 }
  0x6b   : > { %1552 = vst [vmem:[%s2518_s26 + $0x2a0] sm:$0xff] %v1296_v26  ;;  %1553 = vst [vmem:[%s2518_s26 + $0x2a8] sm:$0xff] %v1297_v27  ;;  %v781_v38 = vmul.f32 %v1971_v30, %v2491_v0  ;;  %v782_v39 = vmul.f32 %v1972_v31, %v2491_v0  ;;  %v783_v40 = vmul.f32 %v1975_v32, %v2491_v0  ;;  %v1988_v2 = vunpack.c.h.bf16 %v2352_v53 }
  0x6c   : > { %1554 = vst [vmem:[%s2518_s26 + $0x2b0] sm:$0xff] %v1298_v28  ;;  %1555 = vst [vmem:[%s2518_s26 + $0x2b8] sm:$0xff] %v1299_v29  ;;  %v784_v41 = vmul.f32 %v1976_v33, %v2491_v0  ;;  %v785_v42 = vmul.f32 %v1979_v34, %v2491_v0  ;;  %v786_v43 = vmul.f32 %v1980_v35, %v2491_v0  ;;  %v1991_v3 = vunpack.c.l.bf16 %v2353_v54  ;;  %v2356_v28 = vld [vmem:[%s2486_s18 + $0x1a0] sm:$0xff]   ;;  %v2357_v29 = vld [vmem:[%s2486_s18 + $0x1a8] sm:$0xff]  }
  0x6d   : > { %v787_v44 = vmul.f32 %v1983_v36, %v2491_v0  ;;  %v788_v45 = vmul.f32 %v1984_v37, %v2491_v0  ;;  %v1044_v46 = vadd.f32 %v2500_v9, %v781_v38  ;;  %v1045_v47 = vadd.f32 %v2500_v9, %v782_v39  ;;  %v2358_v34 = vld [vmem:[%s2486_s18 + $0x1b0] sm:$0xff]   ;;  %v2359_v35 = vld [vmem:[%s2486_s18 + $0x1b8] sm:$0xff]  }
  0x6e   : > { %v1046_v48 = vadd.f32 %v2500_v9, %v783_v40  ;;  %v1047_v49 = vadd.f32 %v2500_v9, %v784_v41  ;;  %v1048_v50 = vadd.f32 %v2500_v9, %v785_v42  ;;  %v1049_v51 = vadd.f32 %v2500_v9, %v786_v43 }
  0x6f   : > { %v1050_v52 = vadd.f32 %v2500_v9, %v787_v44  ;;  %v1051_v0 = vadd.f32 %v2500_v9, %v788_v45  ;;  %v1300_v55 = vmax.f32 %v1044_v46, 0.0  ;;  %v1301_v56 = vmax.f32 %v1045_v47, 0.0 }
  0x70   : > { %v1302_v57 = vmax.f32 %v1046_v48, 0.0  ;;  %v1303_v58 = vmax.f32 %v1047_v49, 0.0  ;;  %v1304_v61 = vmax.f32 %v1048_v50, 0.0  ;;  %v1305_v62 = vmax.f32 %v1049_v51, 0.0 }
  0x71   : > { %v1306_v63 = vmax.f32 %v1050_v52, 0.0  ;;  %v1307_v1 = vmax.f32 %v1051_v0, 0.0  ;;  %1556 = vst [vmem:[%s2518_s26 + $0x2c0] sm:$0xff] %v1300_v55  ;;  %1557 = vst [vmem:[%s2518_s26 + $0x2c8] sm:$0xff] %v1301_v56  ;;  %v1987_v9 = vunpack.c.l.bf16 %v2352_v53  ;;  %v1992_v4 = vunpack.c.h.bf16 %v2353_v54 }
  0x72   : > { %1558 = vst [vmem:[%s2518_s26 + $0x2d0] sm:$0xff] %v1302_v57  ;;  %1559 = vst [vmem:[%s2518_s26 + $0x2d8] sm:$0xff] %v1303_v58  ;;  %v1995_v5 = vunpack.c.l.bf16 %v2354_v59  ;;  %v1996_v6 = vunpack.c.h.bf16 %v2354_v59  ;;  %v1999_v7 = vunpack.c.l.bf16 %v2355_v60  ;;  %v2000_v8 = vunpack.c.h.bf16 %v2355_v60 }
  0x73   : > { %1560 = vst [vmem:[%s2518_s26 + $0x2e0] sm:$0xff] %v1304_v61  ;;  %1561 = vst [vmem:[%s2518_s26 + $0x2e8] sm:$0xff] %v1305_v62  ;;  %v789_v11 = vmul.f32 %v2847_v10, %v1987_v9  ;;  %v790_v12 = vmul.f32 %v2847_v10, %v1988_v2  ;;  %v791_v13 = vmul.f32 %v2847_v10, %v1991_v3  ;;  %v2003_v40 = vunpack.c.l.bf16 %v2356_v28 }
  0x74   : > { %1562 = vst [vmem:[%s2518_s26 + $0x2f0] sm:$0xff] %v1306_v63  ;;  %1563 = vst [vmem:[%s2518_s26 + $0x2f8] sm:$0xff] %v1307_v1  ;;  %v792_v14 = vmul.f32 %v2847_v10, %v1992_v4  ;;  %v793_v15 = vmul.f32 %v2847_v10, %v1995_v5  ;;  %v794_v16 = vmul.f32 %v2847_v10, %v1996_v6  ;;  %v2004_v41 = vunpack.c.h.bf16 %v2356_v28  ;;  %v2360_v63 = vld [vmem:[%s2486_s18 + $0x1c0] sm:$0xff]   ;;  %v2361_v1 = vld [vmem:[%s2486_s18 + $0x1c8] sm:$0xff]  }
  0x75   : > { %v795_v17 = vmul.f32 %v2847_v10, %v1999_v7  ;;  %v796_v18 = vmul.f32 %v2847_v10, %v2000_v8  ;;  %v1052_v20 = vadd.f32 %v2860_v19, %v789_v11  ;;  %v1053_v21 = vadd.f32 %v2860_v19, %v790_v12  ;;  %v2362_v5 = vld [vmem:[%s2486_s18 + $0x1d0] sm:$0xff]   ;;  %v2363_v6 = vld [vmem:[%s2486_s18 + $0x1d8] sm:$0xff]  }
  0x76   : > { %v1054_v22 = vadd.f32 %v2860_v19, %v791_v13  ;;  %v1055_v23 = vadd.f32 %v2860_v19, %v792_v14  ;;  %v1056_v24 = vadd.f32 %v2860_v19, %v793_v15  ;;  %v1057_v25 = vadd.f32 %v2860_v19, %v794_v16 }
  0x77   : > { %v1058_v26 = vadd.f32 %v2860_v19, %v795_v17  ;;  %v1059_v27 = vadd.f32 %v2860_v19, %v796_v18  ;;  %v1308_v30 = vmax.f32 %v1052_v20, 0.0  ;;  %v1309_v31 = vmax.f32 %v1053_v21, 0.0 }
  0x78   : > { %v1310_v32 = vmax.f32 %v1054_v22, 0.0  ;;  %v1311_v33 = vmax.f32 %v1055_v23, 0.0  ;;  %v1312_v36 = vmax.f32 %v1056_v24, 0.0  ;;  %v1313_v37 = vmax.f32 %v1057_v25, 0.0 }
  0x79   : > { %v1314_v38 = vmax.f32 %v1058_v26, 0.0  ;;  %v1315_v39 = vmax.f32 %v1059_v27, 0.0  ;;  %1564 = vst [vmem:[%s2518_s26 + $0x300] sm:$0xff] %v1308_v30  ;;  %1565 = vst [vmem:[%s2518_s26 + $0x308] sm:$0xff] %v1309_v31  ;;  %v2007_v42 = vunpack.c.l.bf16 %v2357_v29  ;;  %v2008_v43 = vunpack.c.h.bf16 %v2357_v29 }
  0x7a   : > { %1566 = vst [vmem:[%s2518_s26 + $0x310] sm:$0xff] %v1310_v32  ;;  %1567 = vst [vmem:[%s2518_s26 + $0x318] sm:$0xff] %v1311_v33  ;;  %v2011_v44 = vunpack.c.l.bf16 %v2358_v34  ;;  %v2012_v45 = vunpack.c.h.bf16 %v2358_v34  ;;  %v2015_v46 = vunpack.c.l.bf16 %v2359_v35  ;;  %v2016_v47 = vunpack.c.h.bf16 %v2359_v35 }
  0x7b   : > { %1568 = vst [vmem:[%s2518_s26 + $0x320] sm:$0xff] %v1312_v36  ;;  %1569 = vst [vmem:[%s2518_s26 + $0x328] sm:$0xff] %v1313_v37  ;;  %v797_v48 = vmul.f32 %v2847_v10, %v2003_v40  ;;  %v798_v49 = vmul.f32 %v2847_v10, %v2004_v41  ;;  %v799_v50 = vmul.f32 %v2847_v10, %v2007_v42  ;;  %v2019_v13 = vunpack.c.l.bf16 %v2360_v63 }
  0x7c   : > { %1570 = vst [vmem:[%s2518_s26 + $0x330] sm:$0xff] %v1314_v38  ;;  %1571 = vst [vmem:[%s2518_s26 + $0x338] sm:$0xff] %v1315_v39  ;;  %v800_v51 = vmul.f32 %v2847_v10, %v2008_v43  ;;  %v801_v52 = vmul.f32 %v2847_v10, %v2011_v44  ;;  %v802_v0 = vmul.f32 %v2847_v10, %v2012_v45  ;;  %v2020_v14 = vunpack.c.h.bf16 %v2360_v63  ;;  %v2364_v38 = vld [vmem:[%s2486_s18 + $0x1e0] sm:$0xff]   ;;  %v2365_v39 = vld [vmem:[%s2486_s18 + $0x1e8] sm:$0xff]  }
  0x7d   : > { %v803_v53 = vmul.f32 %v2847_v10, %v2015_v46  ;;  %v804_v54 = vmul.f32 %v2847_v10, %v2016_v47  ;;  %v1060_v55 = vadd.f32 %v2860_v19, %v797_v48  ;;  %v1061_v56 = vadd.f32 %v2860_v19, %v798_v49  ;;  %v2366_v44 = vld [vmem:[%s2486_s18 + $0x1f0] sm:$0xff]   ;;  %v2367_v45 = vld [vmem:[%s2486_s18 + $0x1f8] sm:$0xff]  }
  0x7e   : > { %v1062_v57 = vadd.f32 %v2860_v19, %v799_v50  ;;  %v1063_v58 = vadd.f32 %v2860_v19, %v800_v51  ;;  %v1064_v59 = vadd.f32 %v2860_v19, %v801_v52  ;;  %v1065_v60 = vadd.f32 %v2860_v19, %v802_v0 }
  0x7f   : > { %v1066_v61 = vadd.f32 %v2860_v19, %v803_v53  ;;  %v1067_v62 = vadd.f32 %v2860_v19, %v804_v54  ;;  %v1316_v9 = vmax.f32 %v1060_v55, 0.0  ;;  %v1317_v2 = vmax.f32 %v1061_v56, 0.0 }
  0x80   : > { %v1318_v3 = vmax.f32 %v1062_v57, 0.0  ;;  %v1319_v4 = vmax.f32 %v1063_v58, 0.0  ;;  %v1320_v7 = vmax.f32 %v1064_v59, 0.0  ;;  %v1321_v8 = vmax.f32 %v1065_v60, 0.0 }
  0x81   : > { %v1322_v11 = vmax.f32 %v1066_v61, 0.0  ;;  %v1323_v12 = vmax.f32 %v1067_v62, 0.0  ;;  %1572 = vst [vmem:[%s2518_s26 + $0x340] sm:$0xff] %v1316_v9  ;;  %1573 = vst [vmem:[%s2518_s26 + $0x348] sm:$0xff] %v1317_v2  ;;  %v2023_v15 = vunpack.c.l.bf16 %v2361_v1  ;;  %v2024_v16 = vunpack.c.h.bf16 %v2361_v1 }
  0x82   : > { %1574 = vst [vmem:[%s2518_s26 + $0x350] sm:$0xff] %v1318_v3  ;;  %1575 = vst [vmem:[%s2518_s26 + $0x358] sm:$0xff] %v1319_v4  ;;  %v2027_v17 = vunpack.c.l.bf16 %v2362_v5  ;;  %v2028_v18 = vunpack.c.h.bf16 %v2362_v5  ;;  %v2031_v20 = vunpack.c.l.bf16 %v2363_v6  ;;  %v2032_v21 = vunpack.c.h.bf16 %v2363_v6 }
  0x83   : > { %1576 = vst [vmem:[%s2518_s26 + $0x360] sm:$0xff] %v1320_v7  ;;  %1577 = vst [vmem:[%s2518_s26 + $0x368] sm:$0xff] %v1321_v8  ;;  %v805_v22 = vmul.f32 %v2847_v10, %v2019_v13  ;;  %v806_v23 = vmul.f32 %v2847_v10, %v2020_v14  ;;  %v807_v24 = vmul.f32 %v2847_v10, %v2023_v15  ;;  %v2035_v50 = vunpack.c.l.bf16 %v2364_v38 }
  0x84   : > { %1578 = vst [vmem:[%s2518_s26 + $0x370] sm:$0xff] %v1322_v11  ;;  %1579 = vst [vmem:[%s2518_s26 + $0x378] sm:$0xff] %v1323_v12  ;;  %v808_v25 = vmul.f32 %v2847_v10, %v2024_v16  ;;  %v809_v26 = vmul.f32 %v2847_v10, %v2027_v17  ;;  %v810_v27 = vmul.f32 %v2847_v10, %v2028_v18  ;;  %v2036_v51 = vunpack.c.h.bf16 %v2364_v38  ;;  %v2368_v11 = vld [vmem:[%s2486_s18 + $0x200] sm:$0xff]   ;;  %v2369_v12 = vld [vmem:[%s2486_s18 + $0x208] sm:$0xff]  }
  0x85   : > { %v811_v28 = vmul.f32 %v2847_v10, %v2031_v20  ;;  %v812_v29 = vmul.f32 %v2847_v10, %v2032_v21  ;;  %v1068_v30 = vadd.f32 %v2860_v19, %v805_v22  ;;  %v1069_v31 = vadd.f32 %v2860_v19, %v806_v23  ;;  %v2370_v17 = vld [vmem:[%s2486_s18 + $0x210] sm:$0xff]   ;;  %v2371_v18 = vld [vmem:[%s2486_s18 + $0x218] sm:$0xff]  }
  0x86   : > { %v1070_v32 = vadd.f32 %v2860_v19, %v807_v24  ;;  %v1071_v33 = vadd.f32 %v2860_v19, %v808_v25  ;;  %v1072_v34 = vadd.f32 %v2860_v19, %v809_v26  ;;  %v1073_v35 = vadd.f32 %v2860_v19, %v810_v27 }
  0x87   : > { %v1074_v36 = vadd.f32 %v2860_v19, %v811_v28  ;;  %v1075_v37 = vadd.f32 %v2860_v19, %v812_v29  ;;  %v1324_v40 = vmax.f32 %v1068_v30, 0.0  ;;  %v1325_v41 = vmax.f32 %v1069_v31, 0.0 }
  0x88   : > { %v1326_v42 = vmax.f32 %v1070_v32, 0.0  ;;  %v1327_v43 = vmax.f32 %v1071_v33, 0.0  ;;  %v1328_v46 = vmax.f32 %v1072_v34, 0.0  ;;  %v1329_v47 = vmax.f32 %v1073_v35, 0.0 }
  0x89   : > { %v1330_v48 = vmax.f32 %v1074_v36, 0.0  ;;  %v1331_v49 = vmax.f32 %v1075_v37, 0.0  ;;  %1580 = vst [vmem:[%s2518_s26 + $0x380] sm:$0xff] %v1324_v40  ;;  %1581 = vst [vmem:[%s2518_s26 + $0x388] sm:$0xff] %v1325_v41  ;;  %v2039_v52 = vunpack.c.l.bf16 %v2365_v39  ;;  %v2040_v0 = vunpack.c.h.bf16 %v2365_v39 }
  0x8a   : > { %1582 = vst [vmem:[%s2518_s26 + $0x390] sm:$0xff] %v1326_v42  ;;  %1583 = vst [vmem:[%s2518_s26 + $0x398] sm:$0xff] %v1327_v43  ;;  %v2043_v53 = vunpack.c.l.bf16 %v2366_v44  ;;  %v2044_v54 = vunpack.c.h.bf16 %v2366_v44  ;;  %v2047_v55 = vunpack.c.l.bf16 %v2367_v45  ;;  %v2048_v56 = vunpack.c.h.bf16 %v2367_v45 }
  0x8b   : > { %1584 = vst [vmem:[%s2518_s26 + $0x3a0] sm:$0xff] %v1328_v46  ;;  %1585 = vst [vmem:[%s2518_s26 + $0x3a8] sm:$0xff] %v1329_v47  ;;  %v813_v57 = vmul.f32 %v2847_v10, %v2035_v50  ;;  %v814_v58 = vmul.f32 %v2847_v10, %v2036_v51  ;;  %v815_v59 = vmul.f32 %v2847_v10, %v2039_v52  ;;  %v2051_v24 = vunpack.c.l.bf16 %v2368_v11 }
  0x8c   : > { %1586 = vst [vmem:[%s2518_s26 + $0x3b0] sm:$0xff] %v1330_v48  ;;  %1587 = vst [vmem:[%s2518_s26 + $0x3b8] sm:$0xff] %v1331_v49  ;;  %v816_v60 = vmul.f32 %v2847_v10, %v2040_v0  ;;  %v817_v61 = vmul.f32 %v2847_v10, %v2043_v53  ;;  %v818_v62 = vmul.f32 %v2847_v10, %v2044_v54  ;;  %v2052_v25 = vunpack.c.h.bf16 %v2368_v11  ;;  %v2372_v48 = vld [vmem:[%s2486_s18 + $0x220] sm:$0xff]   ;;  %v2373_v49 = vld [vmem:[%s2486_s18 + $0x228] sm:$0xff]  }
  0x8d   : > { %v819_v63 = vmul.f32 %v2847_v10, %v2047_v55  ;;  %v820_v1 = vmul.f32 %v2847_v10, %v2048_v56  ;;  %v1076_v9 = vadd.f32 %v2860_v19, %v813_v57  ;;  %v1077_v2 = vadd.f32 %v2860_v19, %v814_v58  ;;  %v2374_v53 = vld [vmem:[%s2486_s18 + $0x230] sm:$0xff]   ;;  %v2375_v54 = vld [vmem:[%s2486_s18 + $0x238] sm:$0xff]  }
  0x8e   : > { %v1078_v3 = vadd.f32 %v2860_v19, %v815_v59  ;;  %v1079_v4 = vadd.f32 %v2860_v19, %v816_v60  ;;  %v1080_v5 = vadd.f32 %v2860_v19, %v817_v61  ;;  %v1081_v6 = vadd.f32 %v2860_v19, %v818_v62 }
  0x8f   : > { %v1082_v7 = vadd.f32 %v2860_v19, %v819_v63  ;;  %v1083_v8 = vadd.f32 %v2860_v19, %v820_v1  ;;  %v1332_v13 = vmax.f32 %v1076_v9, 0.0  ;;  %v1333_v14 = vmax.f32 %v1077_v2, 0.0 }
  0x90   : > { %v1334_v15 = vmax.f32 %v1078_v3, 0.0  ;;  %v1335_v16 = vmax.f32 %v1079_v4, 0.0  ;;  %v1336_v20 = vmax.f32 %v1080_v5, 0.0  ;;  %v1337_v21 = vmax.f32 %v1081_v6, 0.0 }
  0x91   : > { %v1338_v22 = vmax.f32 %v1082_v7, 0.0  ;;  %v1339_v23 = vmax.f32 %v1083_v8, 0.0  ;;  %1588 = vst [vmem:[%s2518_s26 + $0x3c0] sm:$0xff] %v1332_v13  ;;  %1589 = vst [vmem:[%s2518_s26 + $0x3c8] sm:$0xff] %v1333_v14  ;;  %v2055_v26 = vunpack.c.l.bf16 %v2369_v12  ;;  %v2056_v27 = vunpack.c.h.bf16 %v2369_v12 }
  0x92   : > { %1590 = vst [vmem:[%s2518_s26 + $0x3d0] sm:$0xff] %v1334_v15  ;;  %1591 = vst [vmem:[%s2518_s26 + $0x3d8] sm:$0xff] %v1335_v16  ;;  %v2059_v28 = vunpack.c.l.bf16 %v2370_v17  ;;  %v2060_v29 = vunpack.c.h.bf16 %v2370_v17  ;;  %v2063_v30 = vunpack.c.l.bf16 %v2371_v18  ;;  %v2064_v31 = vunpack.c.h.bf16 %v2371_v18 }
  0x93   : > { %1592 = vst [vmem:[%s2518_s26 + $0x3e0] sm:$0xff] %v1336_v20  ;;  %1593 = vst [vmem:[%s2518_s26 + $0x3e8] sm:$0xff] %v1337_v21  ;;  %v821_v32 = vmul.f32 %v2847_v10, %v2051_v24  ;;  %v822_v33 = vmul.f32 %v2847_v10, %v2052_v25  ;;  %v823_v34 = vmul.f32 %v2847_v10, %v2055_v26  ;;  %v2067_v59 = vunpack.c.l.bf16 %v2372_v48 }
  0x94   : > { %1594 = vst [vmem:[%s2518_s26 + $0x3f0] sm:$0xff] %v1338_v22  ;;  %1595 = vst [vmem:[%s2518_s26 + $0x3f8] sm:$0xff] %v1339_v23  ;;  %v824_v35 = vmul.f32 %v2847_v10, %v2056_v27  ;;  %v825_v36 = vmul.f32 %v2847_v10, %v2059_v28  ;;  %v826_v37 = vmul.f32 %v2847_v10, %v2060_v29  ;;  %v2068_v60 = vunpack.c.h.bf16 %v2372_v48  ;;  %v2376_v22 = vld [vmem:[%s2486_s18 + $0x240] sm:$0xff]   ;;  %v2377_v23 = vld [vmem:[%s2486_s18 + $0x248] sm:$0xff]  }
  0x95   : > { %v827_v38 = vmul.f32 %v2847_v10, %v2063_v30  ;;  %v828_v39 = vmul.f32 %v2847_v10, %v2064_v31  ;;  %v1084_v40 = vadd.f32 %v2860_v19, %v821_v32  ;;  %v1085_v41 = vadd.f32 %v2860_v19, %v822_v33  ;;  %v2378_v28 = vld [vmem:[%s2486_s18 + $0x250] sm:$0xff]   ;;  %v2379_v29 = vld [vmem:[%s2486_s18 + $0x258] sm:$0xff]  }
  0x96   : > { %v1086_v42 = vadd.f32 %v2860_v19, %v823_v34  ;;  %v1087_v43 = vadd.f32 %v2860_v19, %v824_v35  ;;  %v1088_v44 = vadd.f32 %v2860_v19, %v825_v36  ;;  %v1089_v45 = vadd.f32 %v2860_v19, %v826_v37 }
  0x97   : > { %v1090_v46 = vadd.f32 %v2860_v19, %v827_v38  ;;  %v1091_v47 = vadd.f32 %v2860_v19, %v828_v39  ;;  %v1340_v50 = vmax.f32 %v1084_v40, 0.0  ;;  %v1341_v51 = vmax.f32 %v1085_v41, 0.0 }
  0x98   : > { %v1342_v52 = vmax.f32 %v1086_v42, 0.0  ;;  %v1343_v0 = vmax.f32 %v1087_v43, 0.0  ;;  %v1344_v55 = vmax.f32 %v1088_v44, 0.0  ;;  %v1345_v56 = vmax.f32 %v1089_v45, 0.0 }
  0x99   : > { %v1346_v57 = vmax.f32 %v1090_v46, 0.0  ;;  %v1347_v58 = vmax.f32 %v1091_v47, 0.0  ;;  %1596 = vst [vmem:[%s2518_s26 + $0x400] sm:$0xff] %v1340_v50  ;;  %1597 = vst [vmem:[%s2518_s26 + $0x408] sm:$0xff] %v1341_v51  ;;  %v2071_v61 = vunpack.c.l.bf16 %v2373_v49  ;;  %v2072_v62 = vunpack.c.h.bf16 %v2373_v49 }
  0x9a   : > { %1598 = vst [vmem:[%s2518_s26 + $0x410] sm:$0xff] %v1342_v52  ;;  %1599 = vst [vmem:[%s2518_s26 + $0x418] sm:$0xff] %v1343_v0  ;;  %v2075_v63 = vunpack.c.l.bf16 %v2374_v53  ;;  %v2076_v1 = vunpack.c.h.bf16 %v2374_v53  ;;  %v2079_v9 = vunpack.c.l.bf16 %v2375_v54  ;;  %v2080_v2 = vunpack.c.h.bf16 %v2375_v54 }
  0x9b   : > { %1600 = vst [vmem:[%s2518_s26 + $0x420] sm:$0xff] %v1344_v55  ;;  %1601 = vst [vmem:[%s2518_s26 + $0x428] sm:$0xff] %v1345_v56  ;;  %v829_v3 = vmul.f32 %v2847_v10, %v2067_v59  ;;  %v830_v4 = vmul.f32 %v2847_v10, %v2068_v60  ;;  %v831_v5 = vmul.f32 %v2847_v10, %v2071_v61  ;;  %v2083_v34 = vunpack.c.l.bf16 %v2376_v22 }
  0x9c   : > { %1602 = vst [vmem:[%s2518_s26 + $0x430] sm:$0xff] %v1346_v57  ;;  %1603 = vst [vmem:[%s2518_s26 + $0x438] sm:$0xff] %v1347_v58  ;;  %v832_v6 = vmul.f32 %v2847_v10, %v2072_v62  ;;  %v833_v7 = vmul.f32 %v2847_v10, %v2075_v63  ;;  %v834_v8 = vmul.f32 %v2847_v10, %v2076_v1  ;;  %v2084_v35 = vunpack.c.h.bf16 %v2376_v22  ;;  %v2380_v57 = vld [vmem:[%s2486_s18 + $0x260] sm:$0xff]   ;;  %v2381_v58 = vld [vmem:[%s2486_s18 + $0x268] sm:$0xff]  }
  0x9d   : > { %v835_v11 = vmul.f32 %v2847_v10, %v2079_v9  ;;  %v836_v12 = vmul.f32 %v2847_v10, %v2080_v2  ;;  %v1092_v13 = vadd.f32 %v2860_v19, %v829_v3  ;;  %v1093_v14 = vadd.f32 %v2860_v19, %v830_v4  ;;  %v2382_v63 = vld [vmem:[%s2486_s18 + $0x270] sm:$0xff]   ;;  %v2383_v1 = vld [vmem:[%s2486_s18 + $0x278] sm:$0xff]  }
  0x9e   : > { %v1094_v15 = vadd.f32 %v2860_v19, %v831_v5  ;;  %v1095_v16 = vadd.f32 %v2860_v19, %v832_v6  ;;  %v1096_v17 = vadd.f32 %v2860_v19, %v833_v7  ;;  %v1097_v18 = vadd.f32 %v2860_v19, %v834_v8 }
  0x9f   : > { %v1098_v20 = vadd.f32 %v2860_v19, %v835_v11  ;;  %v1099_v21 = vadd.f32 %v2860_v19, %v836_v12  ;;  %v1348_v24 = vmax.f32 %v1092_v13, 0.0  ;;  %v1349_v25 = vmax.f32 %v1093_v14, 0.0 }
  0xa0   : > { %v1350_v26 = vmax.f32 %v1094_v15, 0.0  ;;  %v1351_v27 = vmax.f32 %v1095_v16, 0.0  ;;  %v1352_v30 = vmax.f32 %v1096_v17, 0.0  ;;  %v1353_v31 = vmax.f32 %v1097_v18, 0.0 }
  0xa1   : > { %v1354_v32 = vmax.f32 %v1098_v20, 0.0  ;;  %v1355_v33 = vmax.f32 %v1099_v21, 0.0  ;;  %1604 = vst [vmem:[%s2518_s26 + $0x440] sm:$0xff] %v1348_v24  ;;  %1605 = vst [vmem:[%s2518_s26 + $0x448] sm:$0xff] %v1349_v25  ;;  %v2087_v36 = vunpack.c.l.bf16 %v2377_v23  ;;  %v2088_v37 = vunpack.c.h.bf16 %v2377_v23 }
  0xa2   : > { %1606 = vst [vmem:[%s2518_s26 + $0x450] sm:$0xff] %v1350_v26  ;;  %1607 = vst [vmem:[%s2518_s26 + $0x458] sm:$0xff] %v1351_v27  ;;  %v2091_v38 = vunpack.c.l.bf16 %v2378_v28  ;;  %v2092_v39 = vunpack.c.h.bf16 %v2378_v28  ;;  %v2095_v40 = vunpack.c.l.bf16 %v2379_v29  ;;  %v2096_v41 = vunpack.c.h.bf16 %v2379_v29 }
  0xa3   : > { %1608 = vst [vmem:[%s2518_s26 + $0x460] sm:$0xff] %v1352_v30  ;;  %1609 = vst [vmem:[%s2518_s26 + $0x468] sm:$0xff] %v1353_v31  ;;  %v837_v42 = vmul.f32 %v2847_v10, %v2083_v34  ;;  %v838_v43 = vmul.f32 %v2847_v10, %v2084_v35  ;;  %v839_v44 = vmul.f32 %v2847_v10, %v2087_v36  ;;  %v2099_v5 = vunpack.c.l.bf16 %v2380_v57 }
  0xa4   : > { %1610 = vst [vmem:[%s2518_s26 + $0x470] sm:$0xff] %v1354_v32  ;;  %1611 = vst [vmem:[%s2518_s26 + $0x478] sm:$0xff] %v1355_v33  ;;  %v840_v45 = vmul.f32 %v2847_v10, %v2088_v37  ;;  %v841_v46 = vmul.f32 %v2847_v10, %v2091_v38  ;;  %v842_v47 = vmul.f32 %v2847_v10, %v2092_v39  ;;  %v2100_v6 = vunpack.c.h.bf16 %v2380_v57  ;;  %v2384_v32 = vld [vmem:[%s2486_s18 + $0x280] sm:$0xff]   ;;  %v2385_v33 = vld [vmem:[%s2486_s18 + $0x288] sm:$0xff]  }
  0xa5   : > { %v843_v48 = vmul.f32 %v2847_v10, %v2095_v40  ;;  %v844_v49 = vmul.f32 %v2847_v10, %v2096_v41  ;;  %v1100_v50 = vadd.f32 %v2860_v19, %v837_v42  ;;  %v1101_v51 = vadd.f32 %v2860_v19, %v838_v43  ;;  %v2386_v38 = vld [vmem:[%s2486_s18 + $0x290] sm:$0xff]   ;;  %v2387_v39 = vld [vmem:[%s2486_s18 + $0x298] sm:$0xff]  }
  0xa6   : > { %v1102_v52 = vadd.f32 %v2860_v19, %v839_v44  ;;  %v1103_v0 = vadd.f32 %v2860_v19, %v840_v45  ;;  %v1104_v53 = vadd.f32 %v2860_v19, %v841_v46  ;;  %v1105_v54 = vadd.f32 %v2860_v19, %v842_v47 }
  0xa7   : > { %v1106_v55 = vadd.f32 %v2860_v19, %v843_v48  ;;  %v1107_v56 = vadd.f32 %v2860_v19, %v844_v49  ;;  %v1356_v59 = vmax.f32 %v1100_v50, 0.0  ;;  %v1357_v60 = vmax.f32 %v1101_v51, 0.0 }
  0xa8   : > { %v1358_v61 = vmax.f32 %v1102_v52, 0.0  ;;  %v1359_v62 = vmax.f32 %v1103_v0, 0.0  ;;  %v1360_v9 = vmax.f32 %v1104_v53, 0.0  ;;  %v1361_v2 = vmax.f32 %v1105_v54, 0.0 }
  0xa9   : > { %v1362_v3 = vmax.f32 %v1106_v55, 0.0  ;;  %v1363_v4 = vmax.f32 %v1107_v56, 0.0  ;;  %1612 = vst [vmem:[%s2518_s26 + $0x480] sm:$0xff] %v1356_v59  ;;  %1613 = vst [vmem:[%s2518_s26 + $0x488] sm:$0xff] %v1357_v60  ;;  %v2103_v7 = vunpack.c.l.bf16 %v2381_v58  ;;  %v2104_v8 = vunpack.c.h.bf16 %v2381_v58 }
  0xaa   : > { %1614 = vst [vmem:[%s2518_s26 + $0x490] sm:$0xff] %v1358_v61  ;;  %1615 = vst [vmem:[%s2518_s26 + $0x498] sm:$0xff] %v1359_v62  ;;  %v2107_v11 = vunpack.c.l.bf16 %v2382_v63  ;;  %v2108_v12 = vunpack.c.h.bf16 %v2382_v63  ;;  %v2111_v13 = vunpack.c.l.bf16 %v2383_v1  ;;  %v2112_v14 = vunpack.c.h.bf16 %v2383_v1 }
  0xab   : > { %1616 = vst [vmem:[%s2518_s26 + $0x4a0] sm:$0xff] %v1360_v9  ;;  %1617 = vst [vmem:[%s2518_s26 + $0x4a8] sm:$0xff] %v1361_v2  ;;  %v845_v15 = vmul.f32 %v2847_v10, %v2099_v5  ;;  %v846_v16 = vmul.f32 %v2847_v10, %v2100_v6  ;;  %v847_v17 = vmul.f32 %v2847_v10, %v2103_v7  ;;  %v2115_v44 = vunpack.c.l.bf16 %v2384_v32 }
  0xac   : > { %1618 = vst [vmem:[%s2518_s26 + $0x4b0] sm:$0xff] %v1362_v3  ;;  %1619 = vst [vmem:[%s2518_s26 + $0x4b8] sm:$0xff] %v1363_v4  ;;  %v848_v18 = vmul.f32 %v2847_v10, %v2104_v8  ;;  %v849_v20 = vmul.f32 %v2847_v10, %v2107_v11  ;;  %v850_v21 = vmul.f32 %v2847_v10, %v2108_v12  ;;  %v2116_v45 = vunpack.c.h.bf16 %v2384_v32  ;;  %v2388_v3 = vld [vmem:[%s2486_s18 + $0x2a0] sm:$0xff]   ;;  %v2389_v4 = vld [vmem:[%s2486_s18 + $0x2a8] sm:$0xff]  }
  0xad   : > { %v851_v22 = vmul.f32 %v2847_v10, %v2111_v13  ;;  %v852_v23 = vmul.f32 %v2847_v10, %v2112_v14  ;;  %v1108_v24 = vadd.f32 %v2860_v19, %v845_v15  ;;  %v1109_v25 = vadd.f32 %v2860_v19, %v846_v16  ;;  %v2390_v11 = vld [vmem:[%s2486_s18 + $0x2b0] sm:$0xff]   ;;  %v2391_v12 = vld [vmem:[%s2486_s18 + $0x2b8] sm:$0xff]  }
  0xae   : > { %v1110_v26 = vadd.f32 %v2860_v19, %v847_v17  ;;  %v1111_v27 = vadd.f32 %v2860_v19, %v848_v18  ;;  %v1112_v28 = vadd.f32 %v2860_v19, %v849_v20  ;;  %v1113_v29 = vadd.f32 %v2860_v19, %v850_v21 }
  0xaf   : > { %v1114_v30 = vadd.f32 %v2860_v19, %v851_v22  ;;  %v1115_v31 = vadd.f32 %v2860_v19, %v852_v23  ;;  %v1364_v34 = vmax.f32 %v1108_v24, 0.0  ;;  %v1365_v35 = vmax.f32 %v1109_v25, 0.0 }
  0xb0   : > { %v1366_v36 = vmax.f32 %v1110_v26, 0.0  ;;  %v1367_v37 = vmax.f32 %v1111_v27, 0.0  ;;  %v1368_v40 = vmax.f32 %v1112_v28, 0.0  ;;  %v1369_v41 = vmax.f32 %v1113_v29, 0.0 }
  0xb1   : > { %v1370_v42 = vmax.f32 %v1114_v30, 0.0  ;;  %v1371_v43 = vmax.f32 %v1115_v31, 0.0  ;;  %1620 = vst [vmem:[%s2518_s26 + $0x4c0] sm:$0xff] %v1364_v34  ;;  %1621 = vst [vmem:[%s2518_s26 + $0x4c8] sm:$0xff] %v1365_v35  ;;  %v2119_v46 = vunpack.c.l.bf16 %v2385_v33  ;;  %v2120_v47 = vunpack.c.h.bf16 %v2385_v33 }
  0xb2   : > { %1622 = vst [vmem:[%s2518_s26 + $0x4d0] sm:$0xff] %v1366_v36  ;;  %1623 = vst [vmem:[%s2518_s26 + $0x4d8] sm:$0xff] %v1367_v37  ;;  %v2123_v48 = vunpack.c.l.bf16 %v2386_v38  ;;  %v2124_v49 = vunpack.c.h.bf16 %v2386_v38  ;;  %v2127_v50 = vunpack.c.l.bf16 %v2387_v39  ;;  %v2128_v51 = vunpack.c.h.bf16 %v2387_v39 }
  0xb3   : > { %1624 = vst [vmem:[%s2518_s26 + $0x4e0] sm:$0xff] %v1368_v40  ;;  %1625 = vst [vmem:[%s2518_s26 + $0x4e8] sm:$0xff] %v1369_v41  ;;  %v853_v52 = vmul.f32 %v2847_v10, %v2115_v44  ;;  %v854_v0 = vmul.f32 %v2847_v10, %v2116_v45  ;;  %v855_v53 = vmul.f32 %v2847_v10, %v2119_v46  ;;  %v2131_v17 = vunpack.c.l.bf16 %v2388_v3 }
  0xb4   : > { %1626 = vst [vmem:[%s2518_s26 + $0x4f0] sm:$0xff] %v1370_v42  ;;  %1627 = vst [vmem:[%s2518_s26 + $0x4f8] sm:$0xff] %v1371_v43  ;;  %v856_v54 = vmul.f32 %v2847_v10, %v2120_v47  ;;  %v857_v55 = vmul.f32 %v2847_v10, %v2123_v48  ;;  %v858_v56 = vmul.f32 %v2847_v10, %v2124_v49  ;;  %v2132_v18 = vunpack.c.h.bf16 %v2388_v3  ;;  %v2392_v42 = vld [vmem:[%s2486_s18 + $0x2c0] sm:$0xff]   ;;  %v2393_v43 = vld [vmem:[%s2486_s18 + $0x2c8] sm:$0xff]  }
  0xb5   : > { %v859_v57 = vmul.f32 %v2847_v10, %v2127_v50  ;;  %v860_v58 = vmul.f32 %v2847_v10, %v2128_v51  ;;  %v1116_v59 = vadd.f32 %v2860_v19, %v853_v52  ;;  %v1117_v60 = vadd.f32 %v2860_v19, %v854_v0  ;;  %v2394_v48 = vld [vmem:[%s2486_s18 + $0x2d0] sm:$0xff]   ;;  %v2395_v49 = vld [vmem:[%s2486_s18 + $0x2d8] sm:$0xff]  }
  0xb6   : > { %v1118_v61 = vadd.f32 %v2860_v19, %v855_v53  ;;  %v1119_v62 = vadd.f32 %v2860_v19, %v856_v54  ;;  %v1120_v63 = vadd.f32 %v2860_v19, %v857_v55  ;;  %v1121_v1 = vadd.f32 %v2860_v19, %v858_v56 }
  0xb7   : > { %v1122_v9 = vadd.f32 %v2860_v19, %v859_v57  ;;  %v1123_v2 = vadd.f32 %v2860_v19, %v860_v58  ;;  %v1372_v5 = vmax.f32 %v1116_v59, 0.0  ;;  %v1373_v6 = vmax.f32 %v1117_v60, 0.0 }
  0xb8   : > { %v1374_v7 = vmax.f32 %v1118_v61, 0.0  ;;  %v1375_v8 = vmax.f32 %v1119_v62, 0.0  ;;  %v1376_v13 = vmax.f32 %v1120_v63, 0.0  ;;  %v1377_v14 = vmax.f32 %v1121_v1, 0.0 }
  0xb9   : > { %v1378_v15 = vmax.f32 %v1122_v9, 0.0  ;;  %v1379_v16 = vmax.f32 %v1123_v2, 0.0  ;;  %1628 = vst [vmem:[%s2518_s26 + $0x500] sm:$0xff] %v1372_v5  ;;  %1629 = vst [vmem:[%s2518_s26 + $0x508] sm:$0xff] %v1373_v6  ;;  %v2135_v20 = vunpack.c.l.bf16 %v2389_v4  ;;  %v2136_v21 = vunpack.c.h.bf16 %v2389_v4 }
  0xba   : > { %1630 = vst [vmem:[%s2518_s26 + $0x510] sm:$0xff] %v1374_v7  ;;  %1631 = vst [vmem:[%s2518_s26 + $0x518] sm:$0xff] %v1375_v8  ;;  %v2139_v22 = vunpack.c.l.bf16 %v2390_v11  ;;  %v2140_v23 = vunpack.c.h.bf16 %v2390_v11  ;;  %v2143_v24 = vunpack.c.l.bf16 %v2391_v12  ;;  %v2144_v25 = vunpack.c.h.bf16 %v2391_v12 }
  0xbb   : > { %1632 = vst [vmem:[%s2518_s26 + $0x520] sm:$0xff] %v1376_v13  ;;  %1633 = vst [vmem:[%s2518_s26 + $0x528] sm:$0xff] %v1377_v14  ;;  %v861_v26 = vmul.f32 %v2847_v10, %v2131_v17  ;;  %v862_v27 = vmul.f32 %v2847_v10, %v2132_v18  ;;  %v863_v28 = vmul.f32 %v2847_v10, %v2135_v20  ;;  %v2147_v53 = vunpack.c.l.bf16 %v2392_v42 }
  0xbc   : > { %1634 = vst [vmem:[%s2518_s26 + $0x530] sm:$0xff] %v1378_v15  ;;  %1635 = vst [vmem:[%s2518_s26 + $0x538] sm:$0xff] %v1379_v16  ;;  %v864_v29 = vmul.f32 %v2847_v10, %v2136_v21  ;;  %v865_v30 = vmul.f32 %v2847_v10, %v2139_v22  ;;  %v866_v31 = vmul.f32 %v2847_v10, %v2140_v23  ;;  %v2148_v54 = vunpack.c.h.bf16 %v2392_v42  ;;  %v2396_v15 = vld [vmem:[%s2486_s18 + $0x2e0] sm:$0xff]   ;;  %v2397_v16 = vld [vmem:[%s2486_s18 + $0x2e8] sm:$0xff]  }
  0xbd   : > { %v867_v32 = vmul.f32 %v2847_v10, %v2143_v24  ;;  %v868_v33 = vmul.f32 %v2847_v10, %v2144_v25  ;;  %v1124_v34 = vadd.f32 %v2860_v19, %v861_v26  ;;  %v1125_v35 = vadd.f32 %v2860_v19, %v862_v27  ;;  %v2398_v22 = vld [vmem:[%s2486_s18 + $0x2f0] sm:$0xff]   ;;  %v2399_v23 = vld [vmem:[%s2486_s18 + $0x2f8] sm:$0xff]  }
  0xbe   : > { %v1126_v36 = vadd.f32 %v2860_v19, %v863_v28  ;;  %v1127_v37 = vadd.f32 %v2860_v19, %v864_v29  ;;  %v1128_v38 = vadd.f32 %v2860_v19, %v865_v30  ;;  %v1129_v39 = vadd.f32 %v2860_v19, %v866_v31 }
  0xbf   : > { %v1130_v40 = vadd.f32 %v2860_v19, %v867_v32  ;;  %v1131_v41 = vadd.f32 %v2860_v19, %v868_v33  ;;  %v1380_v44 = vmax.f32 %v1124_v34, 0.0  ;;  %v1381_v45 = vmax.f32 %v1125_v35, 0.0 }
  0xc0   : > { %v1382_v46 = vmax.f32 %v1126_v36, 0.0  ;;  %v1383_v47 = vmax.f32 %v1127_v37, 0.0  ;;  %v1384_v50 = vmax.f32 %v1128_v38, 0.0  ;;  %v1385_v51 = vmax.f32 %v1129_v39, 0.0 }
  0xc1   : > { %v1386_v52 = vmax.f32 %v1130_v40, 0.0  ;;  %v1387_v0 = vmax.f32 %v1131_v41, 0.0  ;;  %1636 = vst [vmem:[%s2518_s26 + $0x540] sm:$0xff] %v1380_v44  ;;  %1637 = vst [vmem:[%s2518_s26 + $0x548] sm:$0xff] %v1381_v45  ;;  %v2151_v55 = vunpack.c.l.bf16 %v2393_v43  ;;  %v2152_v56 = vunpack.c.h.bf16 %v2393_v43 }
  0xc2   : > { %1638 = vst [vmem:[%s2518_s26 + $0x550] sm:$0xff] %v1382_v46  ;;  %1639 = vst [vmem:[%s2518_s26 + $0x558] sm:$0xff] %v1383_v47  ;;  %v2155_v57 = vunpack.c.l.bf16 %v2394_v48  ;;  %v2156_v58 = vunpack.c.h.bf16 %v2394_v48  ;;  %v2159_v59 = vunpack.c.l.bf16 %v2395_v49  ;;  %v2160_v60 = vunpack.c.h.bf16 %v2395_v49 }
  0xc3   : > { %1640 = vst [vmem:[%s2518_s26 + $0x560] sm:$0xff] %v1384_v50  ;;  %1641 = vst [vmem:[%s2518_s26 + $0x568] sm:$0xff] %v1385_v51  ;;  %v869_v61 = vmul.f32 %v2847_v10, %v2147_v53  ;;  %v870_v62 = vmul.f32 %v2847_v10, %v2148_v54  ;;  %v871_v63 = vmul.f32 %v2847_v10, %v2151_v55  ;;  %v2163_v28 = vunpack.c.l.bf16 %v2396_v15  ;;  %v2400_v51 = vld [vmem:[%s2486_s18 + $0x300] sm:$0xff]  }
  0xc4   : > { %1642 = vst [vmem:[%s2518_s26 + $0x570] sm:$0xff] %v1386_v52  ;;  %1643 = vst [vmem:[%s2518_s26 + $0x578] sm:$0xff] %v1387_v0  ;;  %v872_v1 = vmul.f32 %v2847_v10, %v2152_v56  ;;  %v873_v9 = vmul.f32 %v2847_v10, %v2155_v57  ;;  %v874_v2 = vmul.f32 %v2847_v10, %v2156_v58  ;;  %v2164_v29 = vunpack.c.h.bf16 %v2396_v15  ;;  %v2401_v52 = vld [vmem:[%s2486_s18 + $0x308] sm:$0xff]   ;;  %v2402_v56 = vld [vmem:[%s2486_s18 + $0x310] sm:$0xff]  }
  0xc5   : > { %v875_v3 = vmul.f32 %v2847_v10, %v2159_v59  ;;  %v876_v4 = vmul.f32 %v2847_v10, %v2160_v60  ;;  %v1132_v5 = vadd.f32 %v2860_v19, %v869_v61  ;;  %v1133_v6 = vadd.f32 %v2860_v19, %v870_v62  ;;  %v2403_v57 = vld [vmem:[%s2486_s18 + $0x318] sm:$0xff]  }
  0xc6   : > { %v1134_v7 = vadd.f32 %v2860_v19, %v871_v63  ;;  %v1135_v8 = vadd.f32 %v2860_v19, %v872_v1  ;;  %v1136_v11 = vadd.f32 %v2860_v19, %v873_v9  ;;  %v1137_v12 = vadd.f32 %v2860_v19, %v874_v2 }
  0xc7   : > { %v1138_v13 = vadd.f32 %v2860_v19, %v875_v3  ;;  %v1139_v14 = vadd.f32 %v2860_v19, %v876_v4  ;;  %v1388_v17 = vmax.f32 %v1132_v5, 0.0  ;;  %v1389_v18 = vmax.f32 %v1133_v6, 0.0  ;;  %v3193_v5 = vld [vmem:[%s3424_s1] ss:$0 sm:$0xff] }
  0xc8   : > { %v1390_v20 = vmax.f32 %v1134_v7, 0.0  ;;  %v1391_v21 = vmax.f32 %v1135_v8, 0.0  ;;  %v1392_v24 = vmax.f32 %v1136_v11, 0.0  ;;  %v1393_v25 = vmax.f32 %v1137_v12, 0.0 }
  0xc9   : > { %v1394_v26 = vmax.f32 %v1138_v13, 0.0  ;;  %v1395_v27 = vmax.f32 %v1139_v14, 0.0  ;;  %1644 = vst [vmem:[%s2518_s26 + $0x580] sm:$0xff] %v1388_v17  ;;  %1645 = vst [vmem:[%s2518_s26 + $0x588] sm:$0xff] %v1389_v18  ;;  %v2167_v30 = vunpack.c.l.bf16 %v2397_v16  ;;  %v2168_v31 = vunpack.c.h.bf16 %v2397_v16  ;;  %v3206_v16 = vld [vmem:[%s3425_s2] ss:$0 sm:$0xff] }
  0xca   : > { %1646 = vst [vmem:[%s2518_s26 + $0x590] sm:$0xff] %v1390_v20  ;;  %1647 = vst [vmem:[%s2518_s26 + $0x598] sm:$0xff] %v1391_v21  ;;  %v2171_v32 = vunpack.c.l.bf16 %v2398_v22  ;;  %v2172_v33 = vunpack.c.h.bf16 %v2398_v22  ;;  %v2175_v34 = vunpack.c.l.bf16 %v2399_v23  ;;  %v2176_v35 = vunpack.c.h.bf16 %v2399_v23 }
  0xcb   : > { %1648 = vst [vmem:[%s2518_s26 + $0x5a0] sm:$0xff] %v1392_v24  ;;  %1649 = vst [vmem:[%s2518_s26 + $0x5a8] sm:$0xff] %v1393_v25  ;;  %v877_v36 = vmul.f32 %v2847_v10, %v2163_v28  ;;  %v878_v37 = vmul.f32 %v2847_v10, %v2164_v29  ;;  %v879_v38 = vmul.f32 %v2847_v10, %v2167_v30  ;;  %v2180_v62 = vunpack.c.h.bf16 %v2400_v51 }
  0xcc   : > { %1650 = vst [vmem:[%s2518_s26 + $0x5b0] sm:$0xff] %v1394_v26  ;;  %1651 = vst [vmem:[%s2518_s26 + $0x5b8] sm:$0xff] %v1395_v27  ;;  %v880_v39 = vmul.f32 %v2847_v10, %v2168_v31  ;;  %v881_v40 = vmul.f32 %v2847_v10, %v2171_v32  ;;  %v882_v41 = vmul.f32 %v2847_v10, %v2172_v33  ;;  %v2183_v63 = vunpack.c.l.bf16 %v2401_v52  ;;  %v2404_v26 = vld [vmem:[%s2486_s18 + $0x320] sm:$0xff]   ;;  %v2405_v27 = vld [vmem:[%s2486_s18 + $0x328] sm:$0xff]  }
  0xcd   : > { %v883_v42 = vmul.f32 %v2847_v10, %v2175_v34  ;;  %v884_v43 = vmul.f32 %v2847_v10, %v2176_v35  ;;  %v1140_v44 = vadd.f32 %v2860_v19, %v877_v36  ;;  %v1141_v45 = vadd.f32 %v2860_v19, %v878_v37  ;;  %v2406_v32 = vld [vmem:[%s2486_s18 + $0x330] sm:$0xff]   ;;  %v2407_v33 = vld [vmem:[%s2486_s18 + $0x338] sm:$0xff]  }
  0xce   : > { %v1142_v46 = vadd.f32 %v2860_v19, %v879_v38  ;;  %v1143_v47 = vadd.f32 %v2860_v19, %v880_v39  ;;  %v1144_v48 = vadd.f32 %v2860_v19, %v881_v40  ;;  %v1145_v49 = vadd.f32 %v2860_v19, %v882_v41 }
  0xcf   : > { %v1146_v50 = vadd.f32 %v2860_v19, %v883_v42  ;;  %v1147_v10 = vadd.f32 %v2860_v19, %v884_v43  ;;  %v1396_v0 = vmax.f32 %v1140_v44, 0.0  ;;  %v1397_v53 = vmax.f32 %v1141_v45, 0.0 }
  0xd0   : > { %v1398_v54 = vmax.f32 %v1142_v46, 0.0  ;;  %v1399_v55 = vmax.f32 %v1143_v47, 0.0  ;;  %v1400_v58 = vmax.f32 %v1144_v48, 0.0  ;;  %v1401_v59 = vmax.f32 %v1145_v49, 0.0 }
  0xd1   : > { %v1402_v60 = vmax.f32 %v1146_v50, 0.0  ;;  %v1403_v61 = vmax.f32 %v1147_v10, 0.0  ;;  %1652 = vst [vmem:[%s2518_s26 + $0x5c0] sm:$0xff] %v1396_v0  ;;  %1653 = vst [vmem:[%s2518_s26 + $0x5c8] sm:$0xff] %v1397_v53  ;;  %v2179_v19 = vunpack.c.l.bf16 %v2400_v51  ;;  %v2184_v1 = vunpack.c.h.bf16 %v2401_v52 }
  0xd2   : > { %1654 = vst [vmem:[%s2518_s26 + $0x5d0] sm:$0xff] %v1398_v54  ;;  %1655 = vst [vmem:[%s2518_s26 + $0x5d8] sm:$0xff] %v1399_v55  ;;  %v2187_v9 = vunpack.c.l.bf16 %v2402_v56  ;;  %v2188_v2 = vunpack.c.h.bf16 %v2402_v56  ;;  %v2191_v3 = vunpack.c.l.bf16 %v2403_v57  ;;  %v2192_v4 = vunpack.c.h.bf16 %v2403_v57 }
  0xd3   : > { %1656 = vst [vmem:[%s2518_s26 + $0x5e0] sm:$0xff] %v1400_v58  ;;  %1657 = vst [vmem:[%s2518_s26 + $0x5e8] sm:$0xff] %v1401_v59  ;;  %v885_v6 = vmul.f32 %v3193_v5, %v2179_v19  ;;  %v886_v7 = vmul.f32 %v3193_v5, %v2180_v62  ;;  %v887_v8 = vmul.f32 %v3193_v5, %v2183_v63  ;;  %v2195_v38 = vunpack.c.l.bf16 %v2404_v26 }
  0xd4   : > { %1658 = vst [vmem:[%s2518_s26 + $0x5f0] sm:$0xff] %v1402_v60  ;;  %1659 = vst [vmem:[%s2518_s26 + $0x5f8] sm:$0xff] %v1403_v61  ;;  %v888_v11 = vmul.f32 %v3193_v5, %v2184_v1  ;;  %v889_v12 = vmul.f32 %v3193_v5, %v2187_v9  ;;  %v890_v13 = vmul.f32 %v3193_v5, %v2188_v2  ;;  %v2196_v39 = vunpack.c.h.bf16 %v2404_v26  ;;  %v2408_v60 = vld [vmem:[%s2486_s18 + $0x340] sm:$0xff]   ;;  %v2409_v61 = vld [vmem:[%s2486_s18 + $0x348] sm:$0xff]  }
  0xd5   : > { %v891_v14 = vmul.f32 %v3193_v5, %v2191_v3  ;;  %v892_v15 = vmul.f32 %v3193_v5, %v2192_v4  ;;  %v1148_v17 = vadd.f32 %v3206_v16, %v885_v6  ;;  %v1149_v18 = vadd.f32 %v3206_v16, %v886_v7  ;;  %v2410_v9 = vld [vmem:[%s2486_s18 + $0x350] sm:$0xff]   ;;  %v2411_v2 = vld [vmem:[%s2486_s18 + $0x358] sm:$0xff]  }
  0xd6   : > { %v1150_v20 = vadd.f32 %v3206_v16, %v887_v8  ;;  %v1151_v21 = vadd.f32 %v3206_v16, %v888_v11  ;;  %v1152_v22 = vadd.f32 %v3206_v16, %v889_v12  ;;  %v1153_v23 = vadd.f32 %v3206_v16, %v890_v13 }
  0xd7   : > { %v1154_v24 = vadd.f32 %v3206_v16, %v891_v14  ;;  %v1155_v25 = vadd.f32 %v3206_v16, %v892_v15  ;;  %v1404_v28 = vmax.f32 %v1148_v17, 0.0  ;;  %v1405_v29 = vmax.f32 %v1149_v18, 0.0 }
  0xd8   : > { %v1406_v30 = vmax.f32 %v1150_v20, 0.0  ;;  %v1407_v31 = vmax.f32 %v1151_v21, 0.0  ;;  %v1408_v34 = vmax.f32 %v1152_v22, 0.0  ;;  %v1409_v35 = vmax.f32 %v1153_v23, 0.0 }
  0xd9   : > { %v1410_v36 = vmax.f32 %v1154_v24, 0.0  ;;  %v1411_v37 = vmax.f32 %v1155_v25, 0.0  ;;  %1660 = vst [vmem:[%s2518_s26 + $0x600] sm:$0xff] %v1404_v28  ;;  %1661 = vst [vmem:[%s2518_s26 + $0x608] sm:$0xff] %v1405_v29  ;;  %v2199_v40 = vunpack.c.l.bf16 %v2405_v27  ;;  %v2200_v41 = vunpack.c.h.bf16 %v2405_v27 }
  0xda   : > { %1662 = vst [vmem:[%s2518_s26 + $0x610] sm:$0xff] %v1406_v30  ;;  %1663 = vst [vmem:[%s2518_s26 + $0x618] sm:$0xff] %v1407_v31  ;;  %v2203_v42 = vunpack.c.l.bf16 %v2406_v32  ;;  %v2204_v43 = vunpack.c.h.bf16 %v2406_v32  ;;  %v2207_v44 = vunpack.c.l.bf16 %v2407_v33  ;;  %v2208_v45 = vunpack.c.h.bf16 %v2407_v33 }
  0xdb   : > { %1664 = vst [vmem:[%s2518_s26 + $0x620] sm:$0xff] %v1408_v34  ;;  %1665 = vst [vmem:[%s2518_s26 + $0x628] sm:$0xff] %v1409_v35  ;;  %v893_v46 = vmul.f32 %v3193_v5, %v2195_v38  ;;  %v894_v47 = vmul.f32 %v3193_v5, %v2196_v39  ;;  %v895_v48 = vmul.f32 %v3193_v5, %v2199_v40  ;;  %v2211_v8 = vunpack.c.l.bf16 %v2408_v60 }
  0xdc   : > { %1666 = vst [vmem:[%s2518_s26 + $0x630] sm:$0xff] %v1410_v36  ;;  %1667 = vst [vmem:[%s2518_s26 + $0x638] sm:$0xff] %v1411_v37  ;;  %v896_v49 = vmul.f32 %v3193_v5, %v2200_v41  ;;  %v897_v50 = vmul.f32 %v3193_v5, %v2203_v42  ;;  %v898_v10 = vmul.f32 %v3193_v5, %v2204_v43  ;;  %v2212_v11 = vunpack.c.h.bf16 %v2408_v60  ;;  %v2412_v36 = vld [vmem:[%s2486_s18 + $0x360] sm:$0xff]   ;;  %v2413_v37 = vld [vmem:[%s2486_s18 + $0x368] sm:$0xff]  }
  0xdd   : > { %v899_v51 = vmul.f32 %v3193_v5, %v2207_v44  ;;  %v900_v52 = vmul.f32 %v3193_v5, %v2208_v45  ;;  %v1156_v0 = vadd.f32 %v3206_v16, %v893_v46  ;;  %v1157_v53 = vadd.f32 %v3206_v16, %v894_v47  ;;  %v2414_v42 = vld [vmem:[%s2486_s18 + $0x370] sm:$0xff]   ;;  %v2415_v43 = vld [vmem:[%s2486_s18 + $0x378] sm:$0xff]  }
  0xde   : > { %v1158_v54 = vadd.f32 %v3206_v16, %v895_v48  ;;  %v1159_v55 = vadd.f32 %v3206_v16, %v896_v49  ;;  %v1160_v56 = vadd.f32 %v3206_v16, %v897_v50  ;;  %v1161_v57 = vadd.f32 %v3206_v16, %v898_v10 }
  0xdf   : > { %v1162_v58 = vadd.f32 %v3206_v16, %v899_v51  ;;  %v1163_v59 = vadd.f32 %v3206_v16, %v900_v52  ;;  %v1412_v19 = vmax.f32 %v1156_v0, 0.0  ;;  %v1413_v62 = vmax.f32 %v1157_v53, 0.0 }
  0xe0   : > { %v1414_v63 = vmax.f32 %v1158_v54, 0.0  ;;  %v1415_v1 = vmax.f32 %v1159_v55, 0.0  ;;  %v1416_v3 = vmax.f32 %v1160_v56, 0.0  ;;  %v1417_v4 = vmax.f32 %v1161_v57, 0.0 }
  0xe1   : > { %v1418_v6 = vmax.f32 %v1162_v58, 0.0  ;;  %v1419_v7 = vmax.f32 %v1163_v59, 0.0  ;;  %1668 = vst [vmem:[%s2518_s26 + $0x640] sm:$0xff] %v1412_v19  ;;  %1669 = vst [vmem:[%s2518_s26 + $0x648] sm:$0xff] %v1413_v62  ;;  %v2215_v12 = vunpack.c.l.bf16 %v2409_v61  ;;  %v2216_v13 = vunpack.c.h.bf16 %v2409_v61 }
  0xe2   : > { %1670 = vst [vmem:[%s2518_s26 + $0x650] sm:$0xff] %v1414_v63  ;;  %1671 = vst [vmem:[%s2518_s26 + $0x658] sm:$0xff] %v1415_v1  ;;  %v2219_v14 = vunpack.c.l.bf16 %v2410_v9  ;;  %v2220_v15 = vunpack.c.h.bf16 %v2410_v9  ;;  %v2223_v17 = vunpack.c.l.bf16 %v2411_v2  ;;  %v2224_v18 = vunpack.c.h.bf16 %v2411_v2 }
  0xe3   : > { %1672 = vst [vmem:[%s2518_s26 + $0x660] sm:$0xff] %v1416_v3  ;;  %1673 = vst [vmem:[%s2518_s26 + $0x668] sm:$0xff] %v1417_v4  ;;  %v901_v20 = vmul.f32 %v3193_v5, %v2211_v8  ;;  %v902_v21 = vmul.f32 %v3193_v5, %v2212_v11  ;;  %v903_v22 = vmul.f32 %v3193_v5, %v2215_v12  ;;  %v2227_v48 = vunpack.c.l.bf16 %v2412_v36 }
  0xe4   : > { %1674 = vst [vmem:[%s2518_s26 + $0x670] sm:$0xff] %v1418_v6  ;;  %1675 = vst [vmem:[%s2518_s26 + $0x678] sm:$0xff] %v1419_v7  ;;  %v904_v23 = vmul.f32 %v3193_v5, %v2216_v13  ;;  %v905_v24 = vmul.f32 %v3193_v5, %v2219_v14  ;;  %v906_v25 = vmul.f32 %v3193_v5, %v2220_v15  ;;  %v2228_v49 = vunpack.c.h.bf16 %v2412_v36  ;;  %v2416_v6 = vld [vmem:[%s2486_s18 + $0x380] sm:$0xff]   ;;  %v2417_v7 = vld [vmem:[%s2486_s18 + $0x388] sm:$0xff]  }
  0xe5   : > { %v907_v26 = vmul.f32 %v3193_v5, %v2223_v17  ;;  %v908_v27 = vmul.f32 %v3193_v5, %v2224_v18  ;;  %v1164_v28 = vadd.f32 %v3206_v16, %v901_v20  ;;  %v1165_v29 = vadd.f32 %v3206_v16, %v902_v21  ;;  %v2418_v14 = vld [vmem:[%s2486_s18 + $0x390] sm:$0xff]   ;;  %v2419_v15 = vld [vmem:[%s2486_s18 + $0x398] sm:$0xff]  }
  0xe6   : > { %v1166_v30 = vadd.f32 %v3206_v16, %v903_v22  ;;  %v1167_v31 = vadd.f32 %v3206_v16, %v904_v23  ;;  %v1168_v32 = vadd.f32 %v3206_v16, %v905_v24  ;;  %v1169_v33 = vadd.f32 %v3206_v16, %v906_v25 }
  0xe7   : > { %v1170_v34 = vadd.f32 %v3206_v16, %v907_v26  ;;  %v1171_v35 = vadd.f32 %v3206_v16, %v908_v27  ;;  %v1420_v38 = vmax.f32 %v1164_v28, 0.0  ;;  %v1421_v39 = vmax.f32 %v1165_v29, 0.0 }
  0xe8   : > { %v1422_v40 = vmax.f32 %v1166_v30, 0.0  ;;  %v1423_v41 = vmax.f32 %v1167_v31, 0.0  ;;  %v1424_v44 = vmax.f32 %v1168_v32, 0.0  ;;  %v1425_v45 = vmax.f32 %v1169_v33, 0.0 }
  0xe9   : > { %v1426_v46 = vmax.f32 %v1170_v34, 0.0  ;;  %v1427_v47 = vmax.f32 %v1171_v35, 0.0  ;;  %1676 = vst [vmem:[%s2518_s26 + $0x680] sm:$0xff] %v1420_v38  ;;  %1677 = vst [vmem:[%s2518_s26 + $0x688] sm:$0xff] %v1421_v39  ;;  %v2231_v50 = vunpack.c.l.bf16 %v2413_v37  ;;  %v2232_v10 = vunpack.c.h.bf16 %v2413_v37 }
  0xea   : > { %1678 = vst [vmem:[%s2518_s26 + $0x690] sm:$0xff] %v1422_v40  ;;  %1679 = vst [vmem:[%s2518_s26 + $0x698] sm:$0xff] %v1423_v41  ;;  %v2235_v51 = vunpack.c.l.bf16 %v2414_v42  ;;  %v2236_v52 = vunpack.c.h.bf16 %v2414_v42  ;;  %v2239_v0 = vunpack.c.l.bf16 %v2415_v43  ;;  %v2240_v53 = vunpack.c.h.bf16 %v2415_v43 }
  0xeb   : > { %1680 = vst [vmem:[%s2518_s26 + $0x6a0] sm:$0xff] %v1424_v44  ;;  %1681 = vst [vmem:[%s2518_s26 + $0x6a8] sm:$0xff] %v1425_v45  ;;  %v909_v54 = vmul.f32 %v3193_v5, %v2227_v48  ;;  %v910_v55 = vmul.f32 %v3193_v5, %v2228_v49  ;;  %v911_v56 = vmul.f32 %v3193_v5, %v2231_v50  ;;  %v2243_v22 = vunpack.c.l.bf16 %v2416_v6 }
  0xec   : > { %1682 = vst [vmem:[%s2518_s26 + $0x6b0] sm:$0xff] %v1426_v46  ;;  %1683 = vst [vmem:[%s2518_s26 + $0x6b8] sm:$0xff] %v1427_v47  ;;  %v912_v57 = vmul.f32 %v3193_v5, %v2232_v10  ;;  %v913_v58 = vmul.f32 %v3193_v5, %v2235_v51  ;;  %v914_v59 = vmul.f32 %v3193_v5, %v2236_v52  ;;  %v2244_v23 = vunpack.c.h.bf16 %v2416_v6  ;;  %v2420_v46 = vld [vmem:[%s2486_s18 + $0x3a0] sm:$0xff]   ;;  %v2421_v47 = vld [vmem:[%s2486_s18 + $0x3a8] sm:$0xff]  }
  0xed   : > { %v915_v60 = vmul.f32 %v3193_v5, %v2239_v0  ;;  %v916_v61 = vmul.f32 %v3193_v5, %v2240_v53  ;;  %v1172_v19 = vadd.f32 %v3206_v16, %v909_v54  ;;  %v1173_v62 = vadd.f32 %v3206_v16, %v910_v55  ;;  %v2422_v51 = vld [vmem:[%s2486_s18 + $0x3b0] sm:$0xff]   ;;  %v2423_v52 = vld [vmem:[%s2486_s18 + $0x3b8] sm:$0xff]  }
  0xee   : > { %v1174_v63 = vadd.f32 %v3206_v16, %v911_v56  ;;  %v1175_v1 = vadd.f32 %v3206_v16, %v912_v57  ;;  %v1176_v9 = vadd.f32 %v3206_v16, %v913_v58  ;;  %v1177_v2 = vadd.f32 %v3206_v16, %v914_v59 }
  0xef   : > { %v1178_v3 = vadd.f32 %v3206_v16, %v915_v60  ;;  %v1179_v4 = vadd.f32 %v3206_v16, %v916_v61  ;;  %v1428_v8 = vmax.f32 %v1172_v19, 0.0  ;;  %v1429_v11 = vmax.f32 %v1173_v62, 0.0 }
  0xf0   : > { %v1430_v12 = vmax.f32 %v1174_v63, 0.0  ;;  %v1431_v13 = vmax.f32 %v1175_v1, 0.0  ;;  %v1432_v17 = vmax.f32 %v1176_v9, 0.0  ;;  %v1433_v18 = vmax.f32 %v1177_v2, 0.0 }
  0xf1   : > { %v1434_v20 = vmax.f32 %v1178_v3, 0.0  ;;  %v1435_v21 = vmax.f32 %v1179_v4, 0.0  ;;  %1684 = vst [vmem:[%s2518_s26 + $0x6c0] sm:$0xff] %v1428_v8  ;;  %1685 = vst [vmem:[%s2518_s26 + $0x6c8] sm:$0xff] %v1429_v11  ;;  %v2247_v24 = vunpack.c.l.bf16 %v2417_v7  ;;  %v2248_v25 = vunpack.c.h.bf16 %v2417_v7 }
  0xf2   : > { %1686 = vst [vmem:[%s2518_s26 + $0x6d0] sm:$0xff] %v1430_v12  ;;  %1687 = vst [vmem:[%s2518_s26 + $0x6d8] sm:$0xff] %v1431_v13  ;;  %v2251_v26 = vunpack.c.l.bf16 %v2418_v14  ;;  %v2252_v27 = vunpack.c.h.bf16 %v2418_v14  ;;  %v2255_v28 = vunpack.c.l.bf16 %v2419_v15  ;;  %v2256_v29 = vunpack.c.h.bf16 %v2419_v15 }
  0xf3   : > { %1688 = vst [vmem:[%s2518_s26 + $0x6e0] sm:$0xff] %v1432_v17  ;;  %1689 = vst [vmem:[%s2518_s26 + $0x6e8] sm:$0xff] %v1433_v18  ;;  %v917_v30 = vmul.f32 %v3193_v5, %v2243_v22  ;;  %v918_v31 = vmul.f32 %v3193_v5, %v2244_v23  ;;  %v919_v32 = vmul.f32 %v3193_v5, %v2247_v24  ;;  %v2259_v56 = vunpack.c.l.bf16 %v2420_v46 }
  0xf4   : > { %1690 = vst [vmem:[%s2518_s26 + $0x6f0] sm:$0xff] %v1434_v20  ;;  %1691 = vst [vmem:[%s2518_s26 + $0x6f8] sm:$0xff] %v1435_v21  ;;  %v920_v33 = vmul.f32 %v3193_v5, %v2248_v25  ;;  %v921_v34 = vmul.f32 %v3193_v5, %v2251_v26  ;;  %v922_v35 = vmul.f32 %v3193_v5, %v2252_v27  ;;  %v2260_v57 = vunpack.c.h.bf16 %v2420_v46  ;;  %v2424_v20 = vld [vmem:[%s2486_s18 + $0x3c0] sm:$0xff]   ;;  %v2425_v21 = vld [vmem:[%s2486_s18 + $0x3c8] sm:$0xff]  }
  0xf5   : > { %v923_v36 = vmul.f32 %v3193_v5, %v2255_v28  ;;  %v924_v37 = vmul.f32 %v3193_v5, %v2256_v29  ;;  %v1180_v38 = vadd.f32 %v3206_v16, %v917_v30  ;;  %v1181_v39 = vadd.f32 %v3206_v16, %v918_v31  ;;  %v2426_v26 = vld [vmem:[%s2486_s18 + $0x3d0] sm:$0xff]   ;;  %v2427_v27 = vld [vmem:[%s2486_s18 + $0x3d8] sm:$0xff]  }
  0xf6   : > { %v1182_v40 = vadd.f32 %v3206_v16, %v919_v32  ;;  %v1183_v41 = vadd.f32 %v3206_v16, %v920_v33  ;;  %v1184_v42 = vadd.f32 %v3206_v16, %v921_v34  ;;  %v1185_v43 = vadd.f32 %v3206_v16, %v922_v35 }
  0xf7   : > { %v1186_v44 = vadd.f32 %v3206_v16, %v923_v36  ;;  %v1187_v45 = vadd.f32 %v3206_v16, %v924_v37  ;;  %v1436_v48 = vmax.f32 %v1180_v38, 0.0  ;;  %v1437_v49 = vmax.f32 %v1181_v39, 0.0 }
  0xf8   : > { %v1438_v50 = vmax.f32 %v1182_v40, 0.0  ;;  %v1439_v10 = vmax.f32 %v1183_v41, 0.0  ;;  %v1440_v0 = vmax.f32 %v1184_v42, 0.0  ;;  %v1441_v53 = vmax.f32 %v1185_v43, 0.0 }
  0xf9   : > { %v1442_v54 = vmax.f32 %v1186_v44, 0.0  ;;  %v1443_v55 = vmax.f32 %v1187_v45, 0.0  ;;  %1692 = vst [vmem:[%s2518_s26 + $0x700] sm:$0xff] %v1436_v48  ;;  %1693 = vst [vmem:[%s2518_s26 + $0x708] sm:$0xff] %v1437_v49  ;;  %v2263_v58 = vunpack.c.l.bf16 %v2421_v47  ;;  %v2264_v59 = vunpack.c.h.bf16 %v2421_v47 }
  0xfa   : > { %1694 = vst [vmem:[%s2518_s26 + $0x710] sm:$0xff] %v1438_v50  ;;  %1695 = vst [vmem:[%s2518_s26 + $0x718] sm:$0xff] %v1439_v10  ;;  %v2267_v60 = vunpack.c.l.bf16 %v2422_v51  ;;  %v2268_v61 = vunpack.c.h.bf16 %v2422_v51  ;;  %v2271_v19 = vunpack.c.l.bf16 %v2423_v52  ;;  %v2272_v62 = vunpack.c.h.bf16 %v2423_v52 }
  0xfb   : > { %1696 = vst [vmem:[%s2518_s26 + $0x720] sm:$0xff] %v1440_v0  ;;  %1697 = vst [vmem:[%s2518_s26 + $0x728] sm:$0xff] %v1441_v53  ;;  %v925_v63 = vmul.f32 %v3193_v5, %v2259_v56  ;;  %v926_v1 = vmul.f32 %v3193_v5, %v2260_v57  ;;  %v927_v9 = vmul.f32 %v3193_v5, %v2263_v58  ;;  %v2275_v32 = vunpack.c.l.bf16 %v2424_v20 }
  0xfc   : > { %1698 = vst [vmem:[%s2518_s26 + $0x730] sm:$0xff] %v1442_v54  ;;  %1699 = vst [vmem:[%s2518_s26 + $0x738] sm:$0xff] %v1443_v55  ;;  %v928_v2 = vmul.f32 %v3193_v5, %v2264_v59  ;;  %v929_v3 = vmul.f32 %v3193_v5, %v2267_v60  ;;  %v930_v4 = vmul.f32 %v3193_v5, %v2268_v61  ;;  %v2276_v33 = vunpack.c.h.bf16 %v2424_v20  ;;  %v2428_v54 = vld [vmem:[%s2486_s18 + $0x3e0] sm:$0xff]   ;;  %v2429_v55 = vld [vmem:[%s2486_s18 + $0x3e8] sm:$0xff]  }
  0xfd   : > { %v931_v6 = vmul.f32 %v3193_v5, %v2271_v19  ;;  %v932_v7 = vmul.f32 %v3193_v5, %v2272_v62  ;;  %v1188_v8 = vadd.f32 %v3206_v16, %v925_v63  ;;  %v1189_v11 = vadd.f32 %v3206_v16, %v926_v1  ;;  %v2430_v60 = vld [vmem:[%s2486_s18 + $0x3f0] sm:$0xff]   ;;  %v2431_v61 = vld [vmem:[%s2486_s18 + $0x3f8] sm:$0xff]  }
  0xfe   : > { %v1190_v12 = vadd.f32 %v3206_v16, %v927_v9  ;;  %v1191_v13 = vadd.f32 %v3206_v16, %v928_v2  ;;  %v1192_v14 = vadd.f32 %v3206_v16, %v929_v3  ;;  %v1193_v15 = vadd.f32 %v3206_v16, %v930_v4 }
  0xff   : > { %v1194_v17 = vadd.f32 %v3206_v16, %v931_v6  ;;  %v1195_v18 = vadd.f32 %v3206_v16, %v932_v7  ;;  %v1444_v22 = vmax.f32 %v1188_v8, 0.0  ;;  %v1445_v23 = vmax.f32 %v1189_v11, 0.0 }
 0x100   : > { %v1446_v24 = vmax.f32 %v1190_v12, 0.0  ;;  %v1447_v25 = vmax.f32 %v1191_v13, 0.0  ;;  %v1448_v28 = vmax.f32 %v1192_v14, 0.0  ;;  %v1449_v29 = vmax.f32 %v1193_v15, 0.0 }
 0x101   : > { %v1450_v30 = vmax.f32 %v1194_v17, 0.0  ;;  %v1451_v31 = vmax.f32 %v1195_v18, 0.0  ;;  %1700 = vst [vmem:[%s2518_s26 + $0x740] sm:$0xff] %v1444_v22  ;;  %1701 = vst [vmem:[%s2518_s26 + $0x748] sm:$0xff] %v1445_v23  ;;  %v2279_v34 = vunpack.c.l.bf16 %v2425_v21  ;;  %v2280_v35 = vunpack.c.h.bf16 %v2425_v21 }
 0x102   : > { %1702 = vst [vmem:[%s2518_s26 + $0x750] sm:$0xff] %v1446_v24  ;;  %1703 = vst [vmem:[%s2518_s26 + $0x758] sm:$0xff] %v1447_v25  ;;  %v2283_v36 = vunpack.c.l.bf16 %v2426_v26  ;;  %v2284_v37 = vunpack.c.h.bf16 %v2426_v26  ;;  %v2287_v38 = vunpack.c.l.bf16 %v2427_v27  ;;  %v2288_v39 = vunpack.c.h.bf16 %v2427_v27 }
 0x103   : > { %1704 = vst [vmem:[%s2518_s26 + $0x760] sm:$0xff] %v1448_v28  ;;  %1705 = vst [vmem:[%s2518_s26 + $0x768] sm:$0xff] %v1449_v29  ;;  %v933_v40 = vmul.f32 %v3193_v5, %v2275_v32  ;;  %v934_v41 = vmul.f32 %v3193_v5, %v2276_v33  ;;  %v935_v42 = vmul.f32 %v3193_v5, %v2279_v34  ;;  %v2291_v9 = vunpack.c.l.bf16 %v2428_v54 }
 0x104   : > { %1706 = vst [vmem:[%s2518_s26 + $0x770] sm:$0xff] %v1450_v30  ;;  %1707 = vst [vmem:[%s2518_s26 + $0x778] sm:$0xff] %v1451_v31  ;;  %v936_v43 = vmul.f32 %v3193_v5, %v2280_v35  ;;  %v937_v44 = vmul.f32 %v3193_v5, %v2283_v36  ;;  %v938_v45 = vmul.f32 %v3193_v5, %v2284_v37  ;;  %v2292_v2 = vunpack.c.h.bf16 %v2428_v54 }
 0x105   : > { %v939_v46 = vmul.f32 %v3193_v5, %v2287_v38  ;;  %v940_v47 = vmul.f32 %v3193_v5, %v2288_v39  ;;  %v1196_v48 = vadd.f32 %v3206_v16, %v933_v40  ;;  %v1197_v49 = vadd.f32 %v3206_v16, %v934_v41 }
 0x106   : > { %v1198_v50 = vadd.f32 %v3206_v16, %v935_v42  ;;  %v1199_v10 = vadd.f32 %v3206_v16, %v936_v43  ;;  %v1200_v51 = vadd.f32 %v3206_v16, %v937_v44  ;;  %v1201_v52 = vadd.f32 %v3206_v16, %v938_v45 }
 0x107   : > { %v1202_v0 = vadd.f32 %v3206_v16, %v939_v46  ;;  %v1203_v53 = vadd.f32 %v3206_v16, %v940_v47  ;;  %v1452_v56 = vmax.f32 %v1196_v48, 0.0  ;;  %v1453_v57 = vmax.f32 %v1197_v49, 0.0 }
 0x108   : > { %v1454_v58 = vmax.f32 %v1198_v50, 0.0  ;;  %v1455_v59 = vmax.f32 %v1199_v10, 0.0  ;;  %v1456_v19 = vmax.f32 %v1200_v51, 0.0  ;;  %v1457_v62 = vmax.f32 %v1201_v52, 0.0 }
 0x109   : > { %v1458_v63 = vmax.f32 %v1202_v0, 0.0  ;;  %v1459_v1 = vmax.f32 %v1203_v53, 0.0  ;;  %1708 = vst [vmem:[%s2518_s26 + $0x780] sm:$0xff] %v1452_v56  ;;  %1709 = vst [vmem:[%s2518_s26 + $0x788] sm:$0xff] %v1453_v57  ;;  %v2295_v3 = vunpack.c.l.bf16 %v2429_v55  ;;  %v2296_v4 = vunpack.c.h.bf16 %v2429_v55 }
 0x10a   : > { %1710 = vst [vmem:[%s2518_s26 + $0x790] sm:$0xff] %v1454_v58  ;;  %1711 = vst [vmem:[%s2518_s26 + $0x798] sm:$0xff] %v1455_v59  ;;  %v2299_v6 = vunpack.c.l.bf16 %v2430_v60  ;;  %v2300_v7 = vunpack.c.h.bf16 %v2430_v60  ;;  %v2303_v8 = vunpack.c.l.bf16 %v2431_v61  ;;  %v2304_v11 = vunpack.c.h.bf16 %v2431_v61 }
 0x10b   : > { %1712 = vst [vmem:[%s2518_s26 + $0x7a0] sm:$0xff] %v1456_v19  ;;  %1713 = vst [vmem:[%s2518_s26 + $0x7a8] sm:$0xff] %v1457_v62  ;;  %v941_v12 = vmul.f32 %v3193_v5, %v2291_v9  ;;  %v942_v13 = vmul.f32 %v3193_v5, %v2292_v2  ;;  %v943_v14 = vmul.f32 %v3193_v5, %v2295_v3 }
 0x10c   : > { %1714 = vst [vmem:[%s2518_s26 + $0x7b0] sm:$0xff] %v1458_v63  ;;  %1715 = vst [vmem:[%s2518_s26 + $0x7b8] sm:$0xff] %v1459_v1  ;;  %v944_v15 = vmul.f32 %v3193_v5, %v2296_v4  ;;  %v945_v17 = vmul.f32 %v3193_v5, %v2299_v6  ;;  %v946_v18 = vmul.f32 %v3193_v5, %v2300_v7 }
 0x10d   : > { %v947_v20 = vmul.f32 %v3193_v5, %v2303_v8  ;;  %v948_v21 = vmul.f32 %v3193_v5, %v2304_v11  ;;  %v1204_v22 = vadd.f32 %v3206_v16, %v941_v12  ;;  %v1205_v23 = vadd.f32 %v3206_v16, %v942_v13 }
 0x10e   : > { %v1206_v24 = vadd.f32 %v3206_v16, %v943_v14  ;;  %v1207_v25 = vadd.f32 %v3206_v16, %v944_v15  ;;  %v1208_v26 = vadd.f32 %v3206_v16, %v945_v17  ;;  %v1209_v27 = vadd.f32 %v3206_v16, %v946_v18 }
 0x10f   : > { %v1210_v5 = vadd.f32 %v3206_v16, %v947_v20  ;;  %v1211_v28 = vadd.f32 %v3206_v16, %v948_v21  ;;  %v1460_v29 = vmax.f32 %v1204_v22, 0.0  ;;  %v1461_v30 = vmax.f32 %v1205_v23, 0.0 }
 0x110   : > { %v1462_v31 = vmax.f32 %v1206_v24, 0.0  ;;  %v1463_v32 = vmax.f32 %v1207_v25, 0.0  ;;  %v1464_v33 = vmax.f32 %v1208_v26, 0.0  ;;  %v1465_v34 = vmax.f32 %v1209_v27, 0.0 }
 0x111   : > { %v1466_v35 = vmax.f32 %v1210_v5, 0.0  ;;  %v1467_v36 = vmax.f32 %v1211_v28, 0.0  ;;  %1716 = vst [vmem:[%s2518_s26 + $0x7c0] sm:$0xff] %v1460_v29  ;;  %1717 = vst [vmem:[%s2518_s26 + $0x7c8] sm:$0xff] %v1461_v30 }
 0x112   : > { %1718 = vst [vmem:[%s2518_s26 + $0x7d0] sm:$0xff] %v1462_v31  ;;  %1719 = vst [vmem:[%s2518_s26 + $0x7d8] sm:$0xff] %v1463_v32 }
 0x113   : > { %1720 = vst [vmem:[%s2518_s26 + $0x7e0] sm:$0xff] %v1464_v33  ;;  %1721 = vst [vmem:[%s2518_s26 + $0x7e8] sm:$0xff] %v1465_v34 }
 0x114   : > { %1722 = vst [vmem:[%s2518_s26 + $0x7f0] sm:$0xff] %v1466_v35  ;;  %1723 = vst [vmem:[%s2518_s26 + $0x7f8] sm:$0xff] %v1467_v36 }
 0x115 PF: > { %s13_s12 = sadd.s32 1, %s2450_s12  }
 0x116   : > { %p10_p4 = scmp.ge.s32.totalorder %s13_s12, 6  }
 0x118   :  { %12 = sbr.rel (!%p10_p4) target bundleno = 1 (0x1), region = 62 }

</bundles_post_ra>
